<compile_context>
chip_gen: v5e
topology: v5e:2x2
jax: 0.10.0
libtpu: 0.0.40
codegen_flags: <defaults>
</compile_context>

<pallas_src>
import functools
import math

import numpy as np
import jax
import jax.numpy as jnp
from jax.experimental import pallas as pl
from jax.experimental.pallas import tpu as pltpu

KERNEL_SIZE = 3
DILATIONS = (1, 3, 5)
UPDOWN_FILTER_SIZE = 12
RATIO = 2
SNAKE_EPS = 1e-9  # Snake's no_div_by_zero
# h.snake_logscale = True  (alpha stored in log space, exponentiated in forward)


# ----------------------------------------------------------------------------
# Host-side: kaiser-sinc low-pass filter (alias_free_activation.torch.filter).
# ----------------------------------------------------------------------------
def kaiser_sinc_filter1d(cutoff, half_width, kernel_size):
    even = kernel_size % 2 == 0
    half_size = kernel_size // 2
    delta_f = 4 * half_width
    A = 2.285 * (half_size - 1) * math.pi * delta_f + 7.95
    if A > 50.0:
        beta = 0.1102 * (A - 8.7)
    elif A >= 21.0:
        beta = 0.5842 * (A - 21.0) ** 0.4 + 0.07886 * (A - 21.0)
    else:
        beta = 0.0
    window = np.kaiser(kernel_size, beta)
    if even:
        time = np.arange(-half_size, half_size) + 0.5
    else:
        time = np.arange(kernel_size) - half_size
    if cutoff == 0:
        filt = np.zeros_like(time)
    else:
        filt = 2 * cutoff * window * np.sinc(2 * cutoff * time)
        filt = filt / filt.sum()
    return filt.astype(np.float64)


def polyphase_taps():
    """Polyphase decomposition of UpSample1d(2)/DownSample1d(2), kernel 12.

    Up  : u[2t]   = sum_o up_even[o] * x_rep[t+o]     (o in [-3, 2])
          u[2t+1] = sum_o up_odd[o]  * x_rep[t+o]     (o in [-2, 3])
    Down: v[t]    = sum_j dn_even[j] * u_even_pad[t+j]  (j in [-2, 3])
                  + sum_j dn_odd[j]  * u_odd_pad[t+j]   (j in [-3, 2])
    where u_*_pad uses u[0] on the left edge and u[2T-1] on the right edge
    (replicate padding of the interleaved upsampled signal).
    """
    f = kaiser_sinc_filter1d(0.5 / RATIO, 0.6 / RATIO, UPDOWN_FILTER_SIZE)
    up_even = tuple((o, float(2.0 * f[5 - 2 * o])) for o in range(-3, 3))
    up_odd = tuple((o, float(2.0 * f[6 - 2 * o])) for o in range(-2, 4))
    dn_even = tuple((j, float(f[2 * j + 5])) for j in range(-2, 4))
    dn_odd = tuple((j, float(f[2 * j + 6])) for j in range(-3, 3))
    return up_even, up_odd, dn_even, dn_odd


# ----------------------------------------------------------------------------
# Host-side dense resampling operators — used ONLY by the f64 reference.
# ----------------------------------------------------------------------------
def _replicate_pad_cols(m, left, right):
    return np.concatenate(
        [np.repeat(m[:, :1], left, axis=1), m, np.repeat(m[:, -1:], right, axis=1)],
        axis=1,
    )


def upsample_operator(T, ratio=RATIO, kernel_size=UPDOWN_FILTER_SIZE):
    filt = kaiser_sinc_filter1d(0.5 / ratio, 0.6 / ratio, kernel_size)
    pad = kernel_size // ratio - 1
    pad_left = pad * ratio + (kernel_size - ratio) // 2
    pad_right = pad * ratio + (kernel_size - ratio + 1) // 2
    eye = np.eye(T, dtype=np.float64)
    xp = _replicate_pad_cols(eye, pad, pad)
    lp = T + 2 * pad
    lout = (lp - 1) * ratio + kernel_size
    y = np.zeros((T, lout), dtype=np.float64)
    for j in range(lp):
        y[:, j * ratio:j * ratio + kernel_size] += xp[:, j:j + 1] * filt[None, :]
    y *= ratio
    return y[:, pad_left:lout - pad_right]


def downsample_operator(L, ratio=RATIO, kernel_size=UPDOWN_FILTER_SIZE):
    filt = kaiser_sinc_filter1d(0.5 / ratio, 0.6 / ratio, kernel_size)
    even = kernel_size % 2 == 0
    pad_left = kernel_size // 2 - int(even)
    pad_right = kernel_size // 2
    eye = np.eye(L, dtype=np.float64)
    xp = _replicate_pad_cols(eye, pad_left, pad_right)
    lout = (L + pad_left + pad_right - kernel_size) // ratio + 1
    d = np.zeros((L, lout), dtype=np.float64)
    for t in range(lout):
        d[:, t] = xp[:, t * ratio:t * ratio + kernel_size] @ filt
    return d


# ----------------------------------------------------------------------------
# Pallas kernel: fused AMPBlock2 (all three dilation layers) for one batch elem.
# ----------------------------------------------------------------------------
def _amp_block2_kernel(x_ref, w_ref, b_ref, ae_ref, ai_ref, o_ref, *,
                       up_even, up_odd, dn_even, dn_odd):
    x = x_ref[...]                                   # (C, T) f32 residual
    C, T = x.shape

    def shift(a, off, left, right):
        # b[:, t] = a[:, t+off]; out-of-range columns filled from (C,1) left/right.
        if off == 0:
            return a
        if off > 0:
            fill = jnp.broadcast_to(right, (C, off)).astype(a.dtype)
            return jnp.concatenate([a[:, off:], fill], axis=1)
        fill = jnp.broadcast_to(left, (C, -off)).astype(a.dtype)
        return jnp.concatenate([fill, a[:, :T + off]], axis=1)

    def fir(a, taps, left, right):
        (o0, c0) = taps[0]
        acc = c0 * shift(a, o0, left, right)         # init from first tap (no zero tile)
        for o, c in taps[1:]:
            acc = acc + c * shift(a, o, left, right)
        return acc

    zero = jnp.zeros((C, 1), jnp.float32)

    for layer, dil in enumerate(DILATIONS):
        a_exp = ae_ref[layer]                        # (C, 1) exp(alpha)
        a_inv = ai_ref[layer]                        # (C, 1) 1/(exp(alpha)+eps)

        # --- anti-aliased upsample x2: 12-tap polyphase FIR (VPU) ------------
        xl, xr = x[:, :1], x[:, -1:]                 # replicate boundary
        u_even = fir(x, up_even, xl, xr)             # u[2t]
        u_odd = fir(x, up_odd, xl, xr)               # u[2t+1]

        # --- Snake: u + (1/alpha) * sin^2(alpha*u) ---------------------------
        u_even = u_even + a_inv * jnp.square(jnp.sin(u_even * a_exp))
        u_odd = u_odd + a_inv * jnp.square(jnp.sin(u_odd * a_exp))

        # --- anti-aliased downsample /2: 12-tap polyphase FIR (VPU) ----------
        # Replicate padding of the interleaved signal u: left edge = u[0] =
        # u_even[:,0], right edge = u[2T-1] = u_odd[:,-1].
        ul, ur = u_even[:, :1], u_odd[:, -1:]
        v = fir(u_even, dn_even, ul, ur) + fir(u_odd, dn_odd, ul, ur)

        # --- dilated weight-norm Conv1d (K=3, padding=dil) -------------------
        # One stacked bf16 MXU matmul: (C, 3C) @ (3C, T), f32 accumulation.
        v_bf = v.astype(jnp.bfloat16)
        vstack = jnp.concatenate(
            [shift(v_bf, -dil, zero, zero), v_bf, shift(v_bf, dil, zero, zero)],
            axis=0)                                  # (3C, T) zero-padded taps
        y = jnp.dot(w_ref[layer], vstack, preferred_element_type=jnp.float32)

        # --- bias + residual --------------------------------------------------
        x = x + y + b_ref[layer]

    o_ref[...] = x.astype(o_ref.dtype)


def amp_block2_pallas(x, w_cat_all, b_all, ae_all, ai_all):
    """x: (B, C, T) f32.  w_cat_all: (L, C, K*C) bf16.  b/ae/ai: (L, C, 1) f32."""
    B, C, T = x.shape
    up_even, up_odd, dn_even, dn_odd = polyphase_taps()
    kernel = functools.partial(_amp_block2_kernel, up_even=up_even, up_odd=up_odd,
                               dn_even=dn_even, dn_odd=dn_odd)
    return pl.pallas_call(
        kernel,
        out_shape=jax.ShapeDtypeStruct((B, C, T), x.dtype),
        grid_spec=pltpu.PrefetchScalarGridSpec(
            num_scalar_prefetch=0,
            grid=(B,),
            in_specs=[
                pl.BlockSpec((None, C, T), lambda b: (b, 0, 0)),       # x (batch-squeezed)
                pl.BlockSpec(w_cat_all.shape, lambda b: (0, 0, 0)),    # stacked conv weights (bf16)
                pl.BlockSpec(b_all.shape, lambda b: (0, 0, 0)),        # bias
                pl.BlockSpec(ae_all.shape, lambda b: (0, 0, 0)),       # exp(alpha)
                pl.BlockSpec(ai_all.shape, lambda b: (0, 0, 0)),       # 1/(exp(alpha)+eps)
            ],
            out_specs=pl.BlockSpec((None, C, T), lambda b: (b, 0, 0)),
        ),
        compiler_params=pltpu.CompilerParams(
            dimension_semantics=("parallel",),       # batch axis -> megacore-shardable
            vmem_limit_bytes=32 * 1024 * 1024,
        ),
    )(x, w_cat_all, b_all, ae_all, ai_all)


# ----------------------------------------------------------------------------
# Deterministic synthetic parameters (shapes follow AMPBlock2.__init__).
# ----------------------------------------------------------------------------
def init_params(key, channels):
    params = []
    for _ in DILATIONS:
        key, k_w, k_b, k_a = jax.random.split(key, 4)
        # init_weights: conv weight ~ N(0, 0.01); weight_norm folded into effective weight
        w = 0.01 * jax.random.normal(k_w, (channels, channels, KERNEL_SIZE), jnp.float32)
        bound = 1.0 / math.sqrt(channels * KERNEL_SIZE)
        bias = jax.random.uniform(k_b, (channels, 1), jnp.float32, -bound, bound)
        # Snake alpha (log-scale parameter; torch init is zeros -> use small noise)
        alpha = 0.1 * jax.random.normal(k_a, (channels, 1), jnp.float32)
        params.append((w, bias, alpha))
    return params


def pack_params(params):
    """Kernel-side packing: stacked taps (bf16), bias, precomputed alpha terms."""
    c = params[0][0].shape[0]
    w_cat = jnp.stack([jnp.transpose(w, (0, 2, 1)).reshape(c, KERNEL_SIZE * c)
                       for (w, _, _) in params]).astype(jnp.bfloat16)   # (L, C, 3C)
    b_all = jnp.stack([b for (_, b, _) in params])                      # (L, C, 1)
    ae_all = jnp.stack([jnp.exp(a) for (_, _, a) in params])            # (L, C, 1)
    ai_all = 1.0 / (ae_all + SNAKE_EPS)                                 # (L, C, 1)
    return w_cat, b_all, ae_all, ai_all


# ----------------------------------------------------------------------------
# float64 numpy reference using the dense resampling operators (independent of
# the in-kernel polyphase decomposition).
# ----------------------------------------------------------------------------
def reference_forward_np(x, params, up_mat, down_mat):
    x = np.asarray(x, np.float64)
    U = np.asarray(up_mat, np.float64)
    D = np.asarray(down_mat, np.float64)
    T = x.shape[-1]
    for (w, b, alpha), dil in zip(params, DILATIONS):
        w = np.asarray(w, np.float64)
        bnp = np.asarray(b, np.float64)
        a = np.exp(np.asarray(alpha, np.float64))
        u = np.einsum("bct,ts->bcs", x, U)
        u = u + (1.0 / (a + SNAKE_EPS))[None] * np.sin(u * a[None]) ** 2
        v = np.einsum("bcs,st->bct", u, D)
        vp = np.pad(v, ((0, 0), (0, 0), (dil, dil)))
        out = np.zeros_like(x) + bnp[None]
        for k in range(KERNEL_SIZE):
            out = out + np.einsum("oc,bct->bot", w[:, :, k], vp[:, :, k * dil:k * dil + T])
        x = out + x
    return x


if __name__ == "__main__":
    B, C, T = 2, 16, 128   # small demo shape; T multiple of 128 (lane-dense), C multiple of 8
    key = jax.random.PRNGKey(0)
    kx, kp = jax.random.split(key)
    x = jax.random.normal(kx, (B, C, T), jnp.float32)
    params = init_params(kp, C)
    w_cat, b_all, ae_all, ai_all = pack_params(params)

    y = jax.block_until_ready(amp_block2_pallas(x, w_cat, b_all, ae_all, ai_all))

    up_np = upsample_operator(T)          # (T, 2T)  f64, reference only
    down_np = downsample_operator(2 * T)  # (2T, T)  f64, reference only
    y_ref = reference_forward_np(np.asarray(x),
                                 [(np.asarray(w), np.asarray(b), np.asarray(a))
                                  for (w, b, a) in params],
                                 up_np, down_np)

    assert y.shape == (B, C, T) and y.dtype == jnp.float32
    rel_l2 = np.linalg.norm(np.asarray(y, np.float64) - y_ref) / np.linalg.norm(y_ref)
    assert rel_l2 < 1e-2, f"relative L2 error too large: {rel_l2}"
    print("KERNEL_OK")
</pallas_src>

<mosaic_0001>
module attributes {stable_mosaic.version = 11 : i64} {
  func.func @_amp_block2_kernel(%arg0: i32, %arg1: memref<1x16x128xf32, #tpu.memory_space<vmem>>, %arg2: memref<3x16x48xbf16, #tpu.memory_space<vmem>>, %arg3: memref<3x16x1xf32, #tpu.memory_space<vmem>>, %arg4: memref<3x16x1xf32, #tpu.memory_space<vmem>>, %arg5: memref<3x16x1xf32, #tpu.memory_space<vmem>>, %arg6: memref<1x16x128xf32, #tpu.memory_space<vmem>>) attributes {dimension_semantics = [#tpu.dimension_semantics<parallel>], iteration_bounds = array<i64: 2>, scalar_prefetch = 0 : i64, scratch_operands = 0 : i64, tpu.core_type = #tpu.core_type<tc>, window_params = [{transform_indices = @transform_0, window_bounds = array<i64: 1, 16, 128>}, {pipeline_mode = #tpu.pipeline_mode<synchronous>, transform_indices = @transform_1, window_bounds = array<i64: 3, 16, 48>}, {pipeline_mode = #tpu.pipeline_mode<synchronous>, transform_indices = @transform_2, window_bounds = array<i64: 3, 16, 1>}, {pipeline_mode = #tpu.pipeline_mode<synchronous>, transform_indices = @transform_3, window_bounds = array<i64: 3, 16, 1>}, {pipeline_mode = #tpu.pipeline_mode<synchronous>, transform_indices = @transform_4, window_bounds = array<i64: 3, 16, 1>}, {transform_indices = @transform_5, window_bounds = array<i64: 1, 16, 128>}]} {
    %c0 = arith.constant 0 : index
    %c0_0 = arith.constant 0 : index
    %c0_1 = arith.constant 0 : index
    %0 = vector.load %arg1[%c0, %c0_0, %c0_1] : memref<1x16x128xf32, #tpu.memory_space<vmem>>, vector<1x16x128xf32>
    %1 = vector.shape_cast %0 : vector<1x16x128xf32> to vector<16x128xf32>
    %cst = arith.constant 0.000000e+00 : f32
    %2 = vector.broadcast %cst : f32 to vector<16x1xf32>
    %c0_2 = arith.constant 0 : index
    %c0_3 = arith.constant 0 : index
    %c0_4 = arith.constant 0 : index
    %3 = vector.load %arg4[%c0_2, %c0_3, %c0_4] : memref<3x16x1xf32, #tpu.memory_space<vmem>>, vector<1x16x1xf32>
    %4 = vector.shape_cast %3 : vector<1x16x1xf32> to vector<16x1xf32>
    %c0_5 = arith.constant 0 : index
    %c0_6 = arith.constant 0 : index
    %c0_7 = arith.constant 0 : index
    %5 = vector.load %arg5[%c0_5, %c0_6, %c0_7] : memref<3x16x1xf32, #tpu.memory_space<vmem>>, vector<1x16x1xf32>
    %6 = vector.shape_cast %5 : vector<1x16x1xf32> to vector<16x1xf32>
    %7 = vector.extract_strided_slice %1 {offsets = [0, 0], sizes = [16, 1], strides = [1, 1]} : vector<16x128xf32> to vector<16x1xf32>
    %8 = vector.extract_strided_slice %1 {offsets = [0, 127], sizes = [16, 1], strides = [1, 1]} : vector<16x128xf32> to vector<16x1xf32>
    %9 = vector.shape_cast %7 : vector<16x1xf32> to vector<16x1xf32>
    %10 = vector.broadcast %9 : vector<16x1xf32> to vector<16x3xf32>
    %11 = vector.extract_strided_slice %1 {offsets = [0, 0], sizes = [16, 125], strides = [1, 1]} : vector<16x128xf32> to vector<16x125xf32>
    %12 = tpu.concatenate %10, %11 in 1 : vector<16x3xf32>, vector<16x125xf32> -> vector<16x128xf32>
    %cst_8 = arith.constant 0.00405793311 : f32
    %13 = vector.broadcast %cst_8 : f32 to vector<16x128xf32>
    %14 = arith.mulf %13, %12 : vector<16x128xf32>
    %15 = vector.shape_cast %7 : vector<16x1xf32> to vector<16x1xf32>
    %16 = vector.broadcast %15 : vector<16x1xf32> to vector<16x2xf32>
    %17 = vector.extract_strided_slice %1 {offsets = [0, 0], sizes = [16, 126], strides = [1, 1]} : vector<16x128xf32> to vector<16x126xf32>
    %18 = tpu.concatenate %16, %17 in 1 : vector<16x2xf32>, vector<16x126xf32> -> vector<16x128xf32>
    %cst_9 = arith.constant -0.0510869287 : f32
    %19 = vector.broadcast %cst_9 : f32 to vector<16x128xf32>
    %20 = arith.mulf %19, %18 : vector<16x128xf32>
    %21 = arith.addf %14, %20 : vector<16x128xf32>
    %22 = vector.extract_strided_slice %1 {offsets = [0, 0], sizes = [16, 127], strides = [1, 1]} : vector<16x128xf32> to vector<16x127xf32>
    %23 = tpu.concatenate %7, %22 in 1 : vector<16x1xf32>, vector<16x127xf32> -> vector<16x128xf32>
    %cst_10 = arith.constant 0.257145226 : f32
    %24 = vector.broadcast %cst_10 : f32 to vector<16x128xf32>
    %25 = arith.mulf %24, %23 : vector<16x128xf32>
    %26 = arith.addf %21, %25 : vector<16x128xf32>
    %cst_11 = arith.constant 0.886419594 : f32
    %27 = vector.broadcast %cst_11 : f32 to vector<16x128xf32>
    %28 = arith.mulf %27, %1 : vector<16x128xf32>
    %29 = arith.addf %26, %28 : vector<16x128xf32>
    %30 = vector.extract_strided_slice %1 {offsets = [0, 1], sizes = [16, 127], strides = [1, 1]} : vector<16x128xf32> to vector<16x127xf32>
    %31 = tpu.concatenate %30, %8 in 1 : vector<16x127xf32>, vector<16x1xf32> -> vector<16x128xf32>
    %cst_12 = arith.constant -0.115314752 : f32
    %32 = vector.broadcast %cst_12 : f32 to vector<16x128xf32>
    %33 = arith.mulf %32, %31 : vector<16x128xf32>
    %34 = arith.addf %29, %33 : vector<16x128xf32>
    %35 = vector.shape_cast %8 : vector<16x1xf32> to vector<16x1xf32>
    %36 = vector.broadcast %35 : vector<16x1xf32> to vector<16x2xf32>
    %37 = vector.extract_strided_slice %1 {offsets = [0, 2], sizes = [16, 126], strides = [1, 1]} : vector<16x128xf32> to vector<16x126xf32>
    %38 = tpu.concatenate %37, %36 in 1 : vector<16x126xf32>, vector<16x2xf32> -> vector<16x128xf32>
    %cst_13 = arith.constant 0.0187789276 : f32
    %39 = vector.broadcast %cst_13 : f32 to vector<16x128xf32>
    %40 = arith.mulf %39, %38 : vector<16x128xf32>
    %41 = arith.addf %34, %40 : vector<16x128xf32>
    %42 = vector.shape_cast %7 : vector<16x1xf32> to vector<16x1xf32>
    %43 = vector.broadcast %42 : vector<16x1xf32> to vector<16x2xf32>
    %44 = vector.extract_strided_slice %1 {offsets = [0, 0], sizes = [16, 126], strides = [1, 1]} : vector<16x128xf32> to vector<16x126xf32>
    %45 = tpu.concatenate %43, %44 in 1 : vector<16x2xf32>, vector<16x126xf32> -> vector<16x128xf32>
    %cst_14 = arith.constant 0.0187789276 : f32
    %46 = vector.broadcast %cst_14 : f32 to vector<16x128xf32>
    %47 = arith.mulf %46, %45 : vector<16x128xf32>
    %48 = vector.extract_strided_slice %1 {offsets = [0, 0], sizes = [16, 127], strides = [1, 1]} : vector<16x128xf32> to vector<16x127xf32>
    %49 = tpu.concatenate %7, %48 in 1 : vector<16x1xf32>, vector<16x127xf32> -> vector<16x128xf32>
    %cst_15 = arith.constant -0.115314752 : f32
    %50 = vector.broadcast %cst_15 : f32 to vector<16x128xf32>
    %51 = arith.mulf %50, %49 : vector<16x128xf32>
    %52 = arith.addf %47, %51 : vector<16x128xf32>
    %cst_16 = arith.constant 0.886419594 : f32
    %53 = vector.broadcast %cst_16 : f32 to vector<16x128xf32>
    %54 = arith.mulf %53, %1 : vector<16x128xf32>
    %55 = arith.addf %52, %54 : vector<16x128xf32>
    %56 = vector.extract_strided_slice %1 {offsets = [0, 1], sizes = [16, 127], strides = [1, 1]} : vector<16x128xf32> to vector<16x127xf32>
    %57 = tpu.concatenate %56, %8 in 1 : vector<16x127xf32>, vector<16x1xf32> -> vector<16x128xf32>
    %cst_17 = arith.constant 0.257145226 : f32
    %58 = vector.broadcast %cst_17 : f32 to vector<16x128xf32>
    %59 = arith.mulf %58, %57 : vector<16x128xf32>
    %60 = arith.addf %55, %59 : vector<16x128xf32>
    %61 = vector.shape_cast %8 : vector<16x1xf32> to vector<16x1xf32>
    %62 = vector.broadcast %61 : vector<16x1xf32> to vector<16x2xf32>
    %63 = vector.extract_strided_slice %1 {offsets = [0, 2], sizes = [16, 126], strides = [1, 1]} : vector<16x128xf32> to vector<16x126xf32>
    %64 = tpu.concatenate %63, %62 in 1 : vector<16x126xf32>, vector<16x2xf32> -> vector<16x128xf32>
    %cst_18 = arith.constant -0.0510869287 : f32
    %65 = vector.broadcast %cst_18 : f32 to vector<16x128xf32>
    %66 = arith.mulf %65, %64 : vector<16x128xf32>
    %67 = arith.addf %60, %66 : vector<16x128xf32>
    %68 = vector.shape_cast %8 : vector<16x1xf32> to vector<16x1xf32>
    %69 = vector.broadcast %68 : vector<16x1xf32> to vector<16x3xf32>
    %70 = vector.extract_strided_slice %1 {offsets = [0, 3], sizes = [16, 125], strides = [1, 1]} : vector<16x128xf32> to vector<16x125xf32>
    %71 = tpu.concatenate %70, %69 in 1 : vector<16x125xf32>, vector<16x3xf32> -> vector<16x128xf32>
    %cst_19 = arith.constant 0.00405793311 : f32
    %72 = vector.broadcast %cst_19 : f32 to vector<16x128xf32>
    %73 = arith.mulf %72, %71 : vector<16x128xf32>
    %74 = arith.addf %67, %73 : vector<16x128xf32>
    %75 = vector.broadcast %4 : vector<16x1xf32> to vector<16x128xf32>
    %76 = arith.mulf %41, %75 : vector<16x128xf32>
    %77 = math.sin %76 : vector<16x128xf32>
    %78 = arith.mulf %77, %77 : vector<16x128xf32>
    %79 = vector.broadcast %6 : vector<16x1xf32> to vector<16x128xf32>
    %80 = arith.mulf %79, %78 : vector<16x128xf32>
    %81 = arith.addf %41, %80 : vector<16x128xf32>
    %82 = vector.broadcast %4 : vector<16x1xf32> to vector<16x128xf32>
    %83 = arith.mulf %74, %82 : vector<16x128xf32>
    %84 = math.sin %83 : vector<16x128xf32>
    %85 = arith.mulf %84, %84 : vector<16x128xf32>
    %86 = vector.broadcast %6 : vector<16x1xf32> to vector<16x128xf32>
    %87 = arith.mulf %86, %85 : vector<16x128xf32>
    %88 = arith.addf %74, %87 : vector<16x128xf32>
    %89 = vector.extract_strided_slice %81 {offsets = [0, 0], sizes = [16, 1], strides = [1, 1]} : vector<16x128xf32> to vector<16x1xf32>
    %90 = vector.extract_strided_slice %88 {offsets = [0, 127], sizes = [16, 1], strides = [1, 1]} : vector<16x128xf32> to vector<16x1xf32>
    %91 = vector.shape_cast %89 : vector<16x1xf32> to vector<16x1xf32>
    %92 = vector.broadcast %91 : vector<16x1xf32> to vector<16x2xf32>
    %93 = vector.extract_strided_slice %81 {offsets = [0, 0], sizes = [16, 126], strides = [1, 1]} : vector<16x128xf32> to vector<16x126xf32>
    %94 = tpu.concatenate %92, %93 in 1 : vector<16x2xf32>, vector<16x126xf32> -> vector<16x128xf32>
    %cst_20 = arith.constant 0.00938946381 : f32
    %95 = vector.broadcast %cst_20 : f32 to vector<16x128xf32>
    %96 = arith.mulf %95, %94 : vector<16x128xf32>
    %97 = vector.extract_strided_slice %81 {offsets = [0, 0], sizes = [16, 127], strides = [1, 1]} : vector<16x128xf32> to vector<16x127xf32>
    %98 = tpu.concatenate %89, %97 in 1 : vector<16x1xf32>, vector<16x127xf32> -> vector<16x128xf32>
    %cst_21 = arith.constant -0.0576573759 : f32
    %99 = vector.broadcast %cst_21 : f32 to vector<16x128xf32>
    %100 = arith.mulf %99, %98 : vector<16x128xf32>
    %101 = arith.addf %96, %100 : vector<16x128xf32>
    %cst_22 = arith.constant 0.443209797 : f32
    %102 = vector.broadcast %cst_22 : f32 to vector<16x128xf32>
    %103 = arith.mulf %102, %81 : vector<16x128xf32>
    %104 = arith.addf %101, %103 : vector<16x128xf32>
    %105 = vector.extract_strided_slice %81 {offsets = [0, 1], sizes = [16, 127], strides = [1, 1]} : vector<16x128xf32> to vector<16x127xf32>
    %106 = tpu.concatenate %105, %90 in 1 : vector<16x127xf32>, vector<16x1xf32> -> vector<16x128xf32>
    %cst_23 = arith.constant 0.128572613 : f32
    %107 = vector.broadcast %cst_23 : f32 to vector<16x128xf32>
    %108 = arith.mulf %107, %106 : vector<16x128xf32>
    %109 = arith.addf %104, %108 : vector<16x128xf32>
    %110 = vector.shape_cast %90 : vector<16x1xf32> to vector<16x1xf32>
    %111 = vector.broadcast %110 : vector<16x1xf32> to vector<16x2xf32>
    %112 = vector.extract_strided_slice %81 {offsets = [0, 2], sizes = [16, 126], strides = [1, 1]} : vector<16x128xf32> to vector<16x126xf32>
    %113 = tpu.concatenate %112, %111 in 1 : vector<16x126xf32>, vector<16x2xf32> -> vector<16x128xf32>
    %cst_24 = arith.constant -0.0255434643 : f32
    %114 = vector.broadcast %cst_24 : f32 to vector<16x128xf32>
    %115 = arith.mulf %114, %113 : vector<16x128xf32>
    %116 = arith.addf %109, %115 : vector<16x128xf32>
    %117 = vector.shape_cast %90 : vector<16x1xf32> to vector<16x1xf32>
    %118 = vector.broadcast %117 : vector<16x1xf32> to vector<16x3xf32>
    %119 = vector.extract_strided_slice %81 {offsets = [0, 3], sizes = [16, 125], strides = [1, 1]} : vector<16x128xf32> to vector<16x125xf32>
    %120 = tpu.concatenate %119, %118 in 1 : vector<16x125xf32>, vector<16x3xf32> -> vector<16x128xf32>
    %cst_25 = arith.constant 0.00202896656 : f32
    %121 = vector.broadcast %cst_25 : f32 to vector<16x128xf32>
    %122 = arith.mulf %121, %120 : vector<16x128xf32>
    %123 = arith.addf %116, %122 : vector<16x128xf32>
    %124 = vector.shape_cast %89 : vector<16x1xf32> to vector<16x1xf32>
    %125 = vector.broadcast %124 : vector<16x1xf32> to vector<16x3xf32>
    %126 = vector.extract_strided_slice %88 {offsets = [0, 0], sizes = [16, 125], strides = [1, 1]} : vector<16x128xf32> to vector<16x125xf32>
    %127 = tpu.concatenate %125, %126 in 1 : vector<16x3xf32>, vector<16x125xf32> -> vector<16x128xf32>
    %cst_26 = arith.constant 0.00202896656 : f32
    %128 = vector.broadcast %cst_26 : f32 to vector<16x128xf32>
    %129 = arith.mulf %128, %127 : vector<16x128xf32>
    %130 = vector.shape_cast %89 : vector<16x1xf32> to vector<16x1xf32>
    %131 = vector.broadcast %130 : vector<16x1xf32> to vector<16x2xf32>
    %132 = vector.extract_strided_slice %88 {offsets = [0, 0], sizes = [16, 126], strides = [1, 1]} : vector<16x128xf32> to vector<16x126xf32>
    %133 = tpu.concatenate %131, %132 in 1 : vector<16x2xf32>, vector<16x126xf32> -> vector<16x128xf32>
    %cst_27 = arith.constant -0.0255434643 : f32
    %134 = vector.broadcast %cst_27 : f32 to vector<16x128xf32>
    %135 = arith.mulf %134, %133 : vector<16x128xf32>
    %136 = arith.addf %129, %135 : vector<16x128xf32>
    %137 = vector.extract_strided_slice %88 {offsets = [0, 0], sizes = [16, 127], strides = [1, 1]} : vector<16x128xf32> to vector<16x127xf32>
    %138 = tpu.concatenate %89, %137 in 1 : vector<16x1xf32>, vector<16x127xf32> -> vector<16x128xf32>
    %cst_28 = arith.constant 0.128572613 : f32
    %139 = vector.broadcast %cst_28 : f32 to vector<16x128xf32>
    %140 = arith.mulf %139, %138 : vector<16x128xf32>
    %141 = arith.addf %136, %140 : vector<16x128xf32>
    %cst_29 = arith.constant 0.443209797 : f32
    %142 = vector.broadcast %cst_29 : f32 to vector<16x128xf32>
    %143 = arith.mulf %142, %88 : vector<16x128xf32>
    %144 = arith.addf %141, %143 : vector<16x128xf32>
    %145 = vector.extract_strided_slice %88 {offsets = [0, 1], sizes = [16, 127], strides = [1, 1]} : vector<16x128xf32> to vector<16x127xf32>
    %146 = tpu.concatenate %145, %90 in 1 : vector<16x127xf32>, vector<16x1xf32> -> vector<16x128xf32>
    %cst_30 = arith.constant -0.0576573759 : f32
    %147 = vector.broadcast %cst_30 : f32 to vector<16x128xf32>
    %148 = arith.mulf %147, %146 : vector<16x128xf32>
    %149 = arith.addf %144, %148 : vector<16x128xf32>
    %150 = vector.shape_cast %90 : vector<16x1xf32> to vector<16x1xf32>
    %151 = vector.broadcast %150 : vector<16x1xf32> to vector<16x2xf32>
    %152 = vector.extract_strided_slice %88 {offsets = [0, 2], sizes = [16, 126], strides = [1, 1]} : vector<16x128xf32> to vector<16x126xf32>
    %153 = tpu.concatenate %152, %151 in 1 : vector<16x126xf32>, vector<16x2xf32> -> vector<16x128xf32>
    %cst_31 = arith.constant 0.00938946381 : f32
    %154 = vector.broadcast %cst_31 : f32 to vector<16x128xf32>
    %155 = arith.mulf %154, %153 : vector<16x128xf32>
    %156 = arith.addf %149, %155 : vector<16x128xf32>
    %157 = arith.addf %123, %156 : vector<16x128xf32>
    %158 = arith.truncf %157 : vector<16x128xf32> to vector<16x128xbf16>
    %159 = arith.truncf %2 : vector<16x1xf32> to vector<16x1xbf16>
    %160 = vector.extract_strided_slice %158 {offsets = [0, 0], sizes = [16, 127], strides = [1, 1]} : vector<16x128xbf16> to vector<16x127xbf16>
    %161 = tpu.concatenate %159, %160 in 1 : vector<16x1xbf16>, vector<16x127xbf16> -> vector<16x128xbf16>
    %162 = arith.truncf %2 : vector<16x1xf32> to vector<16x1xbf16>
    %163 = vector.extract_strided_slice %158 {offsets = [0, 1], sizes = [16, 127], strides = [1, 1]} : vector<16x128xbf16> to vector<16x127xbf16>
    %164 = tpu.concatenate %163, %162 in 1 : vector<16x127xbf16>, vector<16x1xbf16> -> vector<16x128xbf16>
    %165 = tpu.concatenate %161, %158, %164 in 0 : vector<16x128xbf16>, vector<16x128xbf16>, vector<16x128xbf16> -> vector<48x128xbf16>
    %c0_32 = arith.constant 0 : index
    %c0_33 = arith.constant 0 : index
    %c0_34 = arith.constant 0 : index
    %166 = vector.load %arg2[%c0_32, %c0_33, %c0_34] : memref<3x16x48xbf16, #tpu.memory_space<vmem>>, vector<1x16x48xbf16>
    %167 = vector.shape_cast %166 : vector<1x16x48xbf16> to vector<16x48xbf16>
    %cst_35 = arith.constant dense<0.000000e+00> : vector<16x128xf32>
    %168 = tpu.matmul %167, %165, %cst_35 {dimension_numbers = #tpu.dot_dimension_numbers<[1], [0], [0], [1], [0, 0, 1, 1], [], []>} : vector<16x48xbf16>, vector<48x128xbf16>, vector<16x128xf32> -> vector<16x128xf32>
    %169 = arith.addf %1, %168 : vector<16x128xf32>
    %c0_36 = arith.constant 0 : index
    %c0_37 = arith.constant 0 : index
    %c0_38 = arith.constant 0 : index
    %170 = vector.load %arg3[%c0_36, %c0_37, %c0_38] : memref<3x16x1xf32, #tpu.memory_space<vmem>>, vector<1x16x1xf32>
    %171 = vector.shape_cast %170 : vector<1x16x1xf32> to vector<16x1xf32>
    %172 = vector.broadcast %171 : vector<16x1xf32> to vector<16x128xf32>
    %173 = arith.addf %169, %172 : vector<16x128xf32>
    %c1 = arith.constant 1 : index
    %c0_39 = arith.constant 0 : index
    %c0_40 = arith.constant 0 : index
    %174 = vector.load %arg4[%c1, %c0_39, %c0_40] : memref<3x16x1xf32, #tpu.memory_space<vmem>>, vector<1x16x1xf32>
    %175 = vector.shape_cast %174 : vector<1x16x1xf32> to vector<16x1xf32>
    %c1_41 = arith.constant 1 : index
    %c0_42 = arith.constant 0 : index
    %c0_43 = arith.constant 0 : index
    %176 = vector.load %arg5[%c1_41, %c0_42, %c0_43] : memref<3x16x1xf32, #tpu.memory_space<vmem>>, vector<1x16x1xf32>
    %177 = vector.shape_cast %176 : vector<1x16x1xf32> to vector<16x1xf32>
    %178 = vector.extract_strided_slice %173 {offsets = [0, 0], sizes = [16, 1], strides = [1, 1]} : vector<16x128xf32> to vector<16x1xf32>
    %179 = vector.extract_strided_slice %173 {offsets = [0, 127], sizes = [16, 1], strides = [1, 1]} : vector<16x128xf32> to vector<16x1xf32>
    %180 = vector.shape_cast %178 : vector<16x1xf32> to vector<16x1xf32>
    %181 = vector.broadcast %180 : vector<16x1xf32> to vector<16x3xf32>
    %182 = vector.extract_strided_slice %173 {offsets = [0, 0], sizes = [16, 125], strides = [1, 1]} : vector<16x128xf32> to vector<16x125xf32>
    %183 = tpu.concatenate %181, %182 in 1 : vector<16x3xf32>, vector<16x125xf32> -> vector<16x128xf32>
    %cst_44 = arith.constant 0.00405793311 : f32
    %184 = vector.broadcast %cst_44 : f32 to vector<16x128xf32>
    %185 = arith.mulf %184, %183 : vector<16x128xf32>
    %186 = vector.shape_cast %178 : vector<16x1xf32> to vector<16x1xf32>
    %187 = vector.broadcast %186 : vector<16x1xf32> to vector<16x2xf32>
    %188 = vector.extract_strided_slice %173 {offsets = [0, 0], sizes = [16, 126], strides = [1, 1]} : vector<16x128xf32> to vector<16x126xf32>
    %189 = tpu.concatenate %187, %188 in 1 : vector<16x2xf32>, vector<16x126xf32> -> vector<16x128xf32>
    %cst_45 = arith.constant -0.0510869287 : f32
    %190 = vector.broadcast %cst_45 : f32 to vector<16x128xf32>
    %191 = arith.mulf %190, %189 : vector<16x128xf32>
    %192 = arith.addf %185, %191 : vector<16x128xf32>
    %193 = vector.extract_strided_slice %173 {offsets = [0, 0], sizes = [16, 127], strides = [1, 1]} : vector<16x128xf32> to vector<16x127xf32>
    %194 = tpu.concatenate %178, %193 in 1 : vector<16x1xf32>, vector<16x127xf32> -> vector<16x128xf32>
    %cst_46 = arith.constant 0.257145226 : f32
    %195 = vector.broadcast %cst_46 : f32 to vector<16x128xf32>
    %196 = arith.mulf %195, %194 : vector<16x128xf32>
    %197 = arith.addf %192, %196 : vector<16x128xf32>
    %cst_47 = arith.constant 0.886419594 : f32
    %198 = vector.broadcast %cst_47 : f32 to vector<16x128xf32>
    %199 = arith.mulf %198, %173 : vector<16x128xf32>
    %200 = arith.addf %197, %199 : vector<16x128xf32>
    %201 = vector.extract_strided_slice %173 {offsets = [0, 1], sizes = [16, 127], strides = [1, 1]} : vector<16x128xf32> to vector<16x127xf32>
    %202 = tpu.concatenate %201, %179 in 1 : vector<16x127xf32>, vector<16x1xf32> -> vector<16x128xf32>
    %cst_48 = arith.constant -0.115314752 : f32
    %203 = vector.broadcast %cst_48 : f32 to vector<16x128xf32>
    %204 = arith.mulf %203, %202 : vector<16x128xf32>
    %205 = arith.addf %200, %204 : vector<16x128xf32>
    %206 = vector.shape_cast %179 : vector<16x1xf32> to vector<16x1xf32>
    %207 = vector.broadcast %206 : vector<16x1xf32> to vector<16x2xf32>
    %208 = vector.extract_strided_slice %173 {offsets = [0, 2], sizes = [16, 126], strides = [1, 1]} : vector<16x128xf32> to vector<16x126xf32>
    %209 = tpu.concatenate %208, %207 in 1 : vector<16x126xf32>, vector<16x2xf32> -> vector<16x128xf32>
    %cst_49 = arith.constant 0.0187789276 : f32
    %210 = vector.broadcast %cst_49 : f32 to vector<16x128xf32>
    %211 = arith.mulf %210, %209 : vector<16x128xf32>
    %212 = arith.addf %205, %211 : vector<16x128xf32>
    %213 = vector.shape_cast %178 : vector<16x1xf32> to vector<16x1xf32>
    %214 = vector.broadcast %213 : vector<16x1xf32> to vector<16x2xf32>
    %215 = vector.extract_strided_slice %173 {offsets = [0, 0], sizes = [16, 126], strides = [1, 1]} : vector<16x128xf32> to vector<16x126xf32>
    %216 = tpu.concatenate %214, %215 in 1 : vector<16x2xf32>, vector<16x126xf32> -> vector<16x128xf32>
    %cst_50 = arith.constant 0.0187789276 : f32
    %217 = vector.broadcast %cst_50 : f32 to vector<16x128xf32>
    %218 = arith.mulf %217, %216 : vector<16x128xf32>
    %219 = vector.extract_strided_slice %173 {offsets = [0, 0], sizes = [16, 127], strides = [1, 1]} : vector<16x128xf32> to vector<16x127xf32>
    %220 = tpu.concatenate %178, %219 in 1 : vector<16x1xf32>, vector<16x127xf32> -> vector<16x128xf32>
    %cst_51 = arith.constant -0.115314752 : f32
    %221 = vector.broadcast %cst_51 : f32 to vector<16x128xf32>
    %222 = arith.mulf %221, %220 : vector<16x128xf32>
    %223 = arith.addf %218, %222 : vector<16x128xf32>
    %cst_52 = arith.constant 0.886419594 : f32
    %224 = vector.broadcast %cst_52 : f32 to vector<16x128xf32>
    %225 = arith.mulf %224, %173 : vector<16x128xf32>
    %226 = arith.addf %223, %225 : vector<16x128xf32>
    %227 = vector.extract_strided_slice %173 {offsets = [0, 1], sizes = [16, 127], strides = [1, 1]} : vector<16x128xf32> to vector<16x127xf32>
    %228 = tpu.concatenate %227, %179 in 1 : vector<16x127xf32>, vector<16x1xf32> -> vector<16x128xf32>
    %cst_53 = arith.constant 0.257145226 : f32
    %229 = vector.broadcast %cst_53 : f32 to vector<16x128xf32>
    %230 = arith.mulf %229, %228 : vector<16x128xf32>
    %231 = arith.addf %226, %230 : vector<16x128xf32>
    %232 = vector.shape_cast %179 : vector<16x1xf32> to vector<16x1xf32>
    %233 = vector.broadcast %232 : vector<16x1xf32> to vector<16x2xf32>
    %234 = vector.extract_strided_slice %173 {offsets = [0, 2], sizes = [16, 126], strides = [1, 1]} : vector<16x128xf32> to vector<16x126xf32>
    %235 = tpu.concatenate %234, %233 in 1 : vector<16x126xf32>, vector<16x2xf32> -> vector<16x128xf32>
    %cst_54 = arith.constant -0.0510869287 : f32
    %236 = vector.broadcast %cst_54 : f32 to vector<16x128xf32>
    %237 = arith.mulf %236, %235 : vector<16x128xf32>
    %238 = arith.addf %231, %237 : vector<16x128xf32>
    %239 = vector.shape_cast %179 : vector<16x1xf32> to vector<16x1xf32>
    %240 = vector.broadcast %239 : vector<16x1xf32> to vector<16x3xf32>
    %241 = vector.extract_strided_slice %173 {offsets = [0, 3], sizes = [16, 125], strides = [1, 1]} : vector<16x128xf32> to vector<16x125xf32>
    %242 = tpu.concatenate %241, %240 in 1 : vector<16x125xf32>, vector<16x3xf32> -> vector<16x128xf32>
    %cst_55 = arith.constant 0.00405793311 : f32
    %243 = vector.broadcast %cst_55 : f32 to vector<16x128xf32>
    %244 = arith.mulf %243, %242 : vector<16x128xf32>
    %245 = arith.addf %238, %244 : vector<16x128xf32>
    %246 = vector.broadcast %175 : vector<16x1xf32> to vector<16x128xf32>
    %247 = arith.mulf %212, %246 : vector<16x128xf32>
    %248 = math.sin %247 : vector<16x128xf32>
    %249 = arith.mulf %248, %248 : vector<16x128xf32>
    %250 = vector.broadcast %177 : vector<16x1xf32> to vector<16x128xf32>
    %251 = arith.mulf %250, %249 : vector<16x128xf32>
    %252 = arith.addf %212, %251 : vector<16x128xf32>
    %253 = vector.broadcast %175 : vector<16x1xf32> to vector<16x128xf32>
    %254 = arith.mulf %245, %253 : vector<16x128xf32>
    %255 = math.sin %254 : vector<16x128xf32>
    %256 = arith.mulf %255, %255 : vector<16x128xf32>
    %257 = vector.broadcast %177 : vector<16x1xf32> to vector<16x128xf32>
    %258 = arith.mulf %257, %256 : vector<16x128xf32>
    %259 = arith.addf %245, %258 : vector<16x128xf32>
    %260 = vector.extract_strided_slice %252 {offsets = [0, 0], sizes = [16, 1], strides = [1, 1]} : vector<16x128xf32> to vector<16x1xf32>
    %261 = vector.extract_strided_slice %259 {offsets = [0, 127], sizes = [16, 1], strides = [1, 1]} : vector<16x128xf32> to vector<16x1xf32>
    %262 = vector.shape_cast %260 : vector<16x1xf32> to vector<16x1xf32>
    %263 = vector.broadcast %262 : vector<16x1xf32> to vector<16x2xf32>
    %264 = vector.extract_strided_slice %252 {offsets = [0, 0], sizes = [16, 126], strides = [1, 1]} : vector<16x128xf32> to vector<16x126xf32>
    %265 = tpu.concatenate %263, %264 in 1 : vector<16x2xf32>, vector<16x126xf32> -> vector<16x128xf32>
    %cst_56 = arith.constant 0.00938946381 : f32
    %266 = vector.broadcast %cst_56 : f32 to vector<16x128xf32>
    %267 = arith.mulf %266, %265 : vector<16x128xf32>
    %268 = vector.extract_strided_slice %252 {offsets = [0, 0], sizes = [16, 127], strides = [1, 1]} : vector<16x128xf32> to vector<16x127xf32>
    %269 = tpu.concatenate %260, %268 in 1 : vector<16x1xf32>, vector<16x127xf32> -> vector<16x128xf32>
    %cst_57 = arith.constant -0.0576573759 : f32
    %270 = vector.broadcast %cst_57 : f32 to vector<16x128xf32>
    %271 = arith.mulf %270, %269 : vector<16x128xf32>
    %272 = arith.addf %267, %271 : vector<16x128xf32>
    %cst_58 = arith.constant 0.443209797 : f32
    %273 = vector.broadcast %cst_58 : f32 to vector<16x128xf32>
    %274 = arith.mulf %273, %252 : vector<16x128xf32>
    %275 = arith.addf %272, %274 : vector<16x128xf32>
    %276 = vector.extract_strided_slice %252 {offsets = [0, 1], sizes = [16, 127], strides = [1, 1]} : vector<16x128xf32> to vector<16x127xf32>
    %277 = tpu.concatenate %276, %261 in 1 : vector<16x127xf32>, vector<16x1xf32> -> vector<16x128xf32>
    %cst_59 = arith.constant 0.128572613 : f32
    %278 = vector.broadcast %cst_59 : f32 to vector<16x128xf32>
    %279 = arith.mulf %278, %277 : vector<16x128xf32>
    %280 = arith.addf %275, %279 : vector<16x128xf32>
    %281 = vector.shape_cast %261 : vector<16x1xf32> to vector<16x1xf32>
    %282 = vector.broadcast %281 : vector<16x1xf32> to vector<16x2xf32>
    %283 = vector.extract_strided_slice %252 {offsets = [0, 2], sizes = [16, 126], strides = [1, 1]} : vector<16x128xf32> to vector<16x126xf32>
    %284 = tpu.concatenate %283, %282 in 1 : vector<16x126xf32>, vector<16x2xf32> -> vector<16x128xf32>
    %cst_60 = arith.constant -0.0255434643 : f32
    %285 = vector.broadcast %cst_60 : f32 to vector<16x128xf32>
    %286 = arith.mulf %285, %284 : vector<16x128xf32>
    %287 = arith.addf %280, %286 : vector<16x128xf32>
    %288 = vector.shape_cast %261 : vector<16x1xf32> to vector<16x1xf32>
    %289 = vector.broadcast %288 : vector<16x1xf32> to vector<16x3xf32>
    %290 = vector.extract_strided_slice %252 {offsets = [0, 3], sizes = [16, 125], strides = [1, 1]} : vector<16x128xf32> to vector<16x125xf32>
    %291 = tpu.concatenate %290, %289 in 1 : vector<16x125xf32>, vector<16x3xf32> -> vector<16x128xf32>
    %cst_61 = arith.constant 0.00202896656 : f32
    %292 = vector.broadcast %cst_61 : f32 to vector<16x128xf32>
    %293 = arith.mulf %292, %291 : vector<16x128xf32>
    %294 = arith.addf %287, %293 : vector<16x128xf32>
    %295 = vector.shape_cast %260 : vector<16x1xf32> to vector<16x1xf32>
    %296 = vector.broadcast %295 : vector<16x1xf32> to vector<16x3xf32>
    %297 = vector.extract_strided_slice %259 {offsets = [0, 0], sizes = [16, 125], strides = [1, 1]} : vector<16x128xf32> to vector<16x125xf32>
    %298 = tpu.concatenate %296, %297 in 1 : vector<16x3xf32>, vector<16x125xf32> -> vector<16x128xf32>
    %cst_62 = arith.constant 0.00202896656 : f32
    %299 = vector.broadcast %cst_62 : f32 to vector<16x128xf32>
    %300 = arith.mulf %299, %298 : vector<16x128xf32>
    %301 = vector.shape_cast %260 : vector<16x1xf32> to vector<16x1xf32>
    %302 = vector.broadcast %301 : vector<16x1xf32> to vector<16x2xf32>
    %303 = vector.extract_strided_slice %259 {offsets = [0, 0], sizes = [16, 126], strides = [1, 1]} : vector<16x128xf32> to vector<16x126xf32>
    %304 = tpu.concatenate %302, %303 in 1 : vector<16x2xf32>, vector<16x126xf32> -> vector<16x128xf32>
    %cst_63 = arith.constant -0.0255434643 : f32
    %305 = vector.broadcast %cst_63 : f32 to vector<16x128xf32>
    %306 = arith.mulf %305, %304 : vector<16x128xf32>
    %307 = arith.addf %300, %306 : vector<16x128xf32>
    %308 = vector.extract_strided_slice %259 {offsets = [0, 0], sizes = [16, 127], strides = [1, 1]} : vector<16x128xf32> to vector<16x127xf32>
    %309 = tpu.concatenate %260, %308 in 1 : vector<16x1xf32>, vector<16x127xf32> -> vector<16x128xf32>
    %cst_64 = arith.constant 0.128572613 : f32
    %310 = vector.broadcast %cst_64 : f32 to vector<16x128xf32>
    %311 = arith.mulf %310, %309 : vector<16x128xf32>
    %312 = arith.addf %307, %311 : vector<16x128xf32>
    %cst_65 = arith.constant 0.443209797 : f32
    %313 = vector.broadcast %cst_65 : f32 to vector<16x128xf32>
    %314 = arith.mulf %313, %259 : vector<16x128xf32>
    %315 = arith.addf %312, %314 : vector<16x128xf32>
    %316 = vector.extract_strided_slice %259 {offsets = [0, 1], sizes = [16, 127], strides = [1, 1]} : vector<16x128xf32> to vector<16x127xf32>
    %317 = tpu.concatenate %316, %261 in 1 : vector<16x127xf32>, vector<16x1xf32> -> vector<16x128xf32>
    %cst_66 = arith.constant -0.0576573759 : f32
    %318 = vector.broadcast %cst_66 : f32 to vector<16x128xf32>
    %319 = arith.mulf %318, %317 : vector<16x128xf32>
    %320 = arith.addf %315, %319 : vector<16x128xf32>
    %321 = vector.shape_cast %261 : vector<16x1xf32> to vector<16x1xf32>
    %322 = vector.broadcast %321 : vector<16x1xf32> to vector<16x2xf32>
    %323 = vector.extract_strided_slice %259 {offsets = [0, 2], sizes = [16, 126], strides = [1, 1]} : vector<16x128xf32> to vector<16x126xf32>
    %324 = tpu.concatenate %323, %322 in 1 : vector<16x126xf32>, vector<16x2xf32> -> vector<16x128xf32>
    %cst_67 = arith.constant 0.00938946381 : f32
    %325 = vector.broadcast %cst_67 : f32 to vector<16x128xf32>
    %326 = arith.mulf %325, %324 : vector<16x128xf32>
    %327 = arith.addf %320, %326 : vector<16x128xf32>
    %328 = arith.addf %294, %327 : vector<16x128xf32>
    %329 = arith.truncf %328 : vector<16x128xf32> to vector<16x128xbf16>
    %330 = vector.shape_cast %2 : vector<16x1xf32> to vector<16x1xf32>
    %331 = vector.broadcast %330 : vector<16x1xf32> to vector<16x3xf32>
    %332 = arith.truncf %331 : vector<16x3xf32> to vector<16x3xbf16>
    %333 = vector.extract_strided_slice %329 {offsets = [0, 0], sizes = [16, 125], strides = [1, 1]} : vector<16x128xbf16> to vector<16x125xbf16>
    %334 = tpu.concatenate %332, %333 in 1 : vector<16x3xbf16>, vector<16x125xbf16> -> vector<16x128xbf16>
    %335 = vector.shape_cast %2 : vector<16x1xf32> to vector<16x1xf32>
    %336 = vector.broadcast %335 : vector<16x1xf32> to vector<16x3xf32>
    %337 = arith.truncf %336 : vector<16x3xf32> to vector<16x3xbf16>
    %338 = vector.extract_strided_slice %329 {offsets = [0, 3], sizes = [16, 125], strides = [1, 1]} : vector<16x128xbf16> to vector<16x125xbf16>
    %339 = tpu.concatenate %338, %337 in 1 : vector<16x125xbf16>, vector<16x3xbf16> -> vector<16x128xbf16>
    %340 = tpu.concatenate %334, %329, %339 in 0 : vector<16x128xbf16>, vector<16x128xbf16>, vector<16x128xbf16> -> vector<48x128xbf16>
    %c1_68 = arith.constant 1 : index
    %c0_69 = arith.constant 0 : index
    %c0_70 = arith.constant 0 : index
    %341 = vector.load %arg2[%c1_68, %c0_69, %c0_70] : memref<3x16x48xbf16, #tpu.memory_space<vmem>>, vector<1x16x48xbf16>
    %342 = vector.shape_cast %341 : vector<1x16x48xbf16> to vector<16x48xbf16>
    %cst_71 = arith.constant dense<0.000000e+00> : vector<16x128xf32>
    %343 = tpu.matmul %342, %340, %cst_71 {dimension_numbers = #tpu.dot_dimension_numbers<[1], [0], [0], [1], [0, 0, 1, 1], [], []>} : vector<16x48xbf16>, vector<48x128xbf16>, vector<16x128xf32> -> vector<16x128xf32>
    %344 = arith.addf %173, %343 : vector<16x128xf32>
    %c1_72 = arith.constant 1 : index
    %c0_73 = arith.constant 0 : index
    %c0_74 = arith.constant 0 : index
    %345 = vector.load %arg3[%c1_72, %c0_73, %c0_74] : memref<3x16x1xf32, #tpu.memory_space<vmem>>, vector<1x16x1xf32>
    %346 = vector.shape_cast %345 : vector<1x16x1xf32> to vector<16x1xf32>
    %347 = vector.broadcast %346 : vector<16x1xf32> to vector<16x128xf32>
    %348 = arith.addf %344, %347 : vector<16x128xf32>
    %c2 = arith.constant 2 : index
    %c0_75 = arith.constant 0 : index
    %c0_76 = arith.constant 0 : index
    %349 = vector.load %arg4[%c2, %c0_75, %c0_76] : memref<3x16x1xf32, #tpu.memory_space<vmem>>, vector<1x16x1xf32>
    %350 = vector.shape_cast %349 : vector<1x16x1xf32> to vector<16x1xf32>
    %c2_77 = arith.constant 2 : index
    %c0_78 = arith.constant 0 : index
    %c0_79 = arith.constant 0 : index
    %351 = vector.load %arg5[%c2_77, %c0_78, %c0_79] : memref<3x16x1xf32, #tpu.memory_space<vmem>>, vector<1x16x1xf32>
    %352 = vector.shape_cast %351 : vector<1x16x1xf32> to vector<16x1xf32>
    %353 = vector.extract_strided_slice %348 {offsets = [0, 0], sizes = [16, 1], strides = [1, 1]} : vector<16x128xf32> to vector<16x1xf32>
    %354 = vector.extract_strided_slice %348 {offsets = [0, 127], sizes = [16, 1], strides = [1, 1]} : vector<16x128xf32> to vector<16x1xf32>
    %355 = vector.shape_cast %353 : vector<16x1xf32> to vector<16x1xf32>
    %356 = vector.broadcast %355 : vector<16x1xf32> to vector<16x3xf32>
    %357 = vector.extract_strided_slice %348 {offsets = [0, 0], sizes = [16, 125], strides = [1, 1]} : vector<16x128xf32> to vector<16x125xf32>
    %358 = tpu.concatenate %356, %357 in 1 : vector<16x3xf32>, vector<16x125xf32> -> vector<16x128xf32>
    %cst_80 = arith.constant 0.00405793311 : f32
    %359 = vector.broadcast %cst_80 : f32 to vector<16x128xf32>
    %360 = arith.mulf %359, %358 : vector<16x128xf32>
    %361 = vector.shape_cast %353 : vector<16x1xf32> to vector<16x1xf32>
    %362 = vector.broadcast %361 : vector<16x1xf32> to vector<16x2xf32>
    %363 = vector.extract_strided_slice %348 {offsets = [0, 0], sizes = [16, 126], strides = [1, 1]} : vector<16x128xf32> to vector<16x126xf32>
    %364 = tpu.concatenate %362, %363 in 1 : vector<16x2xf32>, vector<16x126xf32> -> vector<16x128xf32>
    %cst_81 = arith.constant -0.0510869287 : f32
    %365 = vector.broadcast %cst_81 : f32 to vector<16x128xf32>
    %366 = arith.mulf %365, %364 : vector<16x128xf32>
    %367 = arith.addf %360, %366 : vector<16x128xf32>
    %368 = vector.extract_strided_slice %348 {offsets = [0, 0], sizes = [16, 127], strides = [1, 1]} : vector<16x128xf32> to vector<16x127xf32>
    %369 = tpu.concatenate %353, %368 in 1 : vector<16x1xf32>, vector<16x127xf32> -> vector<16x128xf32>
    %cst_82 = arith.constant 0.257145226 : f32
    %370 = vector.broadcast %cst_82 : f32 to vector<16x128xf32>
    %371 = arith.mulf %370, %369 : vector<16x128xf32>
    %372 = arith.addf %367, %371 : vector<16x128xf32>
    %cst_83 = arith.constant 0.886419594 : f32
    %373 = vector.broadcast %cst_83 : f32 to vector<16x128xf32>
    %374 = arith.mulf %373, %348 : vector<16x128xf32>
    %375 = arith.addf %372, %374 : vector<16x128xf32>
    %376 = vector.extract_strided_slice %348 {offsets = [0, 1], sizes = [16, 127], strides = [1, 1]} : vector<16x128xf32> to vector<16x127xf32>
    %377 = tpu.concatenate %376, %354 in 1 : vector<16x127xf32>, vector<16x1xf32> -> vector<16x128xf32>
    %cst_84 = arith.constant -0.115314752 : f32
    %378 = vector.broadcast %cst_84 : f32 to vector<16x128xf32>
    %379 = arith.mulf %378, %377 : vector<16x128xf32>
    %380 = arith.addf %375, %379 : vector<16x128xf32>
    %381 = vector.shape_cast %354 : vector<16x1xf32> to vector<16x1xf32>
    %382 = vector.broadcast %381 : vector<16x1xf32> to vector<16x2xf32>
    %383 = vector.extract_strided_slice %348 {offsets = [0, 2], sizes = [16, 126], strides = [1, 1]} : vector<16x128xf32> to vector<16x126xf32>
    %384 = tpu.concatenate %383, %382 in 1 : vector<16x126xf32>, vector<16x2xf32> -> vector<16x128xf32>
    %cst_85 = arith.constant 0.0187789276 : f32
    %385 = vector.broadcast %cst_85 : f32 to vector<16x128xf32>
    %386 = arith.mulf %385, %384 : vector<16x128xf32>
    %387 = arith.addf %380, %386 : vector<16x128xf32>
    %388 = vector.shape_cast %353 : vector<16x1xf32> to vector<16x1xf32>
    %389 = vector.broadcast %388 : vector<16x1xf32> to vector<16x2xf32>
    %390 = vector.extract_strided_slice %348 {offsets = [0, 0], sizes = [16, 126], strides = [1, 1]} : vector<16x128xf32> to vector<16x126xf32>
    %391 = tpu.concatenate %389, %390 in 1 : vector<16x2xf32>, vector<16x126xf32> -> vector<16x128xf32>
    %cst_86 = arith.constant 0.0187789276 : f32
    %392 = vector.broadcast %cst_86 : f32 to vector<16x128xf32>
    %393 = arith.mulf %392, %391 : vector<16x128xf32>
    %394 = vector.extract_strided_slice %348 {offsets = [0, 0], sizes = [16, 127], strides = [1, 1]} : vector<16x128xf32> to vector<16x127xf32>
    %395 = tpu.concatenate %353, %394 in 1 : vector<16x1xf32>, vector<16x127xf32> -> vector<16x128xf32>
    %cst_87 = arith.constant -0.115314752 : f32
    %396 = vector.broadcast %cst_87 : f32 to vector<16x128xf32>
    %397 = arith.mulf %396, %395 : vector<16x128xf32>
    %398 = arith.addf %393, %397 : vector<16x128xf32>
    %cst_88 = arith.constant 0.886419594 : f32
    %399 = vector.broadcast %cst_88 : f32 to vector<16x128xf32>
    %400 = arith.mulf %399, %348 : vector<16x128xf32>
    %401 = arith.addf %398, %400 : vector<16x128xf32>
    %402 = vector.extract_strided_slice %348 {offsets = [0, 1], sizes = [16, 127], strides = [1, 1]} : vector<16x128xf32> to vector<16x127xf32>
    %403 = tpu.concatenate %402, %354 in 1 : vector<16x127xf32>, vector<16x1xf32> -> vector<16x128xf32>
    %cst_89 = arith.constant 0.257145226 : f32
    %404 = vector.broadcast %cst_89 : f32 to vector<16x128xf32>
    %405 = arith.mulf %404, %403 : vector<16x128xf32>
    %406 = arith.addf %401, %405 : vector<16x128xf32>
    %407 = vector.shape_cast %354 : vector<16x1xf32> to vector<16x1xf32>
    %408 = vector.broadcast %407 : vector<16x1xf32> to vector<16x2xf32>
    %409 = vector.extract_strided_slice %348 {offsets = [0, 2], sizes = [16, 126], strides = [1, 1]} : vector<16x128xf32> to vector<16x126xf32>
    %410 = tpu.concatenate %409, %408 in 1 : vector<16x126xf32>, vector<16x2xf32> -> vector<16x128xf32>
    %cst_90 = arith.constant -0.0510869287 : f32
    %411 = vector.broadcast %cst_90 : f32 to vector<16x128xf32>
    %412 = arith.mulf %411, %410 : vector<16x128xf32>
    %413 = arith.addf %406, %412 : vector<16x128xf32>
    %414 = vector.shape_cast %354 : vector<16x1xf32> to vector<16x1xf32>
    %415 = vector.broadcast %414 : vector<16x1xf32> to vector<16x3xf32>
    %416 = vector.extract_strided_slice %348 {offsets = [0, 3], sizes = [16, 125], strides = [1, 1]} : vector<16x128xf32> to vector<16x125xf32>
    %417 = tpu.concatenate %416, %415 in 1 : vector<16x125xf32>, vector<16x3xf32> -> vector<16x128xf32>
    %cst_91 = arith.constant 0.00405793311 : f32
    %418 = vector.broadcast %cst_91 : f32 to vector<16x128xf32>
    %419 = arith.mulf %418, %417 : vector<16x128xf32>
    %420 = arith.addf %413, %419 : vector<16x128xf32>
    %421 = vector.broadcast %350 : vector<16x1xf32> to vector<16x128xf32>
    %422 = arith.mulf %387, %421 : vector<16x128xf32>
    %423 = math.sin %422 : vector<16x128xf32>
    %424 = arith.mulf %423, %423 : vector<16x128xf32>
    %425 = vector.broadcast %352 : vector<16x1xf32> to vector<16x128xf32>
    %426 = arith.mulf %425, %424 : vector<16x128xf32>
    %427 = arith.addf %387, %426 : vector<16x128xf32>
    %428 = vector.broadcast %350 : vector<16x1xf32> to vector<16x128xf32>
    %429 = arith.mulf %420, %428 : vector<16x128xf32>
    %430 = math.sin %429 : vector<16x128xf32>
    %431 = arith.mulf %430, %430 : vector<16x128xf32>
    %432 = vector.broadcast %352 : vector<16x1xf32> to vector<16x128xf32>
    %433 = arith.mulf %432, %431 : vector<16x128xf32>
    %434 = arith.addf %420, %433 : vector<16x128xf32>
    %435 = vector.extract_strided_slice %427 {offsets = [0, 0], sizes = [16, 1], strides = [1, 1]} : vector<16x128xf32> to vector<16x1xf32>
    %436 = vector.extract_strided_slice %434 {offsets = [0, 127], sizes = [16, 1], strides = [1, 1]} : vector<16x128xf32> to vector<16x1xf32>
    %437 = vector.shape_cast %435 : vector<16x1xf32> to vector<16x1xf32>
    %438 = vector.broadcast %437 : vector<16x1xf32> to vector<16x2xf32>
    %439 = vector.extract_strided_slice %427 {offsets = [0, 0], sizes = [16, 126], strides = [1, 1]} : vector<16x128xf32> to vector<16x126xf32>
    %440 = tpu.concatenate %438, %439 in 1 : vector<16x2xf32>, vector<16x126xf32> -> vector<16x128xf32>
    %cst_92 = arith.constant 0.00938946381 : f32
    %441 = vector.broadcast %cst_92 : f32 to vector<16x128xf32>
    %442 = arith.mulf %441, %440 : vector<16x128xf32>
    %443 = vector.extract_strided_slice %427 {offsets = [0, 0], sizes = [16, 127], strides = [1, 1]} : vector<16x128xf32> to vector<16x127xf32>
    %444 = tpu.concatenate %435, %443 in 1 : vector<16x1xf32>, vector<16x127xf32> -> vector<16x128xf32>
    %cst_93 = arith.constant -0.0576573759 : f32
    %445 = vector.broadcast %cst_93 : f32 to vector<16x128xf32>
    %446 = arith.mulf %445, %444 : vector<16x128xf32>
    %447 = arith.addf %442, %446 : vector<16x128xf32>
    %cst_94 = arith.constant 0.443209797 : f32
    %448 = vector.broadcast %cst_94 : f32 to vector<16x128xf32>
    %449 = arith.mulf %448, %427 : vector<16x128xf32>
    %450 = arith.addf %447, %449 : vector<16x128xf32>
    %451 = vector.extract_strided_slice %427 {offsets = [0, 1], sizes = [16, 127], strides = [1, 1]} : vector<16x128xf32> to vector<16x127xf32>
    %452 = tpu.concatenate %451, %436 in 1 : vector<16x127xf32>, vector<16x1xf32> -> vector<16x128xf32>
    %cst_95 = arith.constant 0.128572613 : f32
    %453 = vector.broadcast %cst_95 : f32 to vector<16x128xf32>
    %454 = arith.mulf %453, %452 : vector<16x128xf32>
    %455 = arith.addf %450, %454 : vector<16x128xf32>
    %456 = vector.shape_cast %436 : vector<16x1xf32> to vector<16x1xf32>
    %457 = vector.broadcast %456 : vector<16x1xf32> to vector<16x2xf32>
    %458 = vector.extract_strided_slice %427 {offsets = [0, 2], sizes = [16, 126], strides = [1, 1]} : vector<16x128xf32> to vector<16x126xf32>
    %459 = tpu.concatenate %458, %457 in 1 : vector<16x126xf32>, vector<16x2xf32> -> vector<16x128xf32>
    %cst_96 = arith.constant -0.0255434643 : f32
    %460 = vector.broadcast %cst_96 : f32 to vector<16x128xf32>
    %461 = arith.mulf %460, %459 : vector<16x128xf32>
    %462 = arith.addf %455, %461 : vector<16x128xf32>
    %463 = vector.shape_cast %436 : vector<16x1xf32> to vector<16x1xf32>
    %464 = vector.broadcast %463 : vector<16x1xf32> to vector<16x3xf32>
    %465 = vector.extract_strided_slice %427 {offsets = [0, 3], sizes = [16, 125], strides = [1, 1]} : vector<16x128xf32> to vector<16x125xf32>
    %466 = tpu.concatenate %465, %464 in 1 : vector<16x125xf32>, vector<16x3xf32> -> vector<16x128xf32>
    %cst_97 = arith.constant 0.00202896656 : f32
    %467 = vector.broadcast %cst_97 : f32 to vector<16x128xf32>
    %468 = arith.mulf %467, %466 : vector<16x128xf32>
    %469 = arith.addf %462, %468 : vector<16x128xf32>
    %470 = vector.shape_cast %435 : vector<16x1xf32> to vector<16x1xf32>
    %471 = vector.broadcast %470 : vector<16x1xf32> to vector<16x3xf32>
    %472 = vector.extract_strided_slice %434 {offsets = [0, 0], sizes = [16, 125], strides = [1, 1]} : vector<16x128xf32> to vector<16x125xf32>
    %473 = tpu.concatenate %471, %472 in 1 : vector<16x3xf32>, vector<16x125xf32> -> vector<16x128xf32>
    %cst_98 = arith.constant 0.00202896656 : f32
    %474 = vector.broadcast %cst_98 : f32 to vector<16x128xf32>
    %475 = arith.mulf %474, %473 : vector<16x128xf32>
    %476 = vector.shape_cast %435 : vector<16x1xf32> to vector<16x1xf32>
    %477 = vector.broadcast %476 : vector<16x1xf32> to vector<16x2xf32>
    %478 = vector.extract_strided_slice %434 {offsets = [0, 0], sizes = [16, 126], strides = [1, 1]} : vector<16x128xf32> to vector<16x126xf32>
    %479 = tpu.concatenate %477, %478 in 1 : vector<16x2xf32>, vector<16x126xf32> -> vector<16x128xf32>
    %cst_99 = arith.constant -0.0255434643 : f32
    %480 = vector.broadcast %cst_99 : f32 to vector<16x128xf32>
    %481 = arith.mulf %480, %479 : vector<16x128xf32>
    %482 = arith.addf %475, %481 : vector<16x128xf32>
    %483 = vector.extract_strided_slice %434 {offsets = [0, 0], sizes = [16, 127], strides = [1, 1]} : vector<16x128xf32> to vector<16x127xf32>
    %484 = tpu.concatenate %435, %483 in 1 : vector<16x1xf32>, vector<16x127xf32> -> vector<16x128xf32>
    %cst_100 = arith.constant 0.128572613 : f32
    %485 = vector.broadcast %cst_100 : f32 to vector<16x128xf32>
    %486 = arith.mulf %485, %484 : vector<16x128xf32>
    %487 = arith.addf %482, %486 : vector<16x128xf32>
    %cst_101 = arith.constant 0.443209797 : f32
    %488 = vector.broadcast %cst_101 : f32 to vector<16x128xf32>
    %489 = arith.mulf %488, %434 : vector<16x128xf32>
    %490 = arith.addf %487, %489 : vector<16x128xf32>
    %491 = vector.extract_strided_slice %434 {offsets = [0, 1], sizes = [16, 127], strides = [1, 1]} : vector<16x128xf32> to vector<16x127xf32>
    %492 = tpu.concatenate %491, %436 in 1 : vector<16x127xf32>, vector<16x1xf32> -> vector<16x128xf32>
    %cst_102 = arith.constant -0.0576573759 : f32
    %493 = vector.broadcast %cst_102 : f32 to vector<16x128xf32>
    %494 = arith.mulf %493, %492 : vector<16x128xf32>
    %495 = arith.addf %490, %494 : vector<16x128xf32>
    %496 = vector.shape_cast %436 : vector<16x1xf32> to vector<16x1xf32>
    %497 = vector.broadcast %496 : vector<16x1xf32> to vector<16x2xf32>
    %498 = vector.extract_strided_slice %434 {offsets = [0, 2], sizes = [16, 126], strides = [1, 1]} : vector<16x128xf32> to vector<16x126xf32>
    %499 = tpu.concatenate %498, %497 in 1 : vector<16x126xf32>, vector<16x2xf32> -> vector<16x128xf32>
    %cst_103 = arith.constant 0.00938946381 : f32
    %500 = vector.broadcast %cst_103 : f32 to vector<16x128xf32>
    %501 = arith.mulf %500, %499 : vector<16x128xf32>
    %502 = arith.addf %495, %501 : vector<16x128xf32>
    %503 = arith.addf %469, %502 : vector<16x128xf32>
    %504 = arith.truncf %503 : vector<16x128xf32> to vector<16x128xbf16>
    %505 = vector.shape_cast %2 : vector<16x1xf32> to vector<16x1xf32>
    %506 = vector.broadcast %505 : vector<16x1xf32> to vector<16x5xf32>
    %507 = arith.truncf %506 : vector<16x5xf32> to vector<16x5xbf16>
    %508 = vector.extract_strided_slice %504 {offsets = [0, 0], sizes = [16, 123], strides = [1, 1]} : vector<16x128xbf16> to vector<16x123xbf16>
    %509 = tpu.concatenate %507, %508 in 1 : vector<16x5xbf16>, vector<16x123xbf16> -> vector<16x128xbf16>
    %510 = vector.shape_cast %2 : vector<16x1xf32> to vector<16x1xf32>
    %511 = vector.broadcast %510 : vector<16x1xf32> to vector<16x5xf32>
    %512 = arith.truncf %511 : vector<16x5xf32> to vector<16x5xbf16>
    %513 = vector.extract_strided_slice %504 {offsets = [0, 5], sizes = [16, 123], strides = [1, 1]} : vector<16x128xbf16> to vector<16x123xbf16>
    %514 = tpu.concatenate %513, %512 in 1 : vector<16x123xbf16>, vector<16x5xbf16> -> vector<16x128xbf16>
    %515 = tpu.concatenate %509, %504, %514 in 0 : vector<16x128xbf16>, vector<16x128xbf16>, vector<16x128xbf16> -> vector<48x128xbf16>
    %c2_104 = arith.constant 2 : index
    %c0_105 = arith.constant 0 : index
    %c0_106 = arith.constant 0 : index
    %516 = vector.load %arg2[%c2_104, %c0_105, %c0_106] : memref<3x16x48xbf16, #tpu.memory_space<vmem>>, vector<1x16x48xbf16>
    %517 = vector.shape_cast %516 : vector<1x16x48xbf16> to vector<16x48xbf16>
    %cst_107 = arith.constant dense<0.000000e+00> : vector<16x128xf32>
    %518 = tpu.matmul %517, %515, %cst_107 {dimension_numbers = #tpu.dot_dimension_numbers<[1], [0], [0], [1], [0, 0, 1, 1], [], []>} : vector<16x48xbf16>, vector<48x128xbf16>, vector<16x128xf32> -> vector<16x128xf32>
    %519 = arith.addf %348, %518 : vector<16x128xf32>
    %c2_108 = arith.constant 2 : index
    %c0_109 = arith.constant 0 : index
    %c0_110 = arith.constant 0 : index
    %520 = vector.load %arg3[%c2_108, %c0_109, %c0_110] : memref<3x16x1xf32, #tpu.memory_space<vmem>>, vector<1x16x1xf32>
    %521 = vector.shape_cast %520 : vector<1x16x1xf32> to vector<16x1xf32>
    %522 = vector.broadcast %521 : vector<16x1xf32> to vector<16x128xf32>
    %523 = arith.addf %519, %522 : vector<16x128xf32>
    %c0_111 = arith.constant 0 : index
    %c0_112 = arith.constant 0 : index
    %c0_113 = arith.constant 0 : index
    %524 = vector.load %arg6[%c0_111, %c0_112, %c0_113] : memref<1x16x128xf32, #tpu.memory_space<vmem>>, vector<1x16x128xf32>
    %525 = vector.shape_cast %524 : vector<1x16x128xf32> to vector<16x128xf32>
    %526 = vector.shape_cast %523 : vector<16x128xf32> to vector<1x16x128xf32>
    tpu.vector_store %arg6[%c0_111, %c0_112, %c0_113], %526 {strides = array<i32>} : memref<1x16x128xf32, #tpu.memory_space<vmem>>, vector<1x16x128xf32>,
    return
  }
  func.func @transform_0(%arg0: i32) -> (i32, i32, i32) {
    %c0_i32 = arith.constant 0 : i32
    %c0_i32_0 = arith.constant 0 : i32
    %c0_i32_1 = arith.constant 0 : i32
    return %arg0, %c0_i32, %c0_i32_0 : i32, i32, i32
  }
  func.func @transform_1(%arg0: i32) -> (i32, i32, i32) {
    %c0_i32 = arith.constant 0 : i32
    %c0_i32_0 = arith.constant 0 : i32
    %c0_i32_1 = arith.constant 0 : i32
    %c0_i32_2 = arith.constant 0 : i32
    return %c0_i32, %c0_i32_0, %c0_i32_1 : i32, i32, i32
  }
  func.func @transform_2(%arg0: i32) -> (i32, i32, i32) {
    %c0_i32 = arith.constant 0 : i32
    %c0_i32_0 = arith.constant 0 : i32
    %c0_i32_1 = arith.constant 0 : i32
    %c0_i32_2 = arith.constant 0 : i32
    return %c0_i32, %c0_i32_0, %c0_i32_1 : i32, i32, i32
  }
  func.func @transform_3(%arg0: i32) -> (i32, i32, i32) {
    %c0_i32 = arith.constant 0 : i32
    %c0_i32_0 = arith.constant 0 : i32
    %c0_i32_1 = arith.constant 0 : i32
    %c0_i32_2 = arith.constant 0 : i32
    return %c0_i32, %c0_i32_0, %c0_i32_1 : i32, i32, i32
  }
  func.func @transform_4(%arg0: i32) -> (i32, i32, i32) {
    %c0_i32 = arith.constant 0 : i32
    %c0_i32_0 = arith.constant 0 : i32
    %c0_i32_1 = arith.constant 0 : i32
    %c0_i32_2 = arith.constant 0 : i32
    return %c0_i32, %c0_i32_0, %c0_i32_1 : i32, i32, i32
  }
  func.func @transform_5(%arg0: i32) -> (i32, i32, i32) {
    %c0_i32 = arith.constant 0 : i32
    %c0_i32_0 = arith.constant 0 : i32
    %c0_i32_1 = arith.constant 0 : i32
    return %arg0, %c0_i32, %c0_i32_0 : i32, i32, i32
  }
}

</mosaic_0001>

<bundles_post_ra>
// kernel: tpu_custom_call.1
= control target key start
LH: loop header
LB: loop body
LE: loop exit
PB: predicated region body
PF: predicated region fallthrough
CT: control target
= control target key end

     0   :  { %10 = vsyncpa [#allocation3], 0  ;;  %s5805_s0 = inlined_call_operand.vmem [shape: f32[2,16,128], index: 0, kind: input, shape index: {}]   ;;  %s5806_s1 = inlined_call_operand.vmem [shape: bf16[3,16,48], index: 1, kind: input, shape index: {}]   ;;  %s5807_s2 = inlined_call_operand.vmem [shape: f32[3,16,1], index: 2, kind: input, shape index: {}]   ;;  %s5808_s3 = inlined_call_operand.vmem [shape: f32[3,16,1], index: 3, kind: input, shape index: {}]   ;;  %s5809_s4 = inlined_call_operand.vmem [shape: f32[3,16,1], index: 4, kind: input, shape index: {}]   ;;  %s5810_s5 = inlined_call_operand.hbm [shape: f32[2,16,128], index: 5, kind: output, shape index: {}]  }
   0x1   :  { %12 = vsyncpa [#allocation3 + $0x1], 0  ;;  %s3526_s18 = smov 0   ;;  %s3528_s19 = smov 0  }
   0x2   :  { %s3530_s20 = smov 0   ;;  %s3532_s21 = smov 0  }
   0x3 LB: > { %s3547_s22 = sadd.s32 4294967295, %s3476_s21   ;;  %s3240_s23 = sadd.s32 4294967294, %s3476_s21   ;;  %s3476_s21 = sphi %s3532_s21, %s6025_s21   ;;  %s3472_s20 = sphi %s3530_s20, %s6024_s20   ;;  %s3468_s19 = sphi %s3528_s19, %s6023_s19   ;;  %s3464_s18 = sphi %s3526_s18, %s6022_s18  }
   0x4   : > { %s3551_s24 = sadd.s32 1, %s3476_s21   ;;  %s135_s25 = sadd.s32 1, %s3472_s20 }
   0x5   : > { %s132_s26 = ssub.s32 %s3476_s21, %s3551_s24  ;;  %p145_p0 = scmp.ne.s32.totalorder %s3472_s20, %s3468_s19 }
   0x6   : > { %p133_p1 = scmp.eq.s32.totalorder %s132_s26, 0  ;;  %p146_p2 = scmp.eq.s32.totalorder %s3547_s22, 1 }
   0x7   : > { %p151_p3 = scmp.ne.s32.totalorder %s3468_s19, %s3464_s18  ;;  %p152_p4 = scmp.eq.s32.totalorder %s3240_s23, 1 }
   0x8   : > { %s3562_s27 = scalar_select %p133_p1, %s3472_s20, %s135_s25  }
   0x9   : > { %p3564_p5 = por %p146_p2, %p145_p0  ;;  %p3568_p6 = por %p152_p4, %p151_p3 }
   0xa   : > { %p3243_p7 = scmp.ge.s32.totalorder %s3476_s21, 1  ;;  %p190_p8 = scmp.lt.s32.totalorder %s3476_s21, 3 }
   0xc   : > { %p191_p9 = pnand %p3243_p7, %p190_p8 }
   0xe   : > { %194 = sbr.rel (%p191_p9) target bundleno = 2324 (0x914), region = 40 }
  0x13   : > { %p218_p10 = scmp.lt.s32.totalorder %s3547_s22, 1  ;;  %v5822_v0 = vmov 0   ;;  %v5811_v1 = vmov 127   ;;  %s3480_s10 = smov 3   ;;  %v226_v4 = vld [vmem:[%s5808_s3] sm:$0xff]  ;;  %v227_v5 = vld [vmem:[%s5808_s3 + $0x8] sm:$0xff] }
  0x14   : > { %3387 = vset.pattern.permute.xlu0 %v5822_v0  ;;  %3388 = vset.pattern.permute.xlu1 %v5811_v1  ;;  %s3481_s11 = smov 2   ;;  %s3482_s12 = smov 1   ;;  %v229_v6 = vld [vmem:[%s5809_s4 + $0x8] sm:$0xff]  ;;  %v228_v7 = vld [vmem:[%s5809_s4] sm:$0xff]  ;;  %vm5853_vm0 = vcmask 23552   ;;  %vm5854_vm1 = vcmask 15360  }
  0x15   : > { %s219_s30 = scalar_select %p218_p10, %s3547_s22, 1  ;;  %3389 = vset.pattern.permute.xlu2 %v5811_v1  ;;  %vm270_vm2 = vcmask 7168   ;;  %vm5852_vm3 = vcmask 1039360   ;;  %vm5851_vm4 = vcmask 1031168   ;;  %vm5834_vm5 = vcmask 1022976  }
  0x16   : > { %s3483_s13 = smov 127   ;;  %s3484_s14 = smov 126  }
  0x17   : > { %s3325_s6 = sshll.u32 %s219_s30, 4  ;;  %s3485_s15 = smov 125  }
  0x18   : > { %s3582_s9 = scalar_lea.vmem %s5805_s0, %s3325_s6  ;;  %s215_s8 = sand.u32 1, %s3468_s19  }
  0x19   : > { %v3585_v2 = vld [vmem:[%s3582_s9] sm:$0xff]  ;;  %v3593_v3 = vld [vmem:[%s3582_s9 + $0x8] sm:$0xff]  ;;  %s3244_s16 = sshll.u32 %s215_s8, 4  ;;  %s3329_s17 = sshll.u32 %s3547_s22, 4 }
  0x1a   : > { %240 = vrot.lane.b32.xlu1 %v3585_v2, %s3480_s10  ;;  %232 = vperm.xlu0 %3387, %v3585_v2   ;;  %v278_v39 = vmul.f32 0.8864196, %v3593_v3  ;;  %v277_v41 = vmul.f32 0.8864196, %v3585_v2  ;;  %s217_s23 = scalar_lea.vmem [#allocation2], %s3244_s16 }
  0x1b   : > { %251 = vrot.lane.b32.xlu2 %v3585_v2, %s3481_s11  ;;  %s3175_s30 = sshll.u32 %s217_s23, 4  ;;  %s3176_s30 = int_to_ptr.vmem [resolvable:$true] %s3175_s30 }
  0x22   : > { %242 = vrot.lane.b32.xlu1 %v3593_v3, %s3480_s10  ;;  %237 = vperm.xlu0 %3387, %v3593_v3  }
  0x23   : > { %253 = vrot.lane.b32.xlu2 %v3593_v3, %s3481_s11 }
  0x2a   : > { %266 = vrot.lane.b32.xlu1 %v3593_v3, %s3482_s12  ;;  %264 = vrot.lane.b32.xlu0 %v3585_v2, %s3482_s12 }
  0x2b   : > { %281 = vrot.lane.b32.xlu2 %v3585_v2, %s3483_s13 }
  0x32   : > { %295 = vperm.xlu1 %3388, %v3585_v2   ;;  %283 = vrot.lane.b32.xlu0 %v3593_v3, %s3483_s13 }
  0x33   : > { %299 = vperm.xlu2 %3389, %v3593_v3  }
  0x3a   : > { %304 = vrot.lane.b32.xlu1 %v3593_v3, %s3484_s14  ;;  %302 = vrot.lane.b32.xlu0 %v3585_v2, %s3484_s14 }
  0x3b   : > { %3390 = vset.pattern.permute.xlu1 %v5822_v0  ;;  %331 = vrot.lane.b32.xlu2 %v3585_v2, %s3485_s15 }
  0x3c   : > { %3391 = vset.pattern.permute.xlu2 %v5822_v0 }
  0x42   : > { %346 = vperm.xlu1 %3390, %v226_v4   ;;  %333 = vrot.lane.b32.xlu0 %v3593_v3, %s3485_s15 }
  0x43   : > { %351 = vperm.xlu2 %3391, %v227_v5  }
  0x4a   : > { %675 = vperm.xlu1 %3390, %v229_v6   ;;  %670 = vperm.xlu0 %3387, %v228_v7  }
  0x52   : > { %3392 = vset.pattern.permute.xlu1 %v5811_v1 }
  0x75   : > { %v252_v8 = vpop.permute.xlu2 %251 }
  0x7d   : > { %v254_v9 = vpop.permute.xlu2 %253 }
  0x85   : > { %v282_v12 = vpop.permute.xlu2 %281 }
  0x86   : > { %v288_v44 = vsel %vm5852_vm3, %v282_v12, %v3585_v2 }
  0x87   : > { %v290_v54 = vmul.f32 -0.11531475, %v288_v44  ;;  %v323_v57 = vmul.f32 0.25714523, %v288_v44 }
  0x8c   : > { %v241_v10 = vpop.permute.xlu1 %240  ;;  %v233_v11 = vpop.permute.xlu0 %232 }
  0x8d   : > { %v3633_v17 = vpop.permute.xlu2 %299  ;;  %v247_v20 = vsel %vm5853_vm0, %v233_v11, %v241_v10  ;;  %v258_v21 = vsel %vm5854_vm1, %v233_v11, %v252_v8 }
  0x8e   : > { %v249_v26 = vmul.f32 0.004057933, %v247_v20  ;;  %v260_v27 = vmul.f32 -0.05108693, %v258_v21  ;;  %v315_v37 = vmul.f32 0.018778928, %v258_v21 }
  0x90   : > { %v262_v34 = vadd.f32 %v260_v27, %v249_v26 }
  0x94   : > { %v243_v13 = vpop.permute.xlu1 %242  ;;  %v238_v14 = vpop.permute.xlu0 %237 }
  0x95   : > { %v248_v18 = vsel %vm5853_vm0, %v238_v14, %v243_v13  ;;  %v259_v19 = vsel %vm5854_vm1, %v238_v14, %v254_v9  ;;  %v332_v35 = vpop.permute.xlu2 %331 }
  0x96   : > { %v250_v23 = vmul.f32 0.004057933, %v248_v18  ;;  %v261_v24 = vmul.f32 -0.05108693, %v259_v19  ;;  %v316_v8 = vmul.f32 0.018778928, %v259_v19 }
  0x98   : > { %v263_v32 = vadd.f32 %v261_v24, %v250_v23 }
  0x9c   : > { %v267_v15 = vpop.permute.xlu1 %266  ;;  %v265_v16 = vpop.permute.xlu0 %264 }
  0x9d   : > { %v272_v22 = vsel %vm270_vm2, %v3593_v3, %v267_v15  ;;  %v271_v25 = vsel %vm270_vm2, %v3585_v2, %v265_v16  ;;  %v3652_v56 = vpop.permute.xlu2 %351 }
  0x9e   : > { %v274_v28 = vmul.f32 0.25714523, %v272_v22  ;;  %v273_v31 = vmul.f32 0.25714523, %v271_v25  ;;  %v317_v33 = vmul.f32 -0.11531475, %v271_v25 }
  0xa0   : > { %v276_v38 = vadd.f32 %v274_v28, %v263_v32  ;;  %v275_v40 = vadd.f32 %v273_v31, %v262_v34  ;;  %v319_v42 = vadd.f32 %v317_v33, %v315_v37 }
  0xa2   : > { %v280_v45 = vadd.f32 %v278_v39, %v276_v38  ;;  %v279_v48 = vadd.f32 %v277_v41, %v275_v40  ;;  %v321_v51 = vadd.f32 %v319_v42, %v277_v41  ;;  %v5820_v38 = vmov 2475754826  }
  0xa3   : > { %v5830_v40 = vmov 2131351028  }
  0xa4   : > { %v296_v29 = vpop.permute.xlu1 %295  ;;  %v284_v30 = vpop.permute.xlu0 %283  ;;  %v292_v60 = vadd.f32 %v290_v54, %v279_v48  ;;  %v325_v61 = vadd.f32 %v323_v57, %v321_v51 }
  0xa5   : > { %v289_v36 = vsel %vm5852_vm3, %v284_v30, %v3593_v3  ;;  %v338_v63 = vsel %vm5834_vm5, %v332_v35, %v296_v29  ;;  %v318_v3 = vmul.f32 -0.11531475, %v272_v22 }
  0xa6   : > { %v291_v43 = vmul.f32 -0.11531475, %v289_v36  ;;  %v340_v9 = vmul.f32 0.004057933, %v338_v63  ;;  %v324_v21 = vmul.f32 0.25714523, %v289_v36 }
  0xa7   : > { %v320_v12 = vadd.f32 %v318_v3, %v316_v8 }
  0xa8   : > { %v293_v52 = vadd.f32 %v291_v43, %v280_v45  ;;  %v5826_v43 = vmov 2102212464  }
  0xa9   : > { %v322_v23 = vadd.f32 %v320_v12, %v278_v39  ;;  %v5828_v12 = vmov 683565275  }
  0xab   : > { %v326_v30 = vadd.f32 %v324_v21, %v322_v23 }
  0xac   : > { %v305_v46 = vpop.permute.xlu1 %304  ;;  %v303_v47 = vpop.permute.xlu0 %302 }
  0xad   : > { %v310_v49 = vsel %vm5851_vm4, %v305_v46, %v3633_v17  ;;  %v309_v50 = vsel %vm5851_vm4, %v303_v47, %v296_v29  ;;  %v5824_v46 = vmov 920167782  }
  0xae   : > { %v312_v53 = vmul.f32 0.018778928, %v310_v49  ;;  %v311_v55 = vmul.f32 0.018778928, %v309_v50  ;;  %v327_v58 = vmul.f32 -0.05108693, %v309_v50 }
  0xaf   : > { %v328_v31 = vmul.f32 -0.05108693, %v310_v49  ;;  %v5817_v49 = vmov 1326507024  }
  0xb0   : > { %v3654_v59 = vadd.f32 %v312_v53, %v293_v52  ;;  %v3661_v2 = vadd.f32 %v311_v55, %v292_v60  ;;  %v329_v4 = vadd.f32 %v327_v58, %v325_v61 }
  0xb1   : > { %v330_v51 = vadd.f32 %v328_v31, %v326_v30 }
  0xb2   : > { %v3658_v62 = vmul.f32 %v3652_v56, %v3654_v59  ;;  %v3668_v14 = vadd.f32 %v340_v9, %v329_v4 }
  0xb4   : > { %v514_v5 = vand.u32 2139095040, %v3658_v62  ;;  %v347_v6 = vpop.permute.xlu1 %346  ;;  %5870 = vst [vmem:[#allocation5_spill] sm:$0xff] %v3668_v14  ;;  %v5815_v15 = vand.u32 2147483647, %v3658_v62  ;;  %v334_v18 = vpop.permute.xlu0 %333 }
  0xb5   : > { %v3665_v7 = vmul.f32 %v347_v6, %v3661_v2  ;;  %v3672_v24 = vmul.f32 %v347_v6, %v3668_v14  ;;  %v339_v19 = vsel %vm5834_vm5, %v334_v18, %v3633_v17 }
  0xb6   : > { %v515_v10 = vshrl.u32 %v514_v5, 23  ;;  %v518_v25 = vand.u32 8388607, %v5815_v15  ;;  %v341_v35 = vmul.f32 0.004057933, %v339_v19 }
  0xb7   : > { %v359_v11 = vand.u32 2139095040, %v3665_v7  ;;  %v5814_v27 = vand.u32 2147483647, %v3665_v7  ;;  %v5813_v33 = vand.u32 2147483647, %v3672_v24  ;;  %v687_v34 = vand.u32 2139095040, %v3672_v24 }
  0xb8   : > { %v3250_v13 = vadd.s32 4294967169, %v515_v10  ;;  %v519_v36 = vor.u32 8388608, %v518_v25  ;;  %v3711_v5 = vadd.f32 %v341_v35, %v330_v51 }
  0xb9   : > { %v360_v16 = vshrl.u32 %v359_v11, 23  ;;  %v363_v17 = vand.u32 8388607, %v5814_v27  ;;  %v688_v54 = vshrl.u32 %v687_v34, 23  ;;  %v3705_v61 = vand.u32 8388607, %v5813_v33 }
  0xba   : > { %v521_v20 = vadd.s32 1, %v3250_v13  ;;  %v3709_v3 = vshll.u32 %v519_v36, 8 }
  0xbb   : > { %v3247_v22 = vadd.s32 4294967169, %v360_v16  ;;  %v364_v4 = vor.u32 8388608, %v363_v17  ;;  %v3253_v8 = vadd.s32 4294967169, %v688_v54  ;;  %v692_v18 = vor.u32 8388608, %v3705_v61 }
  0xbc   : > { %vm522_vm6 = vcmp.gt.s32.totalorder %v521_v20, 0  ;;  %v3725_v16 = vand.u32 65535, %v3709_v3 }
  0xbd   : > { %v523_v26 = vsel %vm522_vm6, %v521_v20, 0  ;;  %v366_v28 = vadd.s32 1, %v3247_v22  ;;  %v3730_v20 = vmul.f32 %v3652_v56, %v3711_v5  ;;  %v3736_v23 = vshll.u32 %v364_v4, 8 }
  0xbe   : > { %v525_v29 = vand.u32 31, %v523_v26  ;;  %v3683_v37 = vshrl.u32 %v523_v26, 5  ;;  %v694_v19 = vadd.s32 1, %v3253_v8 }
  0xbf   : > { %vm367_vm7 = vcmp.gt.s32.totalorder %v366_v28, 0 }
  0xc0   : > { %v3679_v32 = vsub.s32 32, %v525_v29  ;;  %v531_v39 = vshll.u32 %v5820_v38, %v525_v29  ;;  %v534_v42 = vshll.u32 %v5830_v40, %v525_v29  ;;  %v537_v45 = vshll.u32 %v5826_v43, %v525_v29 }
  0xc1   : > { %v540_v48 = vshll.u32 %v5824_v46, %v525_v29  ;;  %v368_v53 = vsel %vm367_vm7, %v366_v28, 0  ;;  %vm546_vm8 = vcmp.lt.s32.totalorder %v3683_v37, 4  ;;  %vm543_vm9 = vcmp.lt.s32.totalorder %v3683_v37, 1 }
  0xc2   : > { %v532_v41 = vshrl.u32 %v5830_v40, %v3679_v32  ;;  %v535_v44 = vshrl.u32 %v5826_v43, %v3679_v32  ;;  %v538_v47 = vshrl.u32 %v5824_v46, %v3679_v32  ;;  %v541_v50 = vshrl.u32 %v5817_v49, %v3679_v32 }
  0xc3   : > { %v370_v60 = vand.u32 31, %v368_v53  ;;  %v529_v6 = vshrl.u32 %v5820_v38, %v3679_v32  ;;  %vm545_vm10 = vcmp.lt.s32.totalorder %v3683_v37, 3  ;;  %v528_v13 = vshll.u32 %v5828_v12, %v525_v29 }
  0xc4   : > { %v3699_v52 = vor.u32 %v532_v41, %v531_v39  ;;  %v536_v55 = vor.u32 %v535_v44, %v534_v42  ;;  %v539_v57 = vor.u32 %v538_v47, %v537_v45  ;;  %v542_v58 = vor.u32 %v541_v50, %v540_v48 }
  0xc5   : > { %v371_v11 = vsub.s32 32, %v370_v60  ;;  %vm544_vm11 = vcmp.lt.s32.totalorder %v3683_v37, 2  ;;  %v530_v21 = vor.u32 %v529_v6, %v528_v13  ;;  %v369_v25 = vshrl.u32 %v368_v53, 5 }
  0xc6   : > { %v556_v63 = vsel %vm546_vm8, %v542_v58, 1326507024  ;;  %v555_v9 = vsel %vm543_vm9, %v3699_v52, %v536_v55  ;;  %v373_v30 = vshll.u32 %v5828_v12, %v370_v60  ;;  %v379_v56 = vshll.u32 %v5830_v40, %v370_v60 }
  0xc7   : > { %v557_v10 = vsel %vm545_vm10, %v539_v57, %v556_v63  ;;  %v374_v26 = vshrl.u32 %v5820_v38, %v371_v11  ;;  %v377_v28 = vshrl.u32 %v5830_v40, %v371_v11  ;;  %v380_v29 = vshrl.u32 %v5826_v43, %v371_v11 }
  0xc8   : > { %v3734_v22 = vsel %vm544_vm11, %v555_v9, %v557_v10  ;;  %v382_v31 = vshll.u32 %v5826_v43, %v370_v60  ;;  %v383_v34 = vshrl.u32 %v5824_v46, %v371_v11  ;;  %v376_v36 = vshll.u32 %v5820_v38, %v370_v60 }
  0xc9   : > { %v563_v35 = vshrl.u32 %v3734_v22, 16  ;;  %v385_v17 = vshll.u32 %v5824_v46, %v370_v60  ;;  %v386_v39 = vshrl.u32 %v5817_v49, %v371_v11  ;;  %v527_v41 = vshrl.u32 %v5828_v12, %v3679_v32 }
  0xca   : > { %v552_v42 = vsel %vm546_vm8, %v539_v57, 920167782  ;;  %v381_v44 = vor.u32 %v380_v29, %v379_v56  ;;  %v384_v45 = vor.u32 %v383_v34, %v382_v31  ;;  %v375_v47 = vor.u32 %v374_v26, %v373_v30 }
  0xcb   : > { %v378_v48 = vor.u32 %v377_v28, %v376_v36  ;;  %v387_v50 = vor.u32 %v386_v39, %v385_v17  ;;  %vm391_vm12 = vcmp.lt.s32.totalorder %v369_v25, 4  ;;  %v548_v51 = vsel %vm546_vm8, %v536_v55, 2102212464 }
  0xcc   : > { %v551_v53 = vsel %vm543_vm9, %v530_v21, %v3699_v52  ;;  %v397_v54 = vsel %vm391_vm12, %v384_v45, 920167782  ;;  %vm695_vm13 = vcmp.gt.s32.totalorder %v694_v19, 0  ;;  %v553_v32 = vsel %vm545_vm10, %v536_v55, %v552_v42 }
  0xcd   : > { %v3761_v57 = vmul.u32 %v563_v35, %v3725_v16  ;;  %v372_v58 = vshrl.u32 %v5828_v12, %v371_v11  ;;  %v401_v60 = vsel %vm391_vm12, %v387_v50, 1326507024  ;;  %vm388_vm14 = vcmp.lt.s32.totalorder %v369_v25, 1 }
  0xce   : > { %vm390_vm15 = vcmp.lt.s32.totalorder %v369_v25, 3  ;;  %v393_v61 = vsel %vm391_vm12, %v381_v44, 2102212464  ;;  %v696_v63 = vsel %vm695_vm13, %v694_v19, 0  ;;  %v396_v4 = vsel %vm388_vm14, %v375_v47, %v378_v48 }
  0xcf   : > { %v398_v6 = vsel %vm390_vm15, %v381_v44, %v397_v54  ;;  %v400_v8 = vsel %vm388_vm14, %v378_v48, %v381_v44  ;;  %v402_v9 = vsel %vm390_vm15, %v384_v45, %v401_v60  ;;  %v547_v10 = vsel %vm543_vm9, %v527_v41, %v530_v21 }
  0xd0   : > { %v549_v55 = vsel %vm545_vm10, %v3699_v52, %v548_v51  ;;  %v3771_v13 = vsel %vm544_vm11, %v551_v53, %v553_v32  ;;  %v562_v11 = vand.u32 65535, %v3734_v22  ;;  %vm389_vm6 = vcmp.lt.s32.totalorder %v369_v25, 2 }
  0xd1   : > { %v392_v26 = vsel %vm388_vm14, %v372_v58, %v375_v47  ;;  %v394_v19 = vsel %vm390_vm15, %v378_v48, %v393_v61  ;;  %v698_v28 = vand.u32 31, %v696_v63  ;;  %v3775_v29 = vshrl.u32 %v3709_v3, 16 }
  0xd2   : > { %v3777_v30 = vsel %vm389_vm6, %v396_v4, %v398_v6  ;;  %v3779_v21 = vsel %vm389_vm6, %v400_v8, %v402_v9  ;;  %v3781_v56 = vshll.u32 %v692_v18, 8  ;;  %v3785_v52 = vsel %vm544_vm11, %v547_v10, %v549_v55 }
  0xd3   : > { %v568_v31 = vshll.u32 %v3761_v57, 16  ;;  %v585_v22 = vshrl.u32 %v3771_v13, 16  ;;  %v842_v25 = vand.u32 2139095040, %v3730_v20  ;;  %v564_v34 = vmul.u32 %v562_v11, %v3725_v16 }
  0xd4   : > { %v3791_v36 = vsel %vm389_vm6, %v392_v26, %v394_v19  ;;  %v3794_v17 = vand.u32 65535, %v3736_v23  ;;  %v3797_v18 = vshrl.u32 %v3736_v23, 16  ;;  %v408_v37 = vshrl.u32 %v3779_v21, 16 }
  0xd5   : > { %v430_v39 = vshrl.u32 %v3777_v30, 16  ;;  %v3801_v41 = vshrl.u32 %v696_v63, 5  ;;  %v699_v42 = vsub.s32 32, %v698_v28  ;;  %v584_v44 = vand.u32 65535, %v3771_v13 }
  0xd6   : > { %v5816_v47 = vand.u32 65535, %v3779_v21  ;;  %v3808_v48 = vand.u32 65535, %v3781_v56  ;;  %v567_v50 = vmul.u32 %v563_v35, %v3775_v29  ;;  %vm3811_vm7 = vc.u32 %v564_v34, %v568_v31 }
  0xd7   : > { %v3816_v53 = vmul.u32 %v585_v22, %v3725_v16  ;;  %v3819_v54 = vmul.u32 %v585_v22, %v3775_v29  ;;  %v574_v32 = vadd.s32 %v568_v31, %v564_v34  ;;  %v843_v61 = vshrl.u32 %v842_v25, 23 }
  0xd8   : > { %v3825_v63 = vmul.u32 %v408_v37, %v3794_v17  ;;  %v3828_v35 = vmul.u32 %v430_v39, %v3794_v17  ;;  %v3831_v4 = vmul.u32 %v430_v39, %v3797_v18  ;;  %v714_v6 = vshrl.u32 %v5817_v49, %v699_v42 }
  0xd9   : > { %vm716_vm8 = vcmp.lt.s32.totalorder %v3801_v41, 1  ;;  %v3838_v8 = vmul.u32 %v5816_v47, %v3794_v17  ;;  %v702_v9 = vshrl.u32 %v5820_v38, %v699_v42  ;;  %v705_v10 = vshrl.u32 %v5830_v40, %v699_v42 }
  0xda   : > { %v3256_v55 = vadd.s32 4294967169, %v843_v61  ;;  %v708_v13 = vshrl.u32 %v5826_v43, %v699_v42  ;;  %v711_v26 = vshrl.u32 %v5824_v46, %v699_v42  ;;  %v713_v19 = vshll.u32 %v5824_v46, %v698_v28 }
  0xdb   : > { %vm718_vm9 = vcmp.lt.s32.totalorder %v3801_v41, 3  ;;  %v566_v31 = vmul.u32 %v562_v11, %v3775_v29  ;;  %v3848_v22 = vmul.u32 %v408_v37, %v3797_v18  ;;  %v701_v25 = vshll.u32 %v5828_v12, %v698_v28 }
  0xdc   : > { %v704_v34 = vshll.u32 %v5820_v38, %v698_v28  ;;  %v707_v39 = vshll.u32 %v5830_v40, %v698_v28  ;;  %v413_v61 = vshll.u32 %v3825_v63, 16  ;;  %v710_v1 = vshll.u32 %v5826_v43, %v698_v28 }
  0xdd   : > { %v715_v33 = vor.u32 %v714_v6, %v713_v19  ;;  %v849_v27 = vadd.s32 1, %v3256_v55  ;;  %v700_v60 = vshrl.u32 %v5828_v12, %v699_v42  ;;  %v703_v15 = vor.u32 %v702_v9, %v701_v25 }
  0xde   : > { %v3856_v58 = vor.u32 %v705_v10, %v704_v34  ;;  %v570_v11 = vshll.u32 %v566_v31, 16  ;;  %v3858_v37 = vor.u32 %v708_v13, %v707_v39  ;;  %v712_v47 = vor.u32 %v711_v26, %v710_v1 }
  0xdf   : > { %vm850_vm10 = vcmp.gt.s32.totalorder %v849_v27, 0  ;;  %v573_v45 = vsel %vm3811_vm7, 1, %v5822_v0  ;;  %vm719_vm11 = vcmp.lt.s32.totalorder %v3801_v41, 4  ;;  %v3867_v42 = vadd.s32 %v413_v61, %v3838_v8 }
  0xe0   : > { %v851_v49 = vsel %vm850_vm10, %v849_v27, 0  ;;  %v575_v28 = vadd.s32 %v573_v45, %v567_v50  ;;  %vm576_vm12 = vc.u32 %v574_v32, %v570_v11  ;;  %v729_v6 = vsel %vm719_vm11, %v715_v33, 1326507024 }
  0xe1   : > { %v853_v9 = vand.u32 31, %v851_v49  ;;  %v577_v1 = vsel %vm576_vm12, 1, %v5822_v0  ;;  %v3874_v51 = vsel %vm716_vm8, %v700_v60, %v703_v15  ;;  %v3879_v27 = vsel %vm716_vm8, %v703_v15, %v3856_v58 }
  0xe2   : > { %v579_v45 = vadd.s32 %v577_v1, %v575_v28  ;;  %v588_v50 = vmul.u32 %v584_v44, %v3775_v29  ;;  %vm717_vm13 = vcmp.lt.s32.totalorder %v3801_v41, 2  ;;  %v569_v32 = vshrl.u32 %v3761_v57, 16 }
  0xe3   : > { %v586_v33 = vmul.u32 %v584_v44, %v3725_v16  ;;  %v590_v10 = vshll.u32 %v3816_v53, 16  ;;  %v5819_v55 = vand.u32 2147483647, %v3730_v20  ;;  %v725_v60 = vsel %vm719_vm11, %v712_v47, 920167782 }
  0xe4   : > { %v728_v15 = vsel %vm716_vm8, %v3856_v58, %v3858_v37  ;;  %v730_v29 = vsel %vm718_vm9, %v712_v47, %v729_v6  ;;  %v3895_v13 = vsub.s32 32, %v853_v9  ;;  %v580_v57 = vadd.s32 %v579_v45, %v569_v32 }
  0xe5   : > { %v592_v26 = vshll.u32 %v588_v50, 16  ;;  %vm594_vm14 = vc.u32 %v586_v33, %v590_v10  ;;  %v596_v16 = vadd.s32 %v590_v10, %v586_v33  ;;  %v3897_v44 = vshrl.u32 %v851_v49, 5 }
  0xe6   : > { %v571_v19 = vshrl.u32 %v566_v31, 16  ;;  %v591_v25 = vshrl.u32 %v3816_v53, 16  ;;  %v595_v34 = vsel %vm594_vm14, 1, %v5822_v0  ;;  %v846_v11 = vand.u32 8388607, %v5819_v55 }
  0xe7   : > { %v597_v39 = vadd.s32 %v595_v34, %v3819_v54  ;;  %vm598_vm15 = vc.u32 %v596_v16, %v592_v26  ;;  %v856_v47 = vshll.u32 %v5828_v12, %v853_v9  ;;  %v857_v6 = vshrl.u32 %v5820_v38, %v3895_v13 }
  0xe8   : > { %v599_v28 = vsel %vm598_vm15, 1, %v5822_v0  ;;  %v859_v49 = vshll.u32 %v5820_v38, %v853_v9  ;;  %v860_v53 = vshrl.u32 %v5830_v40, %v3895_v13  ;;  %v3911_v31 = vadd.s32 %v580_v57, %v571_v19 }
  0xe9   : > { %v593_v1 = vshrl.u32 %v588_v50, 16  ;;  %v601_v54 = vadd.s32 %v599_v28, %v597_v39  ;;  %v862_v45 = vshll.u32 %v5830_v40, %v853_v9  ;;  %v858_v32 = vor.u32 %v857_v6, %v856_v47 }
  0xea   : > { %v3914_v33 = vor.u32 %v860_v53, %v859_v49  ;;  %v863_v10 = vshrl.u32 %v5826_v43, %v3895_v13  ;;  %v865_v34 = vshll.u32 %v5826_v43, %v853_v9  ;;  %v866_v38 = vshrl.u32 %v5824_v46, %v3895_v13 }
  0xeb   : > { %v602_v55 = vadd.s32 %v601_v54, %v591_v25  ;;  %v868_v0 = vshll.u32 %v5824_v46, %v853_v9  ;;  %v5873_v57 = vmov 1326507024   ;;  %v3926_v19 = vsel %vm717_vm13, %v728_v15, %v730_v29 }
  0xec   : > { %v869_v50 = vshrl.u32 %v5873_v57, %v3895_v13  ;;  %v3928_v39 = vadd.s32 %v596_v16, %v592_v26  ;;  %v847_v47 = vor.u32 8388608, %v846_v11  ;;  %v864_v28 = vor.u32 %v863_v10, %v862_v45 }
  0xed   : > { %v603_v6 = vadd.s32 %v602_v55, %v593_v1  ;;  %v867_v49 = vor.u32 %v866_v38, %v865_v34  ;;  %vm871_vm6 = vcmp.lt.s32.totalorder %v3897_v44, 1  ;;  %vm874_vm8 = vcmp.lt.s32.totalorder %v3897_v44, 4 }
  0xee   : > { %v870_v53 = vor.u32 %v869_v50, %v868_v0  ;;  %vm606_vm7 = vc.u32 %v3911_v31, %v3928_v39  ;;  %v879_v9 = vsel %vm871_vm6, %v858_v32, %v3914_v33  ;;  %v883_v15 = vsel %vm871_vm6, %v3914_v33, %v864_v28 }
  0xef   : > { %v607_v29 = vadd.s32 1, %v603_v6  ;;  %vm873_vm10 = vcmp.lt.s32.totalorder %v3897_v44, 3  ;;  %v880_v0 = vsel %vm874_vm8, %v867_v49, 920167782  ;;  %vm872_vm12 = vcmp.lt.s32.totalorder %v3897_v44, 2 }
  0xf0   : > { %v884_v38 = vsel %vm874_vm8, %v870_v53, 1326507024  ;;  %v881_v55 = vsel %vm873_vm10, %v864_v28, %v880_v0  ;;  %v3950_v16 = vshll.u32 %v847_v47, 8  ;;  %v726_v25 = vsel %vm718_vm9, %v3858_v37, %v725_v60 }
  0xf1   : > { %v885_v26 = vsel %vm873_vm10, %v867_v49, %v884_v38  ;;  %v608_v11 = vsel %vm606_vm7, %v607_v29, %v603_v6  ;;  %v882_v1 = vsel %vm872_vm12, %v879_v9, %v881_v55  ;;  %v5832_v45 = vshrl.u32 %v3926_v19, 16 }
  0xf2   : > { %v886_v54 = vsel %vm872_vm12, %v883_v15, %v885_v26  ;;  %v5874_v10 = vmul.u32 %v3709_v3, %v3785_v52  ;;  %v888_v50 = vand.u32 65535, %v3950_v16  ;;  %v889_v49 = vshrl.u32 %v3950_v16, 16 }
  0xf3   : > { %v890_v47 = vand.u32 65535, %v886_v54  ;;  %v891_v53 = vshrl.u32 %v886_v54, 16  ;;  %v912_v60 = vand.u32 65535, %v882_v1  ;;  %v913_v6 = vshrl.u32 %v882_v1, 16 }
  0xf4   : > { %v609_v34 = vadd.s32 %v608_v11, %v5874_v10  ;;  %v3968_v9 = vsel %vm719_vm11, %v3858_v37, 2102212464  ;;  %v3973_v15 = vsel %vm717_vm13, %v3879_v27, %v726_v25  ;;  %v3976_v3 = vshrl.u32 %v3781_v56, 16 }
  0xf5   : > { %v893_v0 = vmul.u32 %v891_v53, %v888_v50  ;;  %v894_v38 = vmul.u32 %v890_v47, %v889_v49  ;;  %v915_v55 = vmul.u32 %v913_v6, %v888_v50  ;;  %v3982_v26 = vmul.u32 %v5832_v45, %v3808_v48 }
  0xf6   : > { %v610_v52 = vadd.s32 536870912, %v609_v34  ;;  %v855_v27 = vshrl.u32 %v5828_v12, %v3895_v13  ;;  %v892_v25 = vmul.u32 %v890_v47, %v888_v50  ;;  %vm3991_vm11 = vc.u32 %v3838_v8, %v413_v61 }
  0xf7   : > { %v896_v1 = vshll.u32 %v893_v0, 16  ;;  %v914_v54 = vmul.u32 %v912_v60, %v888_v50  ;;  %v916_v10 = vmul.u32 %v912_v60, %v889_v49  ;;  %v918_v46 = vshll.u32 %v915_v55, 16 }
  0xf8   : > { %v3984_v37 = vshrl.u32 %v610_v52, 30  ;;  %v875_v52 = vsel %vm871_vm6, %v855_v27, %v858_v32  ;;  %v876_v13 = vsel %vm874_vm8, %v864_v28, 2102212464  ;;  %v895_v47 = vmul.u32 %v891_v53, %v889_v49 }
  0xf9   : > { %v898_v12 = vshll.u32 %v894_v38, 16  ;;  %vm900_vm14 = vc.u32 %v892_v25, %v896_v1  ;;  %v902_v40 = vadd.s32 %v896_v1, %v892_v25  ;;  %vm922_vm15 = vc.u32 %v914_v54, %v918_v46 }
  0xfa   : > { %v612_v43 = vshll.u32 %v3984_v37, 30  ;;  %v5877_v61 = vmov 0   ;;  %v917_v29 = vmul.u32 %v913_v6, %v889_v49  ;;  %v920_v57 = vshll.u32 %v916_v10, 16 }
  0xfb   : > { %v901_v45 = vsel %vm900_vm14, 1, %v5877_v61  ;;  %v923_v50 = vsel %vm922_vm15, 1, %v5877_v61  ;;  %vm904_vm7 = vc.u32 %v902_v40, %v898_v12  ;;  %v924_v14 = vadd.s32 %v918_v46, %v914_v54 }
  0xfc   : > { %v613_v8 = vsub.s32 %v609_v34, %v612_v43  ;;  %v903_v60 = vadd.s32 %v901_v45, %v895_v47  ;;  %v877_v28 = vsel %vm873_vm10, %v3914_v33, %v876_v13  ;;  %v905_v53 = vsel %vm904_vm7, 1, %v5877_v61 }
  0xfd   : > { %v897_v27 = vshrl.u32 %v893_v0, 16  ;;  %v925_v43 = vadd.s32 %v923_v50, %v917_v29  ;;  %vm926_vm6 = vc.u32 %v924_v14, %v920_v57  ;;  %v899_v49 = vshrl.u32 %v894_v38, 16 }
  0xfe   : > { %vm614_vm5 = vcmp.lt.s32.totalorder %v613_v8, 0  ;;  %v615_v32 = vsub.s32 0, %v613_v8  ;;  %v907_v25 = vadd.s32 %v905_v53, %v903_v60  ;;  %v927_v6 = vsel %vm926_vm6, 1, %v5877_v61 }
  0xff   : > { %v5878_v40 = vand.u32 65535, %v3779_v21  ;;  %v919_v1 = vshrl.u32 %v915_v55, 16  ;;  %v929_v54 = vadd.s32 %v927_v6, %v925_v43  ;;  %v741_v33 = vshll.u32 %v3982_v26, 16 }
 0x100   : > { %v616_v34 = vsel %vm614_vm5, %v615_v32, %v613_v8  ;;  %v908_v45 = vadd.s32 %v907_v25, %v897_v27  ;;  %v757_v13 = vand.u32 65535, %v3973_v15  ;;  %v921_v0 = vshrl.u32 %v916_v10, 16 }
 0x101   : > { %v411_v46 = vmul.u32 %v5878_v40, %v3797_v18  ;;  %v617_v12 = vclz %v616_v34  ;;  %v4014_v38 = vadd.s32 %v924_v14, %v920_v57  ;;  %v930_v60 = vadd.s32 %v929_v54, %v919_v1 }
 0x102   : > { %v4012_v50 = vadd.s32 %v908_v45, %v899_v49  ;;  %v605_v21 = vadd.s32 %v3928_v39, %v3911_v31  ;;  %v878_v32 = vsel %vm872_vm12, %v875_v52, %v877_v28  ;;  %v418_v55 = vsel %vm3991_vm11, 1, %v5877_v61 }
 0x103   : > { %v415_v47 = vshll.u32 %v411_v46, 16  ;;  %v3251_v29 = vadd.s32 4294967294, %v617_v12  ;;  %v931_v10 = vadd.s32 %v930_v60, %v921_v0  ;;  %v5879_v14 = vand.u32 65535, %v3777_v30 }
 0x104   : > { %vm934_vm10 = vc.u32 %v4012_v50, %v4014_v38  ;;  %v420_v31 = vadd.s32 %v418_v55, %v3848_v22  ;;  %v435_v39 = vshll.u32 %v3828_v35, 16  ;;  %vm513_vm12 = vcmp.lt.s32.totalorder %v3658_v62, 0 }
 0x105   : > { %vm421_vm5 = vc.u32 %v3867_v42, %v415_v47  ;;  %vm3252_vm8 = vcmp.lt.s32.totalorder %v3251_v29, 0  ;;  %v433_v57 = vmul.u32 %v5879_v14, %v3797_v18  ;;  %v935_v28 = vadd.s32 1, %v931_v10 }
 0x106   : > { %v620_v53 = vsel %vm3252_vm8, 0, %v3251_v29  ;;  %v422_v44 = vsel %vm421_vm5, 1, %v5877_v61  ;;  %v5880_v42 = vmov %v5879_v14  ;;  %v932_v43 = vmul.u32 %v3950_v16, %v878_v32 }
 0x107   : > { %v621_v11 = vsub.s32 32, %v620_v53  ;;  %v625_v52 = vsub.s32 4294967266, %v620_v53  ;;  %v431_v27 = vmul.u32 %v5880_v42, %v3794_v17  ;;  %v622_v25 = vshll.u32 %v613_v8, %v620_v53 }
 0x108   : > { %v414_v18 = vshrl.u32 %v3825_v63, 16  ;;  %v424_v34 = vadd.s32 %v422_v44, %v420_v31  ;;  %v936_v6 = vsel %vm934_vm10, %v935_v28, %v931_v10  ;;  %v437_v12 = vshll.u32 %v433_v57, 16 }
 0x109   : > { %v623_v22 = vshrl.u32 %v605_v21, %v621_v11  ;;  %v626_v49 = vadd.s32 127, %v625_v52  ;;  %vm439_vm11 = vc.u32 %v431_v27, %v435_v39  ;;  %v937_v40 = vadd.s32 %v936_v6, %v932_v43 }
 0x10a   : > { %v440_v30 = vsel %vm439_vm11, 1, %v5877_v61  ;;  %v441_v17 = vadd.s32 %v435_v39, %v431_v27  ;;  %v425_v8 = vadd.s32 %v424_v34, %v414_v18  ;;  %v5881_v63 = vand.u32 65535, %v3926_v19 }
 0x10b   : > { %v624_v45 = vor.u32 %v623_v22, %v622_v25  ;;  %v627_v1 = vshll.u32 %v626_v49, 23  ;;  %v442_v16 = vadd.s32 %v440_v30, %v3831_v4  ;;  %v758_v0 = vshrl.u32 %v3973_v15, 16 }
 0x10c   : > { %v737_v54 = vmul.u32 %v5881_v63, %v3808_v48  ;;  %v5882_v47 = vand.u32 2147483647, %v3658_v62  ;;  %v938_v60 = vadd.s32 536870912, %v937_v40  ;;  %vm443_vm15 = vc.u32 %v441_v17, %v437_v12 }
 0x10d   : > { %v628_v21 = vor.u32 4788187, %v627_v1  ;;  %v635_v32 = vsub.s32 4, %v3984_v37  ;;  %v416_v55 = vshrl.u32 %v411_v46, 16  ;;  %v444_v4 = vsel %vm443_vm15, 1, %v5877_v61 }
 0x10e   : > { %vm4049_vm14 = vcmp.le.f32.partialorder %v5882_v47, 0.7853982  ;;  %vm4055_vm7 = vc.u32 %v737_v54, %v741_v33  ;;  %v4059_v14 = vshrl.u32 %v938_v60, 30  ;;  %v436_v53 = vshrl.u32 %v3828_v35, 16 }
 0x10f   : > { %v446_v31 = vadd.s32 %v444_v4, %v442_v16  ;;  %v629_v44 = vand.u32 2147483647, %v628_v21  ;;  %v631_v39 = vcvt.s32.f32 %v624_v45  ;;  %v4062_v11 = vadd.s32 %v425_v8, %v416_v55 }
 0x110   : > { %v5887_v52 = vmov %v5881_v63  ;;  %v747_v46 = vadd.s32 %v741_v33, %v737_v54  ;;  %v940_v42 = vshll.u32 %v4059_v14, 30  ;;  %v438_v27 = vshrl.u32 %v433_v57, 16 }
 0x111   : > { %v4067_v28 = vmul.u32 %v5887_v52, %v3976_v3  ;;  %v447_v25 = vadd.s32 %v446_v31, %v436_v53  ;;  %v4071_v43 = vmul.u32 %v758_v0, %v3808_v48  ;;  %v632_v18 = vmul.f32 %v631_v39, %v629_v44 }
 0x112   : > { %v636_v35 = vsel %vm513_vm12, %v635_v32, %v3984_v37  ;;  %v4076_v34 = vadd.s32 %v441_v17, %v437_v12  ;;  %v4078_v22 = vsub.s32 %v937_v40, %v940_v42  ;;  %v746_v33 = vsel %vm4055_vm7, 1, %v5877_v61 }
 0x113   : > { %v448_v49 = vadd.s32 %v447_v25, %v438_v27  ;;  %v743_v6 = vshll.u32 %v4067_v28, 16  ;;  %v722_v57 = vsel %vm718_vm9, %v3856_v58, %v3968_v9  ;;  %v5888_v30 = vshrl.u32 %v3926_v19, 16 }
 0x114   : > { %v633_v12 = vxor.u32 2147483648, %v632_v18  ;;  %vm451_vm6 = vc.u32 %v4062_v11, %v4076_v34  ;;  %vm942_vm5 = vcmp.lt.s32.totalorder %v4078_v22, 0  ;;  %v943_v40 = vsub.s32 0, %v4078_v22 }
 0x115   : > { %v740_v37 = vmul.u32 %v5888_v30, %v3976_v3  ;;  %v452_v17 = vadd.s32 1, %v448_v49  ;;  %vm749_vm8 = vc.u32 %v747_v46, %v743_v6  ;;  %v638_v58 = vsel %vm4049_vm14, 0, %v636_v35 }
 0x116   : > { %v634_v45 = vsel %vm513_vm12, %v633_v12, %v632_v18  ;;  %v4102_v19 = vmul.u32 %v757_v13, %v3976_v3  ;;  %v944_v8 = vsel %vm942_vm5, %v943_v40, %v4078_v22  ;;  %v763_v63 = vshll.u32 %v4071_v43, 16 }
 0x117   : > { %v748_v9 = vadd.s32 %v746_v33, %v740_v37  ;;  %v637_v1 = vsel %vm4049_vm14, %v3658_v62, %v634_v45  ;;  %v453_v16 = vsel %vm451_vm6, %v452_v17, %v448_v49  ;;  %v945_v47 = vclz %v944_v8 }
 0x118   : > { %v639_v54 = vmul.f32 %v637_v1, %v637_v1  ;;  %v5889_v60 = vmul.u32 %v3736_v23, %v3791_v36  ;;  %v750_v32 = vsel %vm749_vm8, 1, %v5877_v61  ;;  %v4116_v55 = vsel %vm717_vm13, %v3874_v51, %v722_v57 }
 0x119   : > { %v762_v29 = vmul.u32 %v758_v0, %v3976_v3  ;;  %v655_v4 = vadd.s32 3, %v638_v58  ;;  %v759_v10 = vmul.u32 %v757_v13, %v3808_v48  ;;  %v3257_v44 = vadd.s32 4294967294, %v945_v47 }
 0x11a   : > { %v454_v21 = vadd.s32 %v453_v16, %v5889_v60  ;;  %v640_v53 = vmul.f32 -0.001358992, %v639_v54  ;;  %v647_v31 = vmul.f32 -0.00019511016, %v639_v54  ;;  %v752_v23 = vadd.s32 %v750_v32, %v748_v9 }
 0x11b   : > { %v765_v36 = vshll.u32 %v4102_v19, 16  ;;  %vm767_vm9 = vc.u32 %v759_v10, %v763_v63  ;;  %v769_v52 = vadd.s32 %v763_v63, %v759_v10  ;;  %vm3258_vm13 = vcmp.lt.s32.totalorder %v3257_v44, 0 }
 0x11c   : > { %v455_v39 = vadd.s32 536870912, %v454_v21  ;;  %v641_v46 = vadd.f32 0.041655596, %v640_v53  ;;  %v648_v41 = vadd.f32 0.008332121, %v647_v31  ;;  %v933_v3 = vadd.s32 %v4014_v38, %v4012_v50 }
 0x11d   : > { %v948_v0 = vsel %vm3258_vm13, 0, %v3257_v44  ;;  %v742_v48 = vshrl.u32 %v3982_v26, 16  ;;  %v768_v15 = vsel %vm767_vm9, 1, %v5877_v61  ;;  %vm771_vm10 = vc.u32 %v769_v52, %v765_v36 }
 0x11e   : > { %v4123_v51 = vshrl.u32 %v455_v39, 30  ;;  %v642_v13 = vmul.f32 %v641_v46, %v639_v54  ;;  %v649_v42 = vmul.f32 %v648_v41, %v639_v54  ;;  %v949_v27 = vsub.s32 32, %v948_v0 }
 0x11f   : > { %v777_v25 = vmul.u32 %v3781_v56, %v4116_v55  ;;  %v953_v18 = vsub.s32 4294967266, %v948_v0  ;;  %v753_v49 = vadd.s32 %v752_v23, %v742_v48  ;;  %v770_v50 = vadd.s32 %v768_v15, %v762_v29 }
 0x120   : > { %v457_v35 = vshll.u32 %v4123_v51, 30  ;;  %v643_v6 = vadd.f32 -0.4999988, %v642_v13  ;;  %v650_v33 = vadd.f32 -0.16666654, %v649_v42  ;;  %v951_v57 = vshrl.u32 %v933_v3, %v949_v27 }
 0x121   : > { %v950_v38 = vshll.u32 %v4078_v22, %v948_v0  ;;  %v954_v26 = vadd.s32 127, %v953_v18  ;;  %v772_v37 = vsel %vm771_vm10, 1, %v5877_v61  ;;  %v656_v17 = vand.u32 3, %v655_v4 }
 0x122   : > { %v458_v30 = vsub.s32 %v454_v21, %v457_v35  ;;  %v644_v12 = vmul.f32 %v643_v6, %v639_v54  ;;  %v651_v40 = vmul.f32 %v650_v33, %v639_v54  ;;  %v744_v45 = vshrl.u32 %v4067_v28, 16  ;;  %v4157_v33 = vpop.permute.xlu1 %675 }
 0x123   : > { %vm654_vm12 = vweird.f32 %v3658_v62  ;;  %v952_v58 = vor.u32 %v951_v57, %v950_v38  ;;  %v955_v9 = vshll.u32 %v954_v26, 23  ;;  %v764_v47 = vshrl.u32 %v4071_v43, 16 }
 0x124   : > { %vm459_vm11 = vcmp.lt.s32.totalorder %v458_v30, 0  ;;  %v460_v8 = vsub.s32 0, %v458_v30  ;;  %v645_v16 = vadd.f32 1.0, %v644_v12  ;;  %v652_v63 = vadd.f32 1.0, %v651_v40 }
 0x125   : > { %v774_v22 = vadd.s32 %v772_v37, %v770_v50  ;;  %v956_v60 = vor.u32 4788187, %v955_v9  ;;  %v4137_v32 = vadd.s32 %v753_v49, %v744_v45  ;;  %v766_v54 = vshrl.u32 %v4102_v19, 16 }
 0x126   : > { %v461_v21 = vsel %vm459_vm11, %v460_v8, %v458_v30  ;;  %v653_v29 = vmul.f32 %v652_v63, %v637_v1  ;;  %v662_v4 = vxor.u32 2147483648, %v645_v16  ;;  %vm661_vm14 = vcmp.eq.s32.totalorder %v656_v17, 2 }
 0x127   : > { %v462_v28 = vclz %v461_v21  ;;  %v775_v10 = vadd.s32 %v774_v22, %v764_v47  ;;  %vm841_vm15 = vcmp.lt.s32.totalorder %v3730_v20, 0  ;;  %v957_v53 = vand.u32 2147483647, %v956_v60 }
 0x128   : > { %v959_v31 = vcvt.s32.f32 %v952_v58  ;;  %v659_v44 = vxor.u32 2147483648, %v653_v29  ;;  %v4141_v23 = vadd.s32 %v769_v52, %v765_v36  ;;  %vm657_vm7 = vcmp.lt.s32.totalorder %v656_v17, 2 }
 0x129   : > { %v3248_v39 = vadd.s32 4294967294, %v462_v28  ;;  %v776_v43 = vadd.s32 %v775_v10, %v766_v54  ;;  %vm658_vm6 = vcmp.eq.s32.totalorder %v656_v17, 0  ;;  %v663_v46 = vsel %vm661_vm14, %v662_v4, %v653_v29 }
 0x12a   : > { %v960_v41 = vmul.f32 %v959_v31, %v957_v53  ;;  %v660_v3 = vsel %vm658_vm6, %v645_v16, %v659_v44  ;;  %vm779_vm8 = vc.u32 %v4137_v32, %v4141_v23  ;;  %v5890_v0 = vand.u32 2147483647, %v3730_v20 }
 0x12b   : > { %vm3249_vm5 = vcmp.lt.s32.totalorder %v3248_v39, 0  ;;  %v780_v19 = vadd.s32 1, %v776_v43  ;;  %v664_v1 = vsel %vm657_vm7, %v660_v3, %v663_v46  ;;  %v450_v13 = vadd.s32 %v4076_v34, %v4062_v11 }
 0x12c   : > { %vm4147_vm9 = vcmp.le.f32.partialorder %v5890_v0, 0.7853982  ;;  %v961_v36 = vxor.u32 2147483648, %v960_v41  ;;  %v465_v52 = vsel %vm3249_vm5, 0, %v3248_v39  ;;  %v665_v15 = vsel %vm654_vm12, nan, %v664_v1 }
 0x12d   : > { %v466_v42 = vsub.s32 32, %v465_v52  ;;  %v470_v27 = vsub.s32 4294967266, %v465_v52  ;;  %v667_v18 = vmul.f32 %v665_v15, %v665_v15  ;;  %v467_v49 = vshll.u32 %v458_v30, %v465_v52 }
 0x12e   : > { %v962_v35 = vsel %vm841_vm15, %v961_v36, %v960_v41  ;;  %v781_v6 = vsel %vm779_vm8, %v780_v19, %v776_v43  ;;  %vm358_vm10 = vcmp.lt.s32.totalorder %v3665_v7, 0  ;;  %v963_v60 = vsub.s32 4, %v4059_v14 }
 0x12f   : > { %v4162_v57 = vsel %vm4147_vm9, %v3730_v20, %v962_v35  ;;  %v468_v62 = vshrl.u32 %v450_v13, %v466_v42  ;;  %v471_v50 = vadd.s32 127, %v470_v27  ;;  %v782_v11 = vadd.s32 %v781_v6, %v777_v25 }
 0x130   : > { %v679_v34 = vmul.f32 %v4157_v33, %v667_v18  ;;  %v967_v38 = vmul.f32 %v4162_v57, %v4162_v57  ;;  %v5893_v54 = vand.u32 2147483647, %v3665_v7  ;;  %v480_v53 = vsub.s32 4, %v4123_v51 }
 0x131   : > { %v469_v26 = vor.u32 %v468_v62, %v467_v49  ;;  %v472_v30 = vshll.u32 %v471_v50, 23  ;;  %v783_v37 = vadd.s32 536870912, %v782_v11  ;;  %v964_v43 = vsel %vm841_vm15, %v963_v60, %v4059_v14 }
 0x132   : > { %v4171_v12 = vadd.f32 %v679_v34, %v3654_v59  ;;  %v975_v40 = vmul.f32 -0.00019511016, %v967_v38  ;;  %v968_v58 = vmul.f32 -0.001358992, %v967_v38  ;;  %vm4181_vm12 = vcmp.le.f32.partialorder %v5893_v54, 0.7853982 }
 0x133   : > { %v473_v17 = vor.u32 4788187, %v472_v30  ;;  %v4173_v45 = vshrl.u32 %v783_v37, 30  ;;  %v476_v55 = vcvt.s32.f32 %v469_v26  ;;  %v481_v0 = vsel %vm358_vm10, %v480_v53, %v4123_v51 }
 0x134   : > { %v976_v9 = vadd.f32 0.008332121, %v975_v40  ;;  %1007 = vperm.xlu0 %3387, %v4171_v12   ;;  %v969_v47 = vadd.f32 0.041655596, %v968_v58  ;;  %v966_v36 = vsel %vm4147_vm9, 0, %v964_v43  ;;  %v778_v14 = vadd.s32 %v4141_v23, %v4137_v32 }
 0x135   : > { %v474_v56 = vand.u32 2147483647, %v473_v17  ;;  %v785_v25 = vshll.u32 %v4173_v45, 30  ;;  %v483_v35 = vsel %vm4181_vm12, 0, %v481_v0  ;;  %v983_v48 = vadd.s32 3, %v966_v36 }
 0x136   : > { %v977_v8 = vmul.f32 %v976_v9, %v967_v38  ;;  %v970_v10 = vmul.f32 %v969_v47, %v967_v38  ;;  %v500_v37 = vadd.s32 3, %v483_v35  ;;  %vm686_vm14 = vcmp.lt.s32.totalorder %v3672_v24, 0 }
 0x137   : > { %v477_v16 = vmul.f32 %v476_v55, %v474_v56  ;;  %v786_v63 = vsub.s32 %v782_v11, %v785_v25  ;;  %v984_v56 = vand.u32 3, %v983_v48  ;;  %vm499_vm7 = vweird.f32 %v3665_v7 }
 0x138   : > { %v978_v21 = vadd.f32 -0.16666654, %v977_v8  ;;  %v971_v1 = vadd.f32 -0.4999988, %v970_v10 }
 0x139   : > { %v478_v22 = vxor.u32 2147483648, %v477_v16  ;;  %vm787_vm13 = vcmp.lt.s32.totalorder %v786_v63, 0  ;;  %v788_v59 = vsub.s32 0, %v786_v63  ;;  %vm986_vm15 = vcmp.eq.s32.totalorder %v984_v56, 0 }
 0x13a   : > { %v979_v46 = vmul.f32 %v978_v21, %v967_v38  ;;  %v972_v62 = vmul.f32 %v971_v1, %v967_v38  ;;  %v501_v38 = vand.u32 3, %v500_v37  ;;  %v5896_v21 = vand.u32 2147483647, %v3672_v24  ;;  %v671_v1 = vpop.permute.xlu0 %670 }
 0x13b   : > { %v479_v4 = vsel %vm358_vm10, %v478_v22, %v477_v16  ;;  %v789_v28 = vsel %vm787_vm13, %v788_v59, %v786_v63  ;;  %vm989_vm9 = vcmp.eq.s32.totalorder %v984_v56, 2  ;;  %vm985_vm10 = vcmp.lt.s32.totalorder %v984_v56, 2 }
 0x13c   : > { %v482_v31 = vsel %vm4181_vm12, %v3665_v7, %v479_v4  ;;  %v790_v44 = vclz %v789_v28  ;;  %v980_v42 = vadd.f32 1.0, %v979_v46  ;;  %v973_v58 = vadd.f32 1.0, %v972_v62 }
 0x13d   : > { %v484_v39 = vmul.f32 %v482_v31, %v482_v31  ;;  %vm4208_vm6 = vcmp.le.f32.partialorder %v5896_v21, 0.7853982  ;;  %vm503_vm5 = vcmp.eq.s32.totalorder %v501_v38, 0  ;;  %vm506_vm8 = vcmp.eq.s32.totalorder %v501_v38, 2 }
 0x13e   : > { %v3254_v41 = vadd.s32 4294967294, %v790_v44  ;;  %v981_v30 = vmul.f32 %v980_v42, %v4162_v57  ;;  %v990_v59 = vxor.u32 2147483648, %v973_v58  ;;  %vm502_vm13 = vcmp.lt.s32.totalorder %v501_v38, 2 }
 0x13f   : > { %v485_v3 = vmul.f32 -0.001358992, %v484_v39  ;;  %v492_v19 = vmul.f32 -0.00019511016, %v484_v39  ;;  %v808_v46 = vsub.s32 4, %v4173_v45  ;;  %vm982_vm12 = vweird.f32 %v3730_v20 }
 0x140   : > { %vm3255_vm11 = vcmp.lt.s32.totalorder %v3254_v41, 0  ;;  %v987_v8 = vxor.u32 2147483648, %v981_v30  ;;  %v991_v53 = vsel %vm989_vm9, %v990_v59, %v981_v30  ;;  %vm5850_vm9 = vcmask 392192  }
 0x141   : > { %v486_v52 = vadd.f32 0.041655596, %v485_v3  ;;  %v493_v15 = vadd.f32 0.008332121, %v492_v19  ;;  %v793_v13 = vsel %vm3255_vm11, 0, %v3254_v41  ;;  %v809_v7 = vsel %vm686_vm14, %v808_v46, %v4173_v45 }
 0x142   : > { %v794_v27 = vsub.s32 32, %v793_v13  ;;  %v798_v18 = vsub.s32 4294967266, %v793_v13  ;;  %v795_v51 = vshll.u32 %v786_v63, %v793_v13  ;;  %v988_v29 = vsel %vm986_vm15, %v973_v58, %v987_v8 }
 0x143   : > { %v487_v49 = vmul.f32 %v486_v52, %v484_v39  ;;  %v494_v6 = vmul.f32 %v493_v15, %v484_v39 }
 0x144   : > { %v796_v50 = vshrl.u32 %v778_v14, %v794_v27  ;;  %v799_v11 = vadd.s32 127, %v798_v18  ;;  %v811_v18 = vsel %vm4208_vm6, 0, %v809_v7 }
 0x145   : > { %v488_v34 = vadd.f32 -0.4999988, %v487_v49  ;;  %v495_v26 = vadd.f32 -0.16666654, %v494_v6  ;;  %v828_v6 = vadd.s32 3, %v811_v18 }
 0x146   : > { %v797_v40 = vor.u32 %v796_v50, %v795_v51  ;;  %v800_v17 = vshll.u32 %v799_v11, 23 }
 0x147   : > { %v489_v32 = vmul.f32 %v488_v34, %v484_v39  ;;  %v496_v23 = vmul.f32 %v495_v26, %v484_v39  ;;  %v992_v39 = vsel %vm985_vm10, %v988_v29, %v991_v53  ;;  %v829_v34 = vand.u32 3, %v828_v6 }
 0x148   : > { %v801_v9 = vor.u32 4788187, %v800_v17  ;;  %v804_v63 = vcvt.s32.f32 %v797_v40  ;;  %v993_v0 = vsel %vm982_vm12, nan, %v992_v39 }
 0x149   : > { %v490_v55 = vadd.f32 1.0, %v489_v32  ;;  %v497_v25 = vadd.f32 1.0, %v496_v23  ;;  %v995_v27 = vmul.f32 %v993_v0, %v993_v0  ;;  %vm831_vm11 = vcmp.eq.s32.totalorder %v829_v34, 0 }
 0x14a   : > { %v802_v16 = vand.u32 2147483647, %v801_v9  ;;  %vm830_vm15 = vcmp.lt.s32.totalorder %v829_v34, 2  ;;  %v5900_v9 = vld [vmem:[#allocation5_spill] sm:$0xff] }
 0x14b   : > { %v498_v47 = vmul.f32 %v497_v25, %v482_v31  ;;  %v507_v22 = vxor.u32 2147483648, %v490_v55 }
 0x14c   : > { %v805_v57 = vmul.f32 %v804_v63, %v802_v16 }
 0x14d   : > { %v504_v60 = vxor.u32 2147483648, %v498_v47  ;;  %v508_v10 = vsel %vm506_vm8, %v507_v22, %v498_v47  ;;  %vm3263_vm8 = vmneg %vm270_vm2 }
 0x14e   : > { %v806_v4 = vxor.u32 2147483648, %v805_v57 }
 0x14f   : > { %v505_v28 = vsel %vm503_vm5, %v490_v55, %v504_v60 }
 0x150   : > { %v509_v31 = vsel %vm502_vm13, %v505_v28, %v508_v10  ;;  %v807_v44 = vsel %vm686_vm14, %v806_v4, %v805_v57  ;;  %vm834_vm14 = vcmp.eq.s32.totalorder %v829_v34, 2 }
 0x151   : > { %v510_v43 = vsel %vm499_vm7, nan, %v509_v31  ;;  %v810_v41 = vsel %vm4208_vm6, %v3672_v24, %v807_v44  ;;  %vm827_vm7 = vweird.f32 %v3672_v24  ;;  %vm5901_vm6 = vcmask 1022976  }
 0x152   : > { %v666_v3 = vmul.f32 %v510_v43, %v510_v43  ;;  %v812_v19 = vmul.f32 %v810_v41, %v810_v41  ;;  %vm5902_vm5 = vmmov %vm5901_vm6 }
 0x153   : > { %vm5907_vm13 = vmmov %vm5902_vm5 }
 0x154   : > { %v678_v36 = vmul.f32 %v671_v1, %v666_v3  ;;  %v813_v52 = vmul.f32 -0.001358992, %v812_v19  ;;  %v820_v15 = vmul.f32 -0.00019511016, %v812_v19  ;;  %vm5908_vm10 = vmmov %vm5902_vm5 }
 0x156   : > { %v4225_v13 = vadd.f32 %v678_v36, %v3661_v2  ;;  %v814_v42 = vadd.f32 0.041655596, %v813_v52  ;;  %v821_v14 = vadd.f32 0.008332121, %v820_v15  ;;  %v997_v2 = vmul.f32 %v995_v27, %v4157_v33 }
 0x157   : > { %v5899_v33 = vmov 127  }
 0x158   : > { %v815_v35 = vmul.f32 %v814_v42, %v812_v19  ;;  %v822_v20 = vmul.f32 %v821_v14, %v812_v19  ;;  %1010 = vrot.lane.b32.xlu1 %v4225_v13, %s3481_s11  ;;  %1002 = vperm.xlu2 %3391, %v4225_v13   ;;  %v4236_v48 = vadd.f32 %v997_v2, %v3711_v5  ;;  %v1032_v18 = vmul.f32 0.4432098, %v4225_v13 }
 0x159   : > { %1020 = vrot.lane.b32.xlu0 %v4225_v13, %s3482_s12 }
 0x15a   : > { %v816_v45 = vadd.f32 -0.4999988, %v815_v35  ;;  %v823_v49 = vadd.f32 -0.16666654, %v822_v20 }
 0x15c   : > { %v817_v62 = vmul.f32 %v816_v45, %v812_v19  ;;  %v824_v51 = vmul.f32 %v823_v49, %v812_v19 }
 0x15e   : > { %v818_v50 = vadd.f32 1.0, %v817_v62  ;;  %v825_v11 = vadd.f32 1.0, %v824_v51 }
 0x160   : > { %v826_v26 = vmul.f32 %v825_v11, %v810_v41  ;;  %v835_v30 = vxor.u32 2147483648, %v818_v50  ;;  %1022 = vrot.lane.b32.xlu1 %v4171_v12, %s3482_s12  ;;  %1012 = vrot.lane.b32.xlu2 %v4171_v12, %s3481_s11 }
 0x161   : > { %1084 = vrot.lane.b32.xlu0 %v4236_v48, %s3480_s10  ;;  %3393 = vset.pattern.permute.xlu2 %v5899_v33 }
 0x162   : > { %v832_v37 = vxor.u32 2147483648, %v826_v26  ;;  %v836_v40 = vsel %vm834_vm14, %v835_v30, %v826_v26 }
 0x164   : > { %v833_v5 = vsel %vm831_vm11, %v818_v50, %v832_v37 }
 0x165   : > { %v837_v17 = vsel %vm830_vm15, %v833_v5, %v836_v40 }
 0x166   : > { %v838_v32 = vsel %vm827_vm7, nan, %v837_v17 }
 0x167   : > { %v994_v23 = vmul.f32 %v838_v32, %v838_v32  ;;  %v1033_v32 = vmul.f32 0.4432098, %v4171_v12 }
 0x169   : > { %v996_v58 = vmul.f32 %v994_v23, %v671_v1 }
 0x16b   : > { %v4247_v56 = vadd.f32 %v996_v58, %v5900_v9 }
 0x16d   : > { %1092 = vrot.lane.b32.xlu1 %v4247_v56, %s3481_s11  ;;  %1082 = vrot.lane.b32.xlu2 %v4247_v56, %s3480_s10  ;;  %v1116_v50 = vmul.f32 0.4432098, %v4247_v56 }
 0x16e   : > { %1104 = vrot.lane.b32.xlu0 %v4247_v56, %s3482_s12 }
 0x175   : > { %1106 = vrot.lane.b32.xlu1 %v4236_v48, %s3482_s12  ;;  %1094 = vrot.lane.b32.xlu2 %v4236_v48, %s3481_s11 }
 0x176   : > { %1038 = vrot.lane.b32.xlu0 %v4171_v12, %s3483_s13 }
 0x17d   : > { %1050 = vperm.xlu1 %3392, %v4247_v56   ;;  %1036 = vrot.lane.b32.xlu2 %v4225_v13, %s3483_s13 }
 0x17e   : > { %1058 = vrot.lane.b32.xlu0 %v4225_v13, %s3484_s14 }
 0x185   : > { %1060 = vrot.lane.b32.xlu1 %v4171_v12, %s3484_s14  ;;  %1055 = vperm.xlu2 %3393, %v4236_v48  }
 0x186   : > { %1122 = vrot.lane.b32.xlu0 %v4236_v48, %s3483_s13  ;;  %3394 = vset.pattern.permute.xlu1 %v5877_v61 }
 0x18d   : > { %1070 = vrot.lane.b32.xlu1 %v4225_v13, %s3485_s15  ;;  %1120 = vrot.lane.b32.xlu2 %v4247_v56, %s3483_s13 }
 0x18e   : > { %1132 = vrot.lane.b32.xlu0 %v4247_v56, %s3484_s14  ;;  %3395 = vset.pattern.permute.xlu2 %v5877_v61 }
 0x195   : > { %1134 = vrot.lane.b32.xlu1 %v4236_v48, %s3484_s14  ;;  %1072 = vrot.lane.b32.xlu2 %v4171_v12, %s3485_s15 }
 0x1a6   : > { %v1008_v55 = vpop.permute.xlu0 %1007 }
 0x1b2   : > { %v1003_v24 = vpop.permute.xlu2 %1002 }
 0x1ba   : > { %v1013_v25 = vpop.permute.xlu2 %1012 }
 0x1bb   : > { %v1017_v52 = vsel %vm5854_vm1, %v1008_v55, %v1013_v25 }
 0x1bc   : > { %v1019_v45 = vmul.f32 0.009389464, %v1017_v52 }
 0x1c7   : > { %v1083_v16 = vpop.permute.xlu2 %1082 }
 0x1c8   : > { %v1088_v31 = vsel %vm5853_vm0, %v1003_v24, %v1083_v16 }
 0x1c9   : > { %v1090_v41 = vmul.f32 0.0020289666, %v1088_v31 }
 0x1ca   : > { %v1011_v8 = vpop.permute.xlu1 %1010 }
 0x1cb   : > { %v1021_v38 = vpop.permute.xlu0 %1020  ;;  %v1016_v44 = vsel %vm5854_vm1, %v1003_v24, %v1011_v8 }
 0x1cc   : > { %v1026_v10 = vsel %vm270_vm2, %v4225_v13, %v1021_v38  ;;  %v1018_v3 = vmul.f32 0.009389464, %v1016_v44 }
 0x1cd   : > { %v1028_v43 = vmul.f32 -0.057657376, %v1026_v10 }
 0x1cf   : > { %v1095_v22 = vpop.permute.xlu2 %1094  ;;  %v1030_v15 = vadd.f32 %v1028_v43, %v1018_v3 }
 0x1d0   : > { %v1099_v49 = vsel %vm5854_vm1, %v1008_v55, %v1095_v22 }
 0x1d1   : > { %v1034_v62 = vadd.f32 %v1032_v18, %v1030_v15  ;;  %v1101_v30 = vmul.f32 -0.025543464, %v1099_v49 }
 0x1d2   : > { %v1023_v63 = vpop.permute.xlu1 %1022 }
 0x1d3   : > { %v1085_v47 = vpop.permute.xlu0 %1084  ;;  %v1027_v19 = vsel %vm270_vm2, %v4171_v12, %v1023_v63 }
 0x1d4   : > { %v1029_v14 = vmul.f32 -0.057657376, %v1027_v19  ;;  %v1089_v27 = vsel %vm5853_vm0, %v1008_v55, %v1085_v47 }
 0x1d5   : > { %v1091_v51 = vmul.f32 0.0020289666, %v1089_v27 }
 0x1d6   : > { %v1031_v11 = vadd.f32 %v1029_v14, %v1019_v45  ;;  %v1193_v14 = vld [vmem:[%s5807_s2 + $0x8] sm:$0xff] }
 0x1d7   : > { %v1037_v60 = vpop.permute.xlu2 %1036 }
 0x1d8   : > { %v1042_v35 = vsel %vm5852_vm3, %v1037_v60, %v4247_v56  ;;  %v1035_v38 = vadd.f32 %v1033_v32, %v1031_v11  ;;  %v1117_v60 = vmul.f32 0.4432098, %v4236_v48 }
 0x1d9   : > { %v1044_v34 = vmul.f32 0.12857261, %v1042_v35 }
 0x1db   : > { %v1046_v8 = vadd.f32 %v1044_v34, %v1034_v62 }
 0x1df   : > { %v1093_v59 = vpop.permute.xlu1 %1092  ;;  %v4283_v29 = vpop.permute.xlu2 %1055 }
 0x1e0   : > { %v1105_v57 = vpop.permute.xlu0 %1104  ;;  %v1098_v53 = vsel %vm5854_vm1, %v1003_v24, %v1093_v59 }
 0x1e1   : > { %v1110_v39 = vsel %vm270_vm2, %v4225_v13, %v1105_v57  ;;  %v1100_v46 = vmul.f32 -0.025543464, %v1098_v53 }
 0x1e2   : > { %v1112_v1 = vmul.f32 0.12857261, %v1110_v39 }
 0x1e3   : > { %v1102_v7 = vadd.f32 %v1100_v46, %v1090_v41 }
 0x1e5   : > { %v1114_v20 = vadd.f32 %v1112_v1, %v1102_v7 }
 0x1e7   : > { %v1107_v21 = vpop.permute.xlu1 %1106  ;;  %v1121_v42 = vpop.permute.xlu2 %1120  ;;  %v1118_v5 = vadd.f32 %v1116_v50, %v1114_v20  ;;  %v3326_v20 = vld [vmem:[%s5806_s1] sm:$0xff]  ;;  %v3413_v50 = vld [vmem:[%s3582_s9 + $0x8] sm:$0xff] }
 0x1e8   : > { %v1039_v54 = vpop.permute.xlu0 %1038  ;;  %v1111_v2 = vsel %vm270_vm2, %v4171_v12, %v1107_v21  ;;  %v1126_v6 = vsel %vm5852_vm3, %v1121_v42, %v4247_v56  ;;  %v1103_v56 = vadd.f32 %v1101_v30, %v1091_v51  ;;  %v3267_v30 = vld [vmem:[%s5808_s3 + $0x18] sm:$0xff] }
 0x1e9   : > { %v1043_v13 = vsel %vm5852_vm3, %v1039_v54, %v4236_v48  ;;  %v1113_v37 = vmul.f32 0.12857261, %v1111_v2  ;;  %v1128_v40 = vmul.f32 -0.057657376, %v1126_v6  ;;  %v3412_v2 = vld [vmem:[%s3582_s9] sm:$0xff]  ;;  %s3174_s9 = scalar_lea.hbm %s5810_s5, %s3329_s17 }
 0x1ea   : > { %v1045_v24 = vmul.f32 0.12857261, %v1043_v13 }
 0x1eb   : > { %v1115_v47 = vadd.f32 %v1113_v37, %v1103_v56  ;;  %v1130_v22 = vadd.f32 %v1128_v40, %v1118_v5  ;;  %v3268_v37 = vld [vmem:[%s5809_s4 + $0x10] sm:$0xff]  ;;  %v3269_v5 = vld [vmem:[%s5809_s4 + $0x18] sm:$0xff] }
 0x1ec   : > { %v1047_v21 = vadd.f32 %v1045_v24, %v1035_v38 }
 0x1ed   : > { %v1119_v31 = vadd.f32 %v1117_v60, %v1115_v47 }
 0x1ef   : > { %v1051_v4 = vpop.permute.xlu1 %1050  ;;  %v1073_v12 = vpop.permute.xlu2 %1072 }
 0x1f0   : > { %v1059_v28 = vpop.permute.xlu0 %1058 }
 0x1f1   : > { %v1064_v26 = vsel %vm5851_vm4, %v1059_v28, %v1051_v4 }
 0x1f2   : > { %v1066_v55 = vmul.f32 -0.025543464, %v1064_v26  ;;  %v3266_v26 = vld [vmem:[%s5808_s3 + $0x10] sm:$0xff] }
 0x1f4   : > { %v1068_v54 = vadd.f32 %v1066_v55, %v1046_v8 }
 0x1f7   : > { %v1061_v0 = vpop.permute.xlu1 %1060 }
 0x1f8   : > { %v1123_v36 = vpop.permute.xlu0 %1122  ;;  %v1065_v23 = vsel %vm5851_vm4, %v1061_v0, %v4283_v29 }
 0x1f9   : > { %v1127_v16 = vsel %vm5852_vm3, %v1123_v36, %v4236_v48  ;;  %v1067_v59 = vmul.f32 -0.025543464, %v1065_v23 }
 0x1fa   : > { %v1129_v28 = vmul.f32 -0.057657376, %v1127_v16 }
 0x1fb   : > { %v1069_v53 = vadd.f32 %v1067_v59, %v1047_v21 }
 0x1fc   : > { %v1131_v41 = vadd.f32 %v1129_v28, %v1119_v31 }
 0x1ff   : > { %v1071_v17 = vpop.permute.xlu1 %1070 }
 0x200   : > { %v1076_v58 = vsel %vm5901_vm6, %v1071_v17, %v1051_v4  ;;  %v1133_v9 = vpop.permute.xlu0 %1132 }
 0x201   : > { %v1138_v25 = vsel %vm5851_vm4, %v1133_v9, %v1051_v4  ;;  %v1078_v57 = vmul.f32 0.0020289666, %v1076_v58  ;;  %v1077_v4 = vsel %vm5902_vm5, %v1073_v12, %v4283_v29 }
 0x202   : > { %v1140_v63 = vmul.f32 0.009389464, %v1138_v25  ;;  %v1079_v46 = vmul.f32 0.0020289666, %v1077_v4 }
 0x203   : > { %v1080_v44 = vadd.f32 %v1078_v57, %v1068_v54 }
 0x204   : > { %v1142_v10 = vadd.f32 %v1140_v63, %v1130_v22  ;;  %v1081_v1 = vadd.f32 %v1079_v46, %v1069_v53 }
 0x206   : > { %v1144_v3 = vadd.f32 %v1142_v10, %v1080_v44 }
 0x207   : > { %v1135_v39 = vpop.permute.xlu1 %1134 }
 0x208   : > { %v1139_v43 = vsel %vm5851_vm4, %v1135_v39, %v4283_v29  ;;  %v1146_v36 = vpack.c.bf16 %v1144_v3, %v1144_v3  ;;  %v1192_v29 = vld [vmem:[%s5807_s2] sm:$0xff] }
 0x209   : > { %v1141_v19 = vmul.f32 0.009389464, %v1139_v43  ;;  %1196 = vperm.xlu1 %3394, %v1192_v29  }
 0x20a   : > { %v1150_v15 = vunpack.c.l.b16 %v1146_v36 }
 0x20b   : > { %v1143_v48 = vadd.f32 %v1141_v19, %v1131_v41 }
 0x20d   : > { %v1145_v0 = vadd.f32 %v1143_v48, %v1081_v1 }
 0x20f   : > { %v1147_v52 = vpack.c.bf16 %v1145_v0, %v1145_v0 }
 0x211   : > { %v1151_v7 = vunpack.c.l.b16 %v1147_v52  ;;  %3396 = vset.pattern.permute.xlu1 %v5899_v33 }
 0x213   : > { %v1152_v42 = vpack.c.b16 %v1151_v7, %v1150_v15 }
 0x215   : > { %1153 = vrot.lane.b32.xlu0 %v1152_v42, %s3482_s12  ;;  %1159 = vrot.lane.b32.xlu2 %v1152_v42, %s3483_s13 }
 0x21d   : > { %1201 = vperm.xlu2 %3395, %v1193_v14  }
 0x225   : > { %3398 = vset.pattern.permute.xlu2 %v5899_v33 }
 0x26f   : > { %v1160_v27 = vpop.permute.xlu2 %1159 }
 0x270   : > { %v1162_v18 = vsel %vm5852_vm3, %v1160_v27, 0 }
 0x271   : > { %1181 = vmatpush.bf16.msra.mxu0 %v1162_v18 }
 0x275   : > { %1182 = vmatpush.bf16.msra.mxu0 %v1152_v42 }
 0x277   : > { %v1202_v34 = vpop.permute.xlu2 %1201 }
 0x27b   : > { %v1197_v49 = vpop.permute.xlu1 %1196 }
 0x287   : > { %v1154_v35 = vpop.permute.xlu0 %1153 }
 0x288   : > { %3264 = vmatpush.bf16.msk.msra.mxu0 %vm3263_vm8, %v1154_v35 }
 0x28b   : > { %3265 = vmatmul.msk.bf16.vlgmr.msra.gmra.mxu0 %vm5850_vm9, %v3326_v20 }
 0x308   : > { %v1185_v45 = vpop.f32.mrf.mxu0 }
 0x309   : > { %v1190_v6 = vadd.f32 %v3412_v2, %v1185_v45 }
 0x30b   : > { %v4337_v62 = vadd.f32 %v1197_v49, %v1190_v6 }
 0x30d   : > { %5903 = vst [vmem:[#allocation5_spill] sm:$0xff] %v4337_v62  ;;  %1232 = vrot.lane.b32.xlu1 %v4337_v62, %s3481_s11  ;;  %1222 = vrot.lane.b32.xlu2 %v4337_v62, %s3480_s10  ;;  %v1256_v43 = vmul.f32 0.8864196, %v4337_v62 }
 0x30e   : > { %1214 = vperm.xlu0 %3387, %v4337_v62  }
 0x310   : > { %v1187_v51 = vpop.f32.mrf.mxu0 }
 0x311   : > { %v1191_v11 = vadd.f32 %v3413_v50, %v1187_v51 }
 0x313   : > { %v4350_v13 = vadd.f32 %v1202_v34, %v1191_v11 }
 0x315   : > { %1273 = vperm.xlu1 %3396, %v4337_v62   ;;  %1260 = vrot.lane.b32.xlu2 %v4337_v62, %s3483_s13  ;;  %5904 = vst [vmem:[#allocation6_spill] sm:$0xff] %v4350_v13  ;;  %v1257_v1 = vmul.f32 0.8864196, %v4350_v13 }
 0x316   : > { %1244 = vrot.lane.b32.xlu0 %v4337_v62, %s3482_s12 }
 0x31d   : > { %3397 = vset.pattern.permute.xlu1 %v5877_v61  ;;  %1308 = vrot.lane.b32.xlu2 %v4337_v62, %s3485_s15 }
 0x31e   : > { %1280 = vrot.lane.b32.xlu0 %v4337_v62, %s3484_s14  ;;  %1219 = vperm.xlu1 %3397, %v4350_v13  }
 0x325   : > { %1234 = vrot.lane.b32.xlu2 %v4350_v13, %s3481_s11 }
 0x326   : > { %1224 = vrot.lane.b32.xlu0 %v4350_v13, %s3480_s10  ;;  %1246 = vrot.lane.b32.xlu1 %v4350_v13, %s3482_s12 }
 0x32d   : > { %1277 = vperm.xlu2 %3398, %v4350_v13  }
 0x32e   : > { %1262 = vrot.lane.b32.xlu0 %v4350_v13, %s3483_s13  ;;  %1282 = vrot.lane.b32.xlu1 %v4350_v13, %s3484_s14 }
 0x335   : > { %3399 = vset.pattern.permute.xlu2 %v5877_v61 }
 0x336   : > { %1310 = vrot.lane.b32.xlu0 %v4350_v13, %s3485_s15  ;;  %1322 = vperm.xlu1 %3397, %v3266_v26  }
 0x337   : > { %1327 = vperm.xlu2 %3399, %v3267_v30  }
 0x33e   : > { %1646 = vperm.xlu0 %3387, %v3268_v37   ;;  %1651 = vperm.xlu1 %3397, %v3269_v5  }
 0x346   : > { %3400 = vset.pattern.permute.xlu1 %v5899_v33 }
 0x367   : > { %v1223_v40 = vpop.permute.xlu2 %1222 }
 0x36f   : > { %v1261_v17 = vpop.permute.xlu2 %1260 }
 0x370   : > { %v1266_v41 = vsel %vm5852_vm3, %v1261_v17, %v4337_v62 }
 0x371   : > { %v1268_v27 = vmul.f32 -0.11531475, %v1266_v41 }
 0x377   : > { %v4387_v56 = vpop.permute.xlu2 %1308 }
 0x37f   : > { %v1233_v32 = vpop.permute.xlu1 %1232  ;;  %v1235_v25 = vpop.permute.xlu2 %1234 }
 0x380   : > { %v1215_v23 = vpop.permute.xlu0 %1214 }
 0x381   : > { %v1228_v8 = vsel %vm5853_vm0, %v1215_v23, %v1223_v40  ;;  %v1238_v38 = vsel %vm5854_vm1, %v1215_v23, %v1233_v32 }
 0x382   : > { %v1230_v63 = vmul.f32 0.004057933, %v1228_v8  ;;  %v1240_v47 = vmul.f32 -0.05108693, %v1238_v38  ;;  %v1292_v20 = vmul.f32 0.018778928, %v1238_v38 }
 0x384   : > { %v1242_v4 = vadd.f32 %v1240_v47, %v1230_v63 }
 0x387   : > { %v4385_v58 = vpop.permute.xlu1 %1273  ;;  %v1278_v44 = vpop.permute.xlu2 %1277 }
 0x388   : > { %v1245_v9 = vpop.permute.xlu0 %1244 }
 0x389   : > { %v1250_v16 = vsel %vm270_vm2, %v4337_v62, %v1245_v9 }
 0x38a   : > { %v1252_v57 = vmul.f32 0.25714523, %v1250_v16  ;;  %v1294_v7 = vmul.f32 -0.11531475, %v1250_v16 }
 0x38c   : > { %v1254_v31 = vadd.f32 %v1252_v57, %v1242_v4  ;;  %v1296_v51 = vadd.f32 %v1294_v7, %v1292_v20 }
 0x38e   : > { %v1258_v0 = vadd.f32 %v1256_v43, %v1254_v31  ;;  %v1298_v23 = vadd.f32 %v1296_v51, %v1256_v43 }
 0x390   : > { %v1281_v24 = vpop.permute.xlu0 %1280  ;;  %v1220_v55 = vpop.permute.xlu1 %1219  ;;  %v1270_v6 = vadd.f32 %v1268_v27, %v1258_v0 }
 0x391   : > { %v1239_v22 = vsel %vm5854_vm1, %v1220_v55, %v1235_v25  ;;  %v1286_v3 = vsel %vm5851_vm4, %v1281_v24, %v4385_v58  ;;  %v1328_v2 = vpop.permute.xlu2 %1327  ;;  %v1300_v25 = vmul.f32 0.25714523, %v1266_v41 }
 0x392   : > { %v1241_v54 = vmul.f32 -0.05108693, %v1239_v22  ;;  %v1293_v36 = vmul.f32 0.018778928, %v1239_v22  ;;  %v1288_v18 = vmul.f32 0.018778928, %v1286_v3 }
 0x393   : > { %v1304_v8 = vmul.f32 -0.05108693, %v1286_v3  ;;  %v1302_v47 = vadd.f32 %v1300_v25, %v1298_v23 }
 0x394   : > { %v4408_v34 = vadd.f32 %v1288_v18, %v1270_v6  ;;  %v5914_v18 = vmov 920167782  }
 0x396   : > { %5906 = vst [vmem:[#allocation8_spill] sm:$0xff] %v4408_v34 }
 0x398   : > { %v1225_v12 = vpop.permute.xlu0 %1224  ;;  %v1247_v59 = vpop.permute.xlu1 %1246 }
 0x399   : > { %v1229_v60 = vsel %vm5853_vm0, %v1220_v55, %v1225_v12  ;;  %v1251_v21 = vsel %vm270_vm2, %v4350_v13, %v1247_v59  ;;  %v1314_v59 = vsel %vm5908_vm10, %v4387_v56, %v4385_v58 }
 0x39a   : > { %v1231_v28 = vmul.f32 0.004057933, %v1229_v60  ;;  %v1253_v10 = vmul.f32 0.25714523, %v1251_v21  ;;  %v1295_v46 = vmul.f32 -0.11531475, %v1251_v21 }
 0x39b   : > { %v1316_v4 = vmul.f32 0.004057933, %v1314_v59 }
 0x39c   : > { %v1243_v53 = vadd.f32 %v1241_v54, %v1231_v28  ;;  %v1297_v35 = vadd.f32 %v1295_v46, %v1293_v36  ;;  %v1306_v54 = vadd.f32 %v1304_v8, %v1302_v47  ;;  %v5911_v36 = vmov 2475754826  }
 0x39e   : > { %v1255_v39 = vadd.f32 %v1253_v10, %v1243_v53  ;;  %v1299_v11 = vadd.f32 %v1297_v35, %v1257_v1 }
 0x3a0   : > { %v1263_v19 = vpop.permute.xlu0 %1262  ;;  %v1283_v48 = vpop.permute.xlu1 %1282  ;;  %v1259_v42 = vadd.f32 %v1257_v1, %v1255_v39  ;;  %v4433_v39 = vadd.f32 %v1316_v4, %v1306_v54 }
 0x3a1   : > { %v1267_v52 = vsel %vm5852_vm3, %v1263_v19, %v4350_v13  ;;  %v1287_v15 = vsel %vm5851_vm4, %v1283_v48, %v1278_v44 }
 0x3a2   : > { %v1269_v29 = vmul.f32 -0.11531475, %v1267_v52  ;;  %v1289_v14 = vmul.f32 0.018778928, %v1287_v15  ;;  %v1301_v49 = vmul.f32 0.25714523, %v1267_v52 }
 0x3a3   : > { %v1305_v40 = vmul.f32 -0.05108693, %v1287_v15  ;;  %5910 = vst [vmem:[#allocation10_spill] sm:$0xff] %v4433_v39  ;;  %v5912_v15 = vmov 2131351028  }
 0x3a4   : > { %v1271_v45 = vadd.f32 %v1269_v29, %v1259_v42  ;;  %v1303_v5 = vadd.f32 %v1301_v49, %v1299_v11  ;;  %v5913_v29 = vmov 2102212464  }
 0x3a6   : > { %v4406_v50 = vadd.f32 %v1289_v14, %v1271_v45  ;;  %v1307_v16 = vadd.f32 %v1305_v40, %v1303_v5  ;;  %v5915_v45 = vmov 1326507024  }
 0x3a8   : > { %5905 = vst [vmem:[#allocation7_spill] sm:$0xff] %v4406_v50  ;;  %v4411_v26 = vmul.f32 %v1328_v2, %v4406_v50  ;;  %v1311_v30 = vpop.permute.xlu0 %1310  ;;  %v1323_v37 = vpop.permute.xlu1 %1322 }
 0x3a9   : > { %v1315_v17 = vsel %vm5907_vm13, %v1311_v30, %v1278_v44  ;;  %v4415_v32 = vmul.f32 %v1323_v37, %v4408_v34  ;;  %v4436_v3 = vmul.f32 %v1323_v37, %v4433_v39 }
 0x3aa   : > { %v1490_v9 = vand.u32 2139095040, %v4411_v26  ;;  %v1317_v24 = vmul.f32 0.004057933, %v1315_v17  ;;  %v5835_v22 = vand.u32 2147483647, %v4411_v26 }
 0x3ab   : > { %v1335_v55 = vand.u32 2139095040, %v4415_v32  ;;  %v5837_v60 = vand.u32 2147483647, %v4415_v32  ;;  %v1663_v40 = vand.u32 2139095040, %v4436_v3  ;;  %v5916_v17 = vmov 683565275  }
 0x3ac   : > { %v1491_v38 = vshrl.u32 %v1490_v9, 23  ;;  %v4423_v57 = vadd.f32 %v1317_v24, %v1307_v16  ;;  %v1494_v53 = vand.u32 8388607, %v5835_v22  ;;  %v5836_v16 = vand.u32 2147483647, %v4436_v3 }
 0x3ad   : > { %v1336_v63 = vshrl.u32 %v1335_v55, 23  ;;  %v1339_v58 = vand.u32 8388607, %v5837_v60 }
 0x3ae   : > { %v3273_v12 = vadd.s32 4294967169, %v1491_v38  ;;  %5909 = vst [vmem:[#allocation9_spill] sm:$0xff] %v4423_v57  ;;  %v4429_v44 = vmul.f32 %v1328_v2, %v4423_v57  ;;  %v1495_v46 = vor.u32 8388608, %v1494_v53  ;;  %v1664_v53 = vshrl.u32 %v1663_v40, 23 }
 0x3af   : > { %v3270_v21 = vadd.s32 4294967169, %v1336_v63  ;;  %v1340_v48 = vor.u32 8388608, %v1339_v58 }
 0x3b0   : > { %v1497_v28 = vadd.s32 1, %v3273_v12  ;;  %v1818_v1 = vand.u32 2139095040, %v4429_v44  ;;  %v4452_v11 = vshll.u32 %v1495_v46, 8  ;;  %v4496_v46 = vand.u32 8388607, %v5836_v16 }
 0x3b1   : > { %v1342_v10 = vadd.s32 1, %v3270_v21  ;;  %v4454_v5 = vshll.u32 %v1340_v48, 8 }
 0x3b2   : > { %vm1498_vm12 = vcmp.gt.s32.totalorder %v1497_v28, 0  ;;  %v1819_v9 = vshrl.u32 %v1818_v1, 23  ;;  %v4471_v63 = vand.u32 65535, %v4452_v11  ;;  %v4474_v47 = vshrl.u32 %v4452_v11, 16 }
 0x3b3   : > { %v1499_v31 = vsel %vm1498_vm12, %v1497_v28, 0  ;;  %vm1343_vm11 = vcmp.gt.s32.totalorder %v1342_v10, 0  ;;  %v4483_v21 = vand.u32 65535, %v4454_v5  ;;  %v4486_v54 = vshrl.u32 %v4454_v5, 16 }
 0x3b4   : > { %v1501_v56 = vand.u32 31, %v1499_v31  ;;  %v1344_v43 = vsel %vm1343_vm11, %v1342_v10, 0  ;;  %v4438_v19 = vshrl.u32 %v1499_v31, 5  ;;  %v3279_v28 = vadd.s32 4294967169, %v1819_v9 }
 0x3b5   : > { %v1346_v0 = vand.u32 31, %v1344_v43  ;;  %v1345_v10 = vshrl.u32 %v1344_v43, 5 }
 0x3b6   : > { %v1502_v41 = vsub.s32 32, %v1501_v56  ;;  %v1507_v52 = vshll.u32 %v5911_v36, %v1501_v56  ;;  %v1510_v42 = vshll.u32 %v5912_v15, %v1501_v56  ;;  %v1513_v27 = vshll.u32 %v5913_v29, %v1501_v56 }
 0x3b7   : > { %v1516_v20 = vshll.u32 %v5914_v18, %v1501_v56  ;;  %v1504_v23 = vshll.u32 %v5916_v17, %v1501_v56  ;;  %vm1519_vm14 = vcmp.lt.s32.totalorder %v4438_v19, 1  ;;  %vm1522_vm15 = vcmp.lt.s32.totalorder %v4438_v19, 4 }
 0x3b8   : > { %v1508_v7 = vshrl.u32 %v5912_v15, %v1502_v41  ;;  %v1511_v14 = vshrl.u32 %v5913_v29, %v1502_v41  ;;  %v1514_v35 = vshrl.u32 %v5914_v18, %v1502_v41  ;;  %v1517_v49 = vshrl.u32 %v5915_v45, %v1502_v41 }
 0x3b9   : > { %v1505_v2 = vshrl.u32 %v5911_v36, %v1502_v41  ;;  %vm1521_vm7 = vcmp.lt.s32.totalorder %v4438_v19, 3  ;;  %v1347_v25 = vsub.s32 32, %v1346_v0  ;;  %vm1520_vm6 = vcmp.lt.s32.totalorder %v4438_v19, 2 }
 0x3ba   : > { %v4450_v6 = vor.u32 %v1508_v7, %v1507_v52  ;;  %v1512_v51 = vor.u32 %v1511_v14, %v1510_v42  ;;  %v1515_v30 = vor.u32 %v1514_v35, %v1513_v27  ;;  %v1518_v37 = vor.u32 %v1517_v49, %v1516_v20 }
 0x3bb   : > { %v1506_v8 = vor.u32 %v1505_v2, %v1504_v23  ;;  %v1350_v4 = vshrl.u32 %v5911_v36, %v1347_v25  ;;  %v1503_v31 = vshrl.u32 %v5916_v17, %v1502_v41  ;;  %v1349_v56 = vshll.u32 %v5916_v17, %v1346_v0 }
 0x3bc   : > { %v1531_v24 = vsel %vm1519_vm14, %v4450_v6, %v1512_v51  ;;  %v1532_v55 = vsel %vm1522_vm15, %v1518_v37, 1326507024  ;;  %v1528_v12 = vsel %vm1522_vm15, %v1515_v30, 920167782  ;;  %v1352_v48 = vshll.u32 %v5911_v36, %v1346_v0 }
 0x3bd   : > { %v1533_v38 = vsel %vm1521_vm7, %v1515_v30, %v1532_v55  ;;  %v1527_v58 = vsel %vm1519_vm14, %v1506_v8, %v4450_v6  ;;  %v1529_v1 = vsel %vm1521_vm7, %v1512_v51, %v1528_v12  ;;  %v1353_v52 = vshrl.u32 %v5912_v15, %v1347_v25 }
 0x3be   : > { %v4480_v59 = vsel %vm1520_vm6, %v1531_v24, %v1533_v38  ;;  %v1351_v41 = vor.u32 %v1350_v4, %v1349_v56  ;;  %v1355_v7 = vshll.u32 %v5912_v15, %v1346_v0  ;;  %v1356_v42 = vshrl.u32 %v5913_v29, %v1347_v25 }
 0x3bf   : > { %v1539_v43 = vshrl.u32 %v4480_v59, 16  ;;  %v1358_v14 = vshll.u32 %v5913_v29, %v1346_v0  ;;  %v1354_v27 = vor.u32 %v1353_v52, %v1352_v48  ;;  %v1359_v35 = vshrl.u32 %v5914_v18, %v1347_v25 }
 0x3c0   : > { %v1361_v20 = vshll.u32 %v5914_v18, %v1346_v0  ;;  %v1362_v49 = vshrl.u32 %v5915_v45, %v1347_v25  ;;  %v1524_v2 = vsel %vm1522_vm15, %v1512_v51, 2102212464  ;;  %v4513_v30 = vsel %vm1520_vm6, %v1527_v58, %v1529_v1 }
 0x3c1   : > { %v5839_v37 = vand.u32 65535, %v4480_v59  ;;  %v1357_v40 = vor.u32 %v1356_v42, %v1355_v7  ;;  %v1348_v23 = vshrl.u32 %v5916_v17, %v1347_v25  ;;  %v1360_v9 = vor.u32 %v1359_v35, %v1358_v14 }
 0x3c2   : > { %v1363_v24 = vor.u32 %v1362_v49, %v1361_v20  ;;  %vm1364_vm5 = vcmp.lt.s32.totalorder %v1345_v10, 1  ;;  %v4518_v55 = vmul.u32 %v1539_v43, %v4471_v63  ;;  %vm1366_vm8 = vcmp.lt.s32.totalorder %v1345_v10, 3 }
 0x3c3   : > { %vm1367_vm13 = vcmp.lt.s32.totalorder %v1345_v10, 4  ;;  %v1376_v0 = vsel %vm1364_vm5, %v1354_v27, %v1357_v40  ;;  %v1372_v51 = vsel %vm1364_vm5, %v1351_v41, %v1354_v27  ;;  %vm1365_vm10 = vcmp.lt.s32.totalorder %v1345_v10, 2 }
 0x3c4   : > { %v1369_v38 = vsel %vm1367_vm13, %v1357_v40, 2102212464  ;;  %v1373_v12 = vsel %vm1367_vm13, %v1360_v9, 920167782  ;;  %v1377_v4 = vsel %vm1367_vm13, %v1363_v24, 1326507024  ;;  %v1368_v52 = vsel %vm1364_vm5, %v1348_v23, %v1351_v41 }
 0x3c5   : > { %v1374_v58 = vsel %vm1366_vm8, %v1357_v40, %v1373_v12  ;;  %v1378_v56 = vsel %vm1366_vm8, %v1360_v9, %v1377_v4  ;;  %v3276_v1 = vadd.s32 4294967169, %v1664_v53  ;;  %v5838_v48 = vshrl.u32 %v4513_v30, 16 }
 0x3c6   : > { %v4521_v25 = vadd.s32 1, %v3279_v28  ;;  %v1379_v7 = vsel %vm1365_vm10, %v1376_v0, %v1378_v56  ;;  %v1370_v42 = vsel %vm1366_vm8, %v1354_v27, %v1369_v38  ;;  %v4525_v14 = vsel %vm1365_vm10, %v1372_v51, %v1374_v58 }
 0x3c7   : > { %v1383_v35 = vand.u32 65535, %v1379_v7  ;;  %v1384_v20 = vshrl.u32 %v1379_v7, 16  ;;  %v4529_v49 = vsel %vm1519_vm14, %v1503_v31, %v1506_v8  ;;  %v4534_v53 = vsel %vm1521_vm7, %v4450_v6, %v1524_v2 }
 0x3c8   : > { %v5840_v28 = vshll.u32 %v4518_v55, 16  ;;  %v1670_v41 = vadd.s32 1, %v3276_v1  ;;  %v4540_v27 = vmul.u32 %v5839_v37, %v4471_v63  ;;  %v1668_v8 = vor.u32 8388608, %v4496_v46 }
 0x3c9   : > { %v4544_v23 = vmul.u32 %v1384_v20, %v4483_v21  ;;  %v4548_v31 = vmul.u32 %v1539_v43, %v4474_v47  ;;  %v4551_v6 = vsel %vm1365_vm10, %v1368_v52, %v1370_v42  ;;  %v1406_v2 = vshrl.u32 %v4525_v14, 16 }
 0x3ca   : > { %vm1671_vm12 = vcmp.gt.s32.totalorder %v1670_v41, 0  ;;  %v4557_v9 = vmul.u32 %v5838_v48, %v4471_v63  ;;  %v4561_v38 = vmul.u32 %v1383_v35, %v4486_v54  ;;  %v4566_v10 = vadd.s32 %v5840_v28, %v4540_v27 }
 0x3cb   : > { %v1389_v24 = vshll.u32 %v4544_v23, 16  ;;  %v1672_v0 = vsel %vm1671_vm12, %v1670_v41, 0  ;;  %v1385_v46 = vmul.u32 %v1383_v35, %v4483_v21  ;;  %v1405_v43 = vand.u32 65535, %v4525_v14 }
 0x3cc   : > { %v1674_v51 = vand.u32 31, %v1672_v0  ;;  %v1388_v12 = vmul.u32 %v1384_v20, %v4486_v54  ;;  %v4573_v58 = vshrl.u32 %v1672_v0, 5  ;;  %v4575_v56 = vshll.u32 %v1668_v8, 8 }
 0x3cd   : > { %vm4577_vm11 = vc.u32 %v1385_v46, %v1389_v24  ;;  %v1395_v52 = vadd.s32 %v1389_v24, %v1385_v46  ;;  %v4582_v7 = vmul.u32 %v1406_v2, %v4483_v21  ;;  %v1391_v41 = vshll.u32 %v4561_v38, 16 }
 0x3ce   : > { %v1675_v42 = vsub.s32 32, %v1674_v51  ;;  %v1677_v14 = vshll.u32 %v5916_v17, %v1674_v51  ;;  %v1680_v35 = vshll.u32 %v5911_v36, %v1674_v51  ;;  %v1683_v20 = vshll.u32 %v5912_v15, %v1674_v51 }
 0x3cf   : > { %v1686_v24 = vshll.u32 %v5913_v29, %v1674_v51  ;;  %v1689_v16 = vshll.u32 %v5914_v18, %v1674_v51  ;;  %vm1692_vm14 = vcmp.lt.s32.totalorder %v4573_v58, 1  ;;  %v1394_v37 = vsel %vm4577_vm11, 1, %v5877_v61 }
 0x3d0   : > { %v1678_v8 = vshrl.u32 %v5911_v36, %v1675_v42  ;;  %v1681_v0 = vshrl.u32 %v5912_v15, %v1675_v42  ;;  %v1684_v22 = vshrl.u32 %v5913_v29, %v1675_v42  ;;  %v1687_v46 = vshrl.u32 %v5914_v18, %v1675_v42 }
 0x3d1   : > { %v1690_v60 = vshrl.u32 %v5915_v45, %v1675_v42  ;;  %v1396_v62 = vadd.s32 %v1394_v37, %v1388_v12  ;;  %vm1397_vm15 = vc.u32 %v1395_v52, %v1391_v41  ;;  %v1410_v57 = vmul.u32 %v1406_v2, %v4486_v54 }
 0x3d2   : > { %v4596_v48 = vor.u32 %v1678_v8, %v1677_v14  ;;  %v4598_v40 = vor.u32 %v1681_v0, %v1680_v35  ;;  %v1685_v4 = vor.u32 %v1684_v22, %v1683_v20  ;;  %v1688_v28 = vor.u32 %v1687_v46, %v1686_v24 }
 0x3d3   : > { %v1691_v13 = vor.u32 %v1690_v60, %v1689_v16  ;;  %vm1695_vm7 = vcmp.lt.s32.totalorder %v4573_v58, 4  ;;  %vm1694_vm5 = vcmp.lt.s32.totalorder %v4573_v58, 3  ;;  %v1398_v37 = vsel %vm1397_vm15, 1, %v5877_v61 }
 0x3d4   : > { %v1700_v51 = vsel %vm1692_vm14, %v4596_v48, %v4598_v40  ;;  %v1704_v22 = vsel %vm1692_vm14, %v4598_v40, %v1685_v4  ;;  %v1701_v60 = vsel %vm1695_vm7, %v1688_v28, 920167782  ;;  %vm1693_vm8 = vcmp.lt.s32.totalorder %v4573_v58, 2 }
 0x3d5   : > { %v1705_v16 = vsel %vm1695_vm7, %v1691_v13, 1326507024  ;;  %v1702_v2 = vsel %vm1694_vm5, %v1685_v4, %v1701_v60  ;;  %v1409_v1 = vmul.u32 %v1405_v43, %v4486_v54  ;;  %v1400_v35 = vadd.s32 %v1398_v37, %v1396_v62 }
 0x3d6   : > { %v1706_v12 = vsel %vm1694_vm5, %v1688_v28, %v1705_v16  ;;  %v1703_v52 = vsel %vm1693_vm8, %v1700_v51, %v1702_v2  ;;  %v1411_v13 = vshll.u32 %v4582_v7, 16  ;;  %v1709_v20 = vand.u32 65535, %v4575_v56 }
 0x3d7   : > { %v1707_v14 = vsel %vm1693_vm8, %v1704_v22, %v1706_v12  ;;  %v1710_v41 = vshrl.u32 %v4575_v56, 16  ;;  %v1734_v24 = vshrl.u32 %v1703_v52, 16  ;;  %v1390_v28 = vshrl.u32 %v4544_v23, 16 }
 0x3d8   : > { %v1711_v8 = vand.u32 65535, %v1707_v14  ;;  %v1712_v0 = vshrl.u32 %v1707_v14, 16  ;;  %v1392_v54 = vshrl.u32 %v4561_v38, 16  ;;  %v1407_v46 = vmul.u32 %v1405_v43, %v4483_v21 }
 0x3d9   : > { %v1676_v51 = vshrl.u32 %v5916_v17, %v1675_v42  ;;  %v1697_v62 = vsel %vm1695_vm7, %v1685_v4, 2102212464  ;;  %v1733_v60 = vand.u32 65535, %v1703_v52  ;;  %v1401_v16 = vadd.s32 %v1400_v35, %v1390_v28 }
 0x3da   : > { %v1714_v22 = vmul.u32 %v1712_v0, %v1709_v20  ;;  %v1413_v37 = vshll.u32 %v1409_v1, 16  ;;  %vm1415_vm13 = vc.u32 %v1407_v46, %v1411_v13  ;;  %v1417_v2 = vadd.s32 %v1411_v13, %v1407_v46 }
 0x3db   : > { %v5919_v12 = vshll.u32 %v4518_v55, 16  ;;  %v1713_v38 = vmul.u32 %v1711_v8, %v1709_v20  ;;  %v1416_v43 = vsel %vm1415_vm13, 1, %v5877_v61  ;;  %v1715_v42 = vmul.u32 %v1711_v8, %v1710_v41 }
 0x3dc   : > { %v1717_v21 = vshll.u32 %v1714_v22, 16  ;;  %v1736_v14 = vmul.u32 %v1734_v24, %v1709_v20  ;;  %v1412_v4 = vshrl.u32 %v4582_v7, 16  ;;  %v1418_v52 = vadd.s32 %v1416_v43, %v1410_v57 }
 0x3dd   : > { %vm4640_vm10 = vc.u32 %v4540_v27, %v5919_v12  ;;  %vm1419_vm12 = vc.u32 %v1417_v2, %v1413_v37  ;;  %v1719_v28 = vshll.u32 %v1715_v42, 16  ;;  %v1716_v46 = vmul.u32 %v1712_v0, %v1710_v41 }
 0x3de   : > { %vm1721_vm11 = vc.u32 %v1713_v38, %v1717_v21  ;;  %v1723_v35 = vadd.s32 %v1717_v21, %v1713_v38  ;;  %v1420_v13 = vsel %vm1419_vm12, 1, %v5877_v61  ;;  %v4647_v27 = vadd.s32 %v1401_v16, %v1392_v54 }
 0x3df   : > { %v1414_v12 = vshrl.u32 %v1409_v1, 16  ;;  %v1422_v50 = vadd.s32 %v1420_v13, %v1418_v52  ;;  %v1722_v33 = vsel %vm1721_vm11, 1, %v5877_v61  ;;  %v1735_v39 = vmul.u32 %v1733_v60, %v1709_v20 }
 0x3e0   : > { %vm1725_vm15 = vc.u32 %v1723_v35, %v1719_v28  ;;  %v1737_v8 = vmul.u32 %v1733_v60, %v1710_v41  ;;  %v1724_v45 = vadd.s32 %v1722_v33, %v1716_v46  ;;  %v1739_v7 = vshll.u32 %v1736_v14, 16 }
 0x3e1   : > { %v1423_v34 = vadd.s32 %v1422_v50, %v1412_v4  ;;  %v1726_v57 = vsel %vm1725_vm15, 1, %v5877_v61  ;;  %v1738_v43 = vmul.u32 %v1734_v24, %v1710_v41  ;;  %v4651_v38 = vadd.s32 %v1417_v2, %v1413_v37 }
 0x3e2   : > { %v1718_v21 = vshrl.u32 %v1714_v22, 16  ;;  %v1741_v18 = vshll.u32 %v1737_v8, 16  ;;  %v1728_v54 = vadd.s32 %v1726_v57, %v1724_v45  ;;  %vm1743_vm7 = vc.u32 %v1735_v39, %v1739_v7 }
 0x3e3   : > { %v1424_v0 = vadd.s32 %v1423_v34, %v1414_v12  ;;  %v1745_v1 = vadd.s32 %v1739_v7, %v1735_v39  ;;  %v1696_v16 = vsel %vm1692_vm14, %v1676_v51, %v4596_v48  ;;  %vm1427_vm13 = vc.u32 %v4647_v27, %v4651_v38 }
 0x3e4   : > { %v1744_v33 = vsel %vm1743_vm7, 1, %v5877_v61  ;;  %v5922_v50 = vand.u32 65535, %v4480_v59  ;;  %v1729_v24 = vadd.s32 %v1728_v54, %v1718_v21  ;;  %v1698_v34 = vsel %vm1694_vm5, %v4598_v40, %v1697_v62 }
 0x3e5   : > { %v1428_v41 = vadd.s32 1, %v1424_v0  ;;  %v1746_v22 = vadd.s32 %v1744_v33, %v1738_v43  ;;  %vm1747_vm12 = vc.u32 %v1745_v1, %v1741_v18  ;;  %v1720_v39 = vshrl.u32 %v1715_v42, 16 }
 0x3e6   : > { %v1542_v20 = vmul.u32 %v5922_v50, %v4474_v47  ;;  %v1748_v45 = vsel %vm1747_vm12, 1, %v5877_v61  ;;  %v1740_v60 = vshrl.u32 %v1736_v14, 16  ;;  %v1549_v59 = vsel %vm4640_vm10, 1, %v5877_v61 }
 0x3e7   : > { %v1429_v51 = vsel %vm1427_vm13, %v1428_v41, %v1424_v0  ;;  %v1750_v37 = vadd.s32 %v1748_v45, %v1746_v22  ;;  %v5923_v2 = vmul.u32 %v4454_v5, %v4551_v6  ;;  %v4672_v52 = vadd.s32 %v1729_v24, %v1720_v39 }
 0x3e8   : > { %v1546_v48 = vshll.u32 %v1542_v20, 16  ;;  %v1551_v35 = vadd.s32 %v1549_v59, %v4548_v31  ;;  %v1742_v40 = vshrl.u32 %v1737_v8, 16  ;;  %v4676_v62 = vadd.s32 %v1745_v1, %v1741_v18 }
 0x3e9   : > { %v1430_v4 = vadd.s32 %v1429_v51, %v5923_v2  ;;  %v1751_v42 = vadd.s32 %v1750_v37, %v1740_v60  ;;  %v5924_v23 = vand.u32 65535, %v4513_v30  ;;  %v1566_v5 = vshll.u32 %v4557_v9, 16 }
 0x3ea   : > { %vm1552_vm14 = vc.u32 %v4566_v10, %v1546_v48  ;;  %vm1826_vm5 = vcmp.gt.s32.totalorder %v4521_v25, 0  ;;  %v1699_v31 = vsel %vm1693_vm8, %v1696_v16, %v1698_v34  ;;  %v5926_v12 = vshrl.u32 %v4513_v30, 16 }
 0x3eb   : > { %v1553_v14 = vsel %vm1552_vm14, 1, %v5877_v61  ;;  %v1431_v13 = vadd.s32 536870912, %v1430_v4  ;;  %v1564_v46 = vmul.u32 %v5924_v23, %v4474_v47  ;;  %v1752_v6 = vadd.s32 %v1751_v42, %v1742_v40 }
 0x3ec   : > { %v1555_v28 = vadd.s32 %v1553_v14, %v1551_v35  ;;  %v5925_v18 = vmov %v5924_v23  ;;  %v1565_v8 = vmul.u32 %v5926_v12, %v4474_v47  ;;  %vm1755_vm10 = vc.u32 %v4672_v52, %v4676_v62 }
 0x3ed   : > { %v1562_v10 = vmul.u32 %v5925_v18, %v4471_v63  ;;  %v1432_v57 = vshrl.u32 %v1431_v13, 30  ;;  %v1545_v7 = vshrl.u32 %v4518_v55, 16  ;;  %v1756_v43 = vadd.s32 1, %v1752_v6 }
 0x3ee   : > { %v1568_v21 = vshll.u32 %v1564_v46, 16  ;;  %v1753_v0 = vmul.u32 %v4575_v56, %v1699_v31  ;;  %v1827_v47 = vsel %vm1826_vm5, %v4521_v25, 0  ;;  %v1547_v55 = vshrl.u32 %v1542_v20, 16 }
 0x3ef   : > { %vm1570_vm11 = vc.u32 %v1562_v10, %v1566_v5  ;;  %v1572_v58 = vadd.s32 %v1566_v5, %v1562_v10  ;;  %v1433_v54 = vshll.u32 %v1432_v57, 30  ;;  %v1556_v1 = vadd.s32 %v1555_v28, %v1545_v7 }
 0x3f0   : > { %v1571_v63 = vsel %vm1570_vm11, 1, %v5877_v61  ;;  %v1757_v30 = vsel %vm1755_vm10, %v1756_v43, %v1752_v6  ;;  %v1456_v24 = vsub.s32 4, %v1432_v57  ;;  %v1567_v22 = vshrl.u32 %v4557_v9, 16 }
 0x3f1   : > { %v1573_v16 = vadd.s32 %v1571_v63, %v1565_v8  ;;  %vm1574_vm8 = vc.u32 %v1572_v58, %v1568_v21  ;;  %v1434_v33 = vsub.s32 %v1430_v4, %v1433_v54  ;;  %v1758_v50 = vadd.s32 %v1757_v30, %v1753_v0 }
 0x3f2   : > { %v1575_v41 = vsel %vm1574_vm8, 1, %v5877_v61  ;;  %v1557_v45 = vadd.s32 %v1556_v1, %v1547_v55  ;;  %v1526_v25 = vsel %vm1520_vm6, %v4529_v49, %v4534_v53  ;;  %v4706_v48 = vand.u32 31, %v1827_v47 }
 0x3f3   : > { %v1577_v56 = vadd.s32 %v1575_v41, %v1573_v16  ;;  %vm1435_vm15 = vcmp.lt.s32.totalorder %v1434_v33, 0  ;;  %v1436_v34 = vsub.s32 0, %v1434_v33  ;;  %v1759_v39 = vadd.s32 536870912, %v1758_v50 }
 0x3f4   : > { %v1569_v51 = vshrl.u32 %v1564_v46, 16  ;;  %vm1334_vm7 = vcmp.lt.s32.totalorder %v4415_v32, 0  ;;  %v1576_v59 = vadd.s32 %v1572_v58, %v1568_v21  ;;  %vm1662_vm13 = vcmp.lt.s32.totalorder %v4436_v3, 0 }
 0x3f5   : > { %v1578_v60 = vadd.s32 %v1577_v56, %v1567_v22  ;;  %v1437_v20 = vsel %vm1435_vm15, %v1436_v34, %v1434_v33  ;;  %v1760_v37 = vshrl.u32 %v1759_v39, 30  ;;  %v1457_v2 = vsel %vm1334_vm7, %v1456_v24, %v1432_v57 }
 0x3f6   : > { %v1438_v9 = vclz %v1437_v20  ;;  %v1580_v35 = vmul.u32 %v4452_v11, %v1526_v25  ;;  %v4713_v19 = vshrl.u32 %v1827_v47, 5  ;;  %vm1582_vm6 = vc.u32 %v1557_v45, %v1576_v59 }
 0x3f7   : > { %v1579_v4 = vadd.s32 %v1578_v60, %v1569_v51  ;;  %v1761_v49 = vshll.u32 %v1760_v37, 30  ;;  %v4716_v53 = vsub.s32 32, %v4706_v48  ;;  %v5927_v40 = vand.u32 2147483647, %v4415_v32 }
 0x3f8   : > { %v3271_v14 = vadd.s32 4294967294, %v1438_v9  ;;  %v5930_v11 = vand.u32 2147483647, %v4436_v3  ;;  %v1815_v5 = vand.u32 2147483647, %v4429_v44  ;;  %v1426_v31 = vadd.s32 %v4651_v38, %v4647_v27 }
 0x3f9   : > { %vm4720_vm12 = vcmp.le.f32.partialorder %v5927_v40, 0.7853982  ;;  %v1583_v13 = vadd.s32 1, %v1579_v4  ;;  %v1762_v46 = vsub.s32 %v1758_v50, %v1761_v49  ;;  %v1754_v6 = vadd.s32 %v4676_v62, %v4672_v52 }
 0x3fa   : > { %v1459_v28 = vsel %vm4720_vm12, 0, %v1457_v2  ;;  %vm4728_vm14 = vcmp.le.f32.partialorder %v5930_v11, 0.7853982  ;;  %vm3272_vm5 = vcmp.lt.s32.totalorder %v3271_v14, 0  ;;  %v1784_v8 = vsub.s32 4, %v1760_v37 }
 0x3fb   : > { %v1584_v18 = vsel %vm1582_vm6, %v1583_v13, %v1579_v4  ;;  %v1441_v10 = vsel %vm3272_vm5, 0, %v3271_v14  ;;  %vm1763_vm10 = vcmp.lt.s32.totalorder %v1762_v46, 0  ;;  %v1764_v12 = vsub.s32 0, %v1762_v46 }
 0x3fc   : > { %v1442_v57 = vsub.s32 32, %v1441_v10  ;;  %v1446_v7 = vsub.s32 4294967266, %v1441_v10  ;;  %v1476_v43 = vadd.s32 3, %v1459_v28  ;;  %v4737_v21 = vadd.s32 %v1576_v59, %v1557_v45 }
 0x3fd   : > { %v1765_v58 = vsel %vm1763_vm10, %v1764_v12, %v1762_v46  ;;  %v1585_v0 = vadd.s32 %v1584_v18, %v1580_v35  ;;  %v4741_v54 = vand.u32 8388607, %v1815_v5  ;;  %v1833_v27 = vshrl.u32 %v5911_v36, %v4716_v53 }
 0x3fe   : > { %v1443_v38 = vshll.u32 %v1434_v33, %v1441_v10  ;;  %v1444_v52 = vshrl.u32 %v1426_v31, %v1442_v57  ;;  %v1447_v62 = vadd.s32 127, %v1446_v7  ;;  %v1766_v1 = vclz %v1765_v58 }
 0x3ff   : > { %v1785_v63 = vsel %vm1662_vm13, %v1784_v8, %v1760_v37  ;;  %v1586_v47 = vadd.s32 536870912, %v1585_v0  ;;  %v4749_v30 = vshrl.u32 %v5916_v17, %v4716_v53  ;;  %v1832_v16 = vshll.u32 %v5916_v17, %v4706_v48 }
 0x400   : > { %v1445_v50 = vor.u32 %v1444_v52, %v1443_v38  ;;  %v1448_v55 = vshll.u32 %v1447_v62, 23  ;;  %v4753_v41 = vand.u32 3, %v1476_v43  ;;  %v3277_v24 = vadd.s32 4294967294, %v1766_v1 }
 0x401   : > { %v1587_v33 = vshrl.u32 %v1586_v47, 30  ;;  %v1823_v22 = vor.u32 8388608, %v4741_v54  ;;  %v4756_v56 = vor.u32 %v1833_v27, %v1832_v16  ;;  %v1836_v34 = vshrl.u32 %v5912_v15, %v4716_v53 }
 0x402   : > { %v1449_v39 = vor.u32 4788187, %v1448_v55  ;;  %vm3278_vm11 = vcmp.lt.s32.totalorder %v3277_v24, 0  ;;  %v1787_v45 = vsel %vm4728_vm14, 0, %v1785_v63  ;;  %v1835_v25 = vshll.u32 %v5911_v36, %v4706_v48 }
 0x403   : > { %v1769_v51 = vsel %vm3278_vm11, 0, %v3277_v24  ;;  %v1588_v60 = vshll.u32 %v1587_v33, 30  ;;  %v1838_v20 = vshll.u32 %v5912_v15, %v4706_v48  ;;  %v1839_v37 = vshrl.u32 %v5913_v29, %v4716_v53 }
 0x404   : > { %vm1489_vm8 = vcmp.lt.s32.totalorder %v4411_v26, 0  ;;  %v1450_v59 = vand.u32 2147483647, %v1449_v39  ;;  %v1452_v9 = vcvt.s32.f32 %v1445_v50  ;;  %v1770_v2 = vsub.s32 32, %v1769_v51 }
 0x405   : > { %v1774_v4 = vsub.s32 4294967266, %v1769_v51  ;;  %v1804_v35 = vadd.s32 3, %v1787_v45  ;;  %v4769_v49 = vsub.s32 %v1585_v0, %v1588_v60  ;;  %v4771_v40 = vor.u32 %v1836_v34, %v1835_v25 }
 0x406   : > { %v5933_v14 = vmov 920167782   ;;  %v1453_v28 = vmul.f32 %v1452_v9, %v1450_v59  ;;  %v1771_v11 = vshll.u32 %v1762_v46, %v1769_v51  ;;  %v1772_v31 = vshrl.u32 %v1754_v6, %v1770_v2 }
 0x407   : > { %v1842_v13 = vshrl.u32 %v5933_v14, %v4716_v53  ;;  %v1775_v18 = vadd.s32 127, %v1774_v4  ;;  %vm1590_vm15 = vcmp.lt.s32.totalorder %v4769_v49, 0  ;;  %v1591_v10 = vsub.s32 0, %v4769_v49 }
 0x408   : > { %v1841_v12 = vshll.u32 %v5913_v29, %v4706_v48  ;;  %v5934_v8 = vmov 1326507024   ;;  %v1454_v7 = vxor.u32 2147483648, %v1453_v28  ;;  %v1773_v43 = vor.u32 %v1772_v31, %v1771_v11 }
 0x409   : > { %v1845_v57 = vshrl.u32 %v5934_v8, %v4716_v53  ;;  %v1776_v58 = vshll.u32 %v1775_v18, 23  ;;  %v4781_v0 = vor.u32 %v1839_v37, %v1838_v20  ;;  %v1592_v54 = vsel %vm1590_vm15, %v1591_v10, %v4769_v49 }
 0x40a   : > { %v1611_v46 = vsub.s32 4, %v1587_v33  ;;  %v1843_v6 = vor.u32 %v1842_v13, %v1841_v12  ;;  %v1844_v27 = vshll.u32 %v5933_v14, %v4706_v48  ;;  %v1455_v38 = vsel %vm1334_vm7, %v1454_v7, %v1453_v28 }
 0x40b   : > { %v1777_v52 = vor.u32 4788187, %v1776_v58  ;;  %v4788_v62 = vand.u32 3, %v1804_v35  ;;  %v1593_v1 = vclz %v1592_v54  ;;  %v4793_v53 = vsel %vm4720_vm12, %v4415_v32, %v1455_v38 }
 0x40c   : > { %v1846_v63 = vor.u32 %v1845_v57, %v1844_v27  ;;  %vm1847_vm6 = vcmp.lt.s32.totalorder %v4713_v19, 1  ;;  %vm1850_vm5 = vcmp.lt.s32.totalorder %v4713_v19, 4  ;;  %v1460_v48 = vmul.f32 %v4793_v53, %v4793_v53 }
 0x40d   : > { %v1778_v47 = vand.u32 2147483647, %v1777_v52  ;;  %v1780_v16 = vcvt.s32.f32 %v1773_v43  ;;  %v3274_v50 = vadd.s32 4294967294, %v1593_v1  ;;  %v4801_v55 = vsel %vm1489_vm8, %v1611_v46, %v1587_v33 }
 0x40e   : > { %vm1848_vm7 = vcmp.lt.s32.totalorder %v4713_v19, 2  ;;  %vm1849_vm12 = vcmp.lt.s32.totalorder %v4713_v19, 3  ;;  %v1856_v42 = vsel %vm1850_vm5, %v1843_v6, 920167782  ;;  %v1461_v24 = vmul.f32 -0.001358992, %v1460_v48 }
 0x40f   : > { %v1468_v34 = vmul.f32 -0.00019511016, %v1460_v48  ;;  %v1781_v39 = vmul.f32 %v1780_v16, %v1778_v47  ;;  %vm3275_vm10 = vcmp.lt.s32.totalorder %v3274_v50, 0  ;;  %v1859_v25 = vsel %vm1847_vm6, %v4771_v40, %v4781_v0 }
 0x410   : > { %v1596_v45 = vsel %vm3275_vm10, 0, %v3274_v50  ;;  %v1860_v33 = vsel %vm1850_vm5, %v1846_v63, 1326507024  ;;  %v4813_v51 = vshll.u32 %v1823_v22, 8  ;;  %v1462_v60 = vadd.f32 0.041655596, %v1461_v24 }
 0x411   : > { %v1469_v20 = vadd.f32 0.008332121, %v1468_v34  ;;  %v1782_v37 = vxor.u32 2147483648, %v1781_v39  ;;  %v1597_v59 = vsub.s32 32, %v1596_v45  ;;  %v1601_v9 = vsub.s32 4294967266, %v1596_v45 }
 0x412   : > { %v1855_v2 = vsel %vm1847_vm6, %v4756_v56, %v4771_v40  ;;  %v1857_v4 = vsel %vm1849_vm12, %v4781_v0, %v1856_v42  ;;  %v1861_v35 = vsel %vm1849_vm12, %v1843_v6, %v1860_v33  ;;  %v1463_v13 = vmul.f32 %v1462_v60, %v1460_v48 }
 0x413   : > { %v1470_v22 = vmul.f32 %v1469_v20, %v1460_v48  ;;  %v1783_v28 = vsel %vm1662_vm13, %v1782_v37, %v1781_v39  ;;  %v1599_v11 = vshrl.u32 %v4737_v21, %v1597_v59  ;;  %vm1482_vm11 = vcmp.eq.s32.totalorder %v4753_v41, 2 }
 0x414   : > { %v4831_v31 = vsel %vm4728_vm14, %v4436_v3, %v1783_v28  ;;  %v1598_v18 = vshll.u32 %v4769_v49, %v1596_v45  ;;  %v1602_v10 = vadd.s32 127, %v1601_v9  ;;  %v1862_v12 = vsel %vm1848_vm7, %v1859_v25, %v1861_v35 }
 0x415   : > { %v1464_v57 = vadd.f32 -0.4999988, %v1463_v13  ;;  %v1471_v7 = vadd.f32 -0.16666654, %v1470_v22  ;;  %v1788_v43 = vmul.f32 %v4831_v31, %v4831_v31  ;;  %v4839_v21 = vand.u32 65535, %v4813_v51 }
 0x416   : > { %vm1479_vm13 = vcmp.eq.s32.totalorder %v4753_v41, 0  ;;  %v1600_v58 = vor.u32 %v1599_v11, %v1598_v18  ;;  %v1603_v23 = vshll.u32 %v1602_v10, 23  ;;  %v1866_v54 = vand.u32 65535, %v1862_v12 }
 0x417   : > { %v1867_v46 = vshrl.u32 %v1862_v12, 16  ;;  %v1465_v6 = vmul.f32 %v1464_v57, %v1460_v48  ;;  %v1472_v49 = vmul.f32 %v1471_v7, %v1460_v48  ;;  %vm1478_vm14 = vcmp.lt.s32.totalorder %v4753_v41, 2 }
 0x418   : > { %v1789_v27 = vmul.f32 -0.001358992, %v1788_v43  ;;  %v1796_v38 = vmul.f32 -0.00019511016, %v1788_v43  ;;  %vm1475_vm15 = vweird.f32 %v4415_v32  ;;  %v5935_v52 = vand.u32 2147483647, %v4411_v26 }
 0x419   : > { %v1604_v63 = vor.u32 4788187, %v1603_v23  ;;  %v4852_v47 = vsel %vm1848_vm7, %v1855_v2, %v1857_v4  ;;  %v4855_v16 = vshrl.u32 %v4813_v51, 16  ;;  %v4858_v48 = vmul.u32 %v1867_v46, %v4839_v21 }
 0x41a   : > { %vm4846_vm10 = vcmp.le.f32.partialorder %v5935_v52, 0.7853982  ;;  %v1466_v50 = vadd.f32 1.0, %v1465_v6  ;;  %v1473_v42 = vadd.f32 1.0, %v1472_v49  ;;  %v1790_v24 = vadd.f32 0.041655596, %v1789_v27 }
 0x41b   : > { %v1797_v34 = vadd.f32 0.008332121, %v1796_v38  ;;  %v1605_v39 = vand.u32 2147483647, %v1604_v63  ;;  %v1607_v45 = vcvt.s32.f32 %v1600_v58  ;;  %v4861_v25 = vmul.u32 %v1866_v54, %v4855_v16 }
 0x41c   : > { %v1872_v33 = vshll.u32 %v4858_v48, 16  ;;  %v1474_v60 = vmul.f32 %v1473_v42, %v4793_v53  ;;  %v1483_v20 = vxor.u32 2147483648, %v1466_v50  ;;  %v1791_v37 = vmul.f32 %v1790_v24, %v1788_v43 }
 0x41d   : > { %v1798_v59 = vmul.f32 %v1797_v34, %v1788_v43  ;;  %v1608_v9 = vmul.f32 %v1607_v45, %v1605_v39  ;;  %v1868_v2 = vmul.u32 %v1866_v54, %v4839_v21  ;;  %v1871_v4 = vmul.u32 %v1867_v46, %v4855_v16 }
 0x41e   : > { %v1874_v35 = vshll.u32 %v4861_v25, 16  ;;  %v1480_v13 = vxor.u32 2147483648, %v1474_v60  ;;  %v1484_v22 = vsel %vm1482_vm11, %v1483_v20, %v1474_v60  ;;  %v1792_v28 = vadd.f32 -0.4999988, %v1791_v37 }
 0x41f   : > { %v1799_v11 = vadd.f32 -0.16666654, %v1798_v59  ;;  %vm1810_vm9 = vcmp.eq.s32.totalorder %v4788_v62, 2  ;;  %vm1807_vm4 = vcmp.eq.s32.totalorder %v4788_v62, 0  ;;  %v1609_v53 = vxor.u32 2147483648, %v1608_v9 }
 0x420   : > { %vm1876_vm3 = vc.u32 %v1868_v2, %v1872_v33  ;;  %v1878_v18 = vadd.s32 %v1872_v33, %v1868_v2  ;;  %v1888_v10 = vand.u32 65535, %v4852_v47  ;;  %v1481_v12 = vsel %vm1479_vm13, %v1466_v50, %v1480_v13  ;;  %v1647_v50 = vpop.permute.xlu0 %1646 }
 0x421   : > { %v1793_v57 = vmul.f32 %v1792_v28, %v1788_v43  ;;  %v1800_v7 = vmul.f32 %v1799_v11, %v1788_v43  ;;  %vm1806_vm0 = vcmp.lt.s32.totalorder %v4788_v62, 2  ;;  %v1877_v58 = vsel %vm1876_vm3, 1, %v5877_v61 }
 0x422   : > { %v1485_v23 = vsel %vm1478_vm14, %v1481_v12, %v1484_v22  ;;  %vm1803_vm11 = vweird.f32 %v4436_v3  ;;  %v1610_v54 = vsel %vm1489_vm8, %v1609_v53, %v1608_v9  ;;  %v1879_v46 = vadd.s32 %v1877_v58, %v1871_v4  ;;  %v5938_v9 = vld [vmem:[#allocation8_spill] sm:$0xff] }
 0x423   : > { %vm1880_vm1 = vc.u32 %v1878_v18, %v1874_v35  ;;  %v1486_v6 = vsel %vm1475_vm15, nan, %v1485_v23  ;;  %v1794_v49 = vadd.f32 1.0, %v1793_v57  ;;  %v1801_v27 = vadd.f32 1.0, %v1800_v7 }
 0x424   : > { %v1613_v43 = vsel %vm4846_vm10, %v4411_v26, %v1610_v54  ;;  %v1642_v38 = vmul.f32 %v1486_v6, %v1486_v6  ;;  %v1881_v41 = vsel %vm1880_vm1, 1, %v5877_v61  ;;  %v1889_v63 = vshrl.u32 %v4852_v47, 16 }
 0x425   : > { %v1615_v52 = vmul.f32 %v1613_v43, %v1613_v43  ;;  %v1802_v42 = vmul.f32 %v1801_v27, %v4831_v31  ;;  %v1811_v24 = vxor.u32 2147483648, %v1794_v49  ;;  %v1614_v32 = vsel %vm4846_vm10, 0, %v4801_v55 }
 0x426   : > { %v1883_v34 = vadd.s32 %v1881_v41, %v1879_v46  ;;  %v1654_v39 = vmul.f32 %v1647_v50, %v1642_v38  ;;  %v1891_v60 = vmul.u32 %v1889_v63, %v4839_v21  ;;  %v1873_v37 = vshrl.u32 %v4858_v48, 16  ;;  %v5939_v41 = vld [vmem:[#allocation10_spill] sm:$0xff] }
 0x427   : > { %v1616_v45 = vmul.f32 -0.001358992, %v1615_v52  ;;  %v1623_v33 = vmul.f32 -0.00019511016, %v1615_v52  ;;  %v1808_v20 = vxor.u32 2147483648, %v1802_v42  ;;  %v1890_v59 = vmul.u32 %v1888_v10, %v4839_v21 }
 0x428   : > { %v1892_v47 = vmul.u32 %v1888_v10, %v4855_v16  ;;  %v4898_v31 = vadd.f32 %v1654_v39, %v5938_v9  ;;  %v1812_v1 = vsel %vm1810_vm9, %v1811_v24, %v1802_v42  ;;  %v1884_v35 = vadd.s32 %v1883_v34, %v1873_v37 }
 0x429   : > { %v1617_v55 = vadd.f32 0.041655596, %v1616_v45  ;;  %v1624_v2 = vadd.f32 0.008332121, %v1623_v33  ;;  %v1809_v4 = vsel %vm1807_vm4, %v1794_v49, %v1808_v20  ;;  %v1893_v13 = vmul.u32 %v1889_v63, %v4855_v16 }
 0x42a   : > { %v1894_v22 = vshll.u32 %v1891_v60, 16  ;;  %v1813_v21 = vsel %vm1806_vm0, %v1809_v4, %v1812_v1  ;;  %v1852_v11 = vsel %vm1850_vm5, %v4781_v0, 2102212464  ;;  %1996 = vrot.lane.b32.xlu0 %v4898_v31, %s3482_s12  ;;  %1986 = vrot.lane.b32.xlu1 %v4898_v31, %s3481_s11  ;;  %v1896_v16 = vshll.u32 %v1892_v47, 16 }
 0x42b   : > { %v1618_v48 = vmul.f32 %v1617_v55, %v1615_v52  ;;  %v1625_v28 = vmul.f32 %v1624_v2, %v1615_v52  ;;  %v1814_v53 = vsel %vm1803_vm11, nan, %v1813_v21  ;;  %1978 = vperm.xlu2 %3399, %v4898_v31   ;;  %v1631_v0 = vadd.s32 3, %v1614_v32  ;;  %v4944_v2 = vpop.permute.xlu1 %1651 }
 0x42c   : > { %vm1898_vm1 = vc.u32 %v1890_v59, %v1894_v22  ;;  %v1900_v18 = vadd.s32 %v1894_v22, %v1890_v59  ;;  %v1970_v62 = vmul.f32 %v1814_v53, %v1814_v53  ;;  %v1875_v7 = vshrl.u32 %v4861_v25, 16 }
 0x42d   : > { %v1619_v10 = vadd.f32 -0.4999988, %v1618_v48  ;;  %v1626_v12 = vadd.f32 -0.16666654, %v1625_v28  ;;  %v1899_v57 = vsel %vm1898_vm1, 1, %v5877_v61  ;;  %v1851_v6 = vsel %vm1847_vm6, %v4749_v30, %v4756_v56 }
 0x42e   : > { %v1901_v58 = vadd.s32 %v1899_v57, %v1893_v13  ;;  %vm1902_vm0 = vc.u32 %v1900_v18, %v1896_v16  ;;  %v1972_v23 = vmul.f32 %v1970_v62, %v1647_v50  ;;  %v1853_v49 = vsel %vm1849_vm12, %v4771_v40, %v1852_v11 }
 0x42f   : > { %v1620_v54 = vmul.f32 %v1619_v10, %v1615_v52  ;;  %v1627_v46 = vmul.f32 %v1626_v12, %v1615_v52  ;;  %v1903_v3 = vsel %vm1902_vm0, 1, %v5877_v61  ;;  %v1895_v27 = vshrl.u32 %v1891_v60, 16 }
 0x430   : > { %v1905_v38 = vadd.s32 %v1903_v3, %v1901_v58  ;;  %v4928_v25 = vadd.f32 %v1972_v23, %v5939_v41  ;;  %v1885_v42 = vadd.s32 %v1884_v35, %v1875_v7  ;;  %v1632_v52 = vand.u32 3, %v1631_v0  ;;  %v5941_v35 = vld [vmem:[#allocation7_spill] sm:$0xff] }
 0x431   : > { %v1621_v63 = vadd.f32 1.0, %v1620_v54  ;;  %v1628_v50 = vadd.f32 1.0, %v1627_v46  ;;  %v1897_v24 = vshrl.u32 %v1892_v47, 16  ;;  %v1904_v45 = vadd.s32 %v1900_v18, %v1896_v16 }
 0x432   : > { %v1906_v32 = vadd.s32 %v1905_v38, %v1895_v27  ;;  %2080 = vrot.lane.b32.xlu0 %v4928_v25, %s3482_s12  ;;  %2068 = vrot.lane.b32.xlu1 %v4928_v25, %s3481_s11  ;;  %v1854_v30 = vsel %vm1848_vm7, %v1851_v6, %v1853_v49  ;;  %v5940_v33 = vmov 127   ;;  %vm1634_vm4 = vcmp.eq.s32.totalorder %v1632_v52, 0 }
 0x433   : > { %v1629_v34 = vmul.f32 %v1628_v50, %v1613_v43  ;;  %v1638_v39 = vxor.u32 2147483648, %v1621_v63  ;;  %2058 = vrot.lane.b32.xlu2 %v4928_v25, %s3480_s10  ;;  %vm1910_vm3 = vc.u32 %v1885_v42, %v1904_v45  ;;  %vm1637_vm9 = vcmp.eq.s32.totalorder %v1632_v52, 2 }
 0x434   : > { %v1907_v56 = vadd.s32 %v1906_v32, %v1897_v24  ;;  %3401 = vset.pattern.permute.xlu2 %v5940_v33  ;;  %vm1633_vm8 = vcmp.lt.s32.totalorder %v1632_v52, 2  ;;  %v1908_v37 = vmul.u32 %v4813_v51, %v1854_v30  ;;  %vm1630_vm6 = vweird.f32 %v4411_v26 }
 0x435   : > { %v1635_v40 = vxor.u32 2147483648, %v1629_v34  ;;  %v1639_v20 = vsel %vm1637_vm9, %v1638_v39, %v1629_v34  ;;  %v1909_v16 = vadd.s32 %v1904_v45, %v1885_v42  ;;  %vm1817_vm12 = vcmp.lt.s32.totalorder %v4429_v44, 0 }
 0x436   : > { %v1911_v43 = vadd.s32 1, %v1907_v56  ;;  %vm1816_vm13 = vcmp.le.f32.partialorder %v1815_v5, 0.7853982  ;;  %vm1958_vm11 = vweird.f32 %v4429_v44  ;;  %vm5943_vm1 = vcmask 15360  }
 0x437   : > { %v1636_v60 = vsel %vm1634_vm4, %v1621_v63, %v1635_v40  ;;  %vm5944_vm0 = vcmask 23552   ;;  %vm5946_vm4 = vmmov %vm5943_vm1 }
 0x438   : > { %v1640_v19 = vsel %vm1633_vm8, %v1636_v60, %v1639_v20  ;;  %v1912_v59 = vsel %vm1910_vm3, %v1911_v43, %v1907_v56  ;;  %vm5945_vm3 = vmmov %vm5943_vm1 }
 0x439   : > { %v1641_v47 = vsel %vm1630_vm6, nan, %v1640_v19  ;;  %v1913_v9 = vadd.s32 %v1912_v59, %v1908_v37  ;;  %vm5947_vm9 = vmmov %vm5944_vm0  ;;  %vm5949_vm6 = vcmask 1039360  }
 0x43a   : > { %v1643_v1 = vmul.f32 %v1641_v47, %v1641_v47  ;;  %2034 = vrot.lane.b32.xlu0 %v4898_v31, %s3484_s14  ;;  %2026 = vperm.xlu1 %3400, %v4928_v25   ;;  %vm5948_vm8 = vmmov %vm5943_vm1 }
 0x43b   : > { %v1914_v55 = vadd.s32 536870912, %v1913_v9  ;;  %2012 = vrot.lane.b32.xlu2 %v4898_v31, %s3483_s13 }
 0x43c   : > { %v1655_v51 = vmul.f32 %v4944_v2, %v1643_v1 }
 0x43d   : > { %v1915_v4 = vshrl.u32 %v1914_v55, 30 }
 0x43e   : > { %v4950_v13 = vadd.f32 %v1655_v51, %v5941_v35 }
 0x43f   : > { %v1916_v26 = vshll.u32 %v1915_v4, 30  ;;  %v1939_v49 = vsub.s32 4, %v1915_v4 }
 0x441   : > { %v1917_v22 = vsub.s32 %v1913_v9, %v1916_v26  ;;  %v1940_v50 = vsel %vm1817_vm12, %v1939_v49, %v1915_v4  ;;  %v5942_v4 = vld [vmem:[#allocation9_spill] sm:$0xff] }
 0x442   : > { %2046 = vrot.lane.b32.xlu1 %v4898_v31, %s3485_s15  ;;  %1983 = vperm.xlu0 %3387, %v4950_v13   ;;  %v1942_v24 = vsel %vm1816_vm13, 0, %v1940_v50 }
 0x443   : > { %vm1918_vm5 = vcmp.lt.s32.totalorder %v1917_v22, 0  ;;  %v1919_v21 = vsub.s32 0, %v1917_v22  ;;  %2096 = vrot.lane.b32.xlu2 %v4928_v25, %s3483_s13  ;;  %3402 = vset.pattern.permute.xlu1 %v5877_v61  ;;  %v1959_v30 = vadd.s32 3, %v1942_v24 }
 0x445   : > { %v1920_v48 = vsel %vm1918_vm5, %v1919_v21, %v1917_v22  ;;  %v1960_v60 = vand.u32 3, %v1959_v30  ;;  %vm5950_vm5 = vcmask 1031168  }
 0x446   : > { %v1921_v28 = vclz %v1920_v48 }
 0x447   : > { %vm1962_vm14 = vcmp.eq.s32.totalorder %v1960_v60, 0  ;;  %vm1965_vm15 = vcmp.eq.s32.totalorder %v1960_v60, 2  ;;  %vm1961_vm10 = vcmp.lt.s32.totalorder %v1960_v60, 2 }
 0x448   : > { %v3280_v11 = vadd.s32 4294967294, %v1921_v28 }
 0x44a   : > { %vm3281_vm7 = vcmp.lt.s32.totalorder %v3280_v11, 0  ;;  %1998 = vrot.lane.b32.xlu1 %v4950_v13, %s3482_s12 }
 0x44b   : > { %v1924_v53 = vsel %vm3281_vm7, 0, %v3280_v11  ;;  %1988 = vrot.lane.b32.xlu2 %v4950_v13, %s3481_s11  ;;  %vm5951_vm7 = vmmov %vm5949_vm6 }
 0x44c   : > { %v1925_v18 = vsub.s32 32, %v1924_v53  ;;  %v1929_v62 = vsub.s32 4294967266, %v1924_v53  ;;  %v1926_v10 = vshll.u32 %v1917_v22, %v1924_v53 }
 0x44e   : > { %v1927_v12 = vshrl.u32 %v1909_v16, %v1925_v18  ;;  %v1930_v57 = vadd.s32 127, %v1929_v62 }
 0x450   : > { %v1928_v0 = vor.u32 %v1927_v12, %v1926_v10  ;;  %v1931_v7 = vshll.u32 %v1930_v57, 23 }
 0x452   : > { %v1932_v58 = vor.u32 4788187, %v1931_v7  ;;  %v1935_v54 = vcvt.s32.f32 %v1928_v0 }
 0x454   : > { %v1933_v23 = vand.u32 2147483647, %v1932_v58 }
 0x456   : > { %v1936_v46 = vmul.f32 %v1935_v54, %v1933_v23 }
 0x458   : > { %v1937_v3 = vxor.u32 2147483648, %v1936_v46 }
 0x45a   : > { %v1938_v6 = vsel %vm1817_vm12, %v1937_v3, %v1936_v46  ;;  %vm5952_vm12 = vcmask 1022976  }
 0x45b   : > { %v1941_v27 = vsel %vm1816_vm13, %v4429_v44, %v1938_v6  ;;  %vm5953_vm13 = vmmov %vm5949_vm6 }
 0x45c   : > { %v1943_v38 = vmul.f32 %v1941_v27, %v1941_v27 }
 0x45e   : > { %v1944_v41 = vmul.f32 -0.001358992, %v1943_v38  ;;  %v1951_v63 = vmul.f32 -0.00019511016, %v1943_v38 }
 0x460   : > { %v1945_v42 = vadd.f32 0.041655596, %v1944_v41  ;;  %v1952_v52 = vadd.f32 0.008332121, %v1951_v63 }
 0x462   : > { %v1946_v32 = vmul.f32 %v1945_v42, %v1943_v38  ;;  %v1953_v34 = vmul.f32 %v1952_v52, %v1943_v38 }
 0x464   : > { %v1947_v39 = vadd.f32 -0.4999988, %v1946_v32  ;;  %v1954_v45 = vadd.f32 -0.16666654, %v1953_v34 }
 0x466   : > { %v1948_v56 = vmul.f32 %v1947_v39, %v1943_v38  ;;  %v1955_v40 = vmul.f32 %v1954_v45, %v1943_v38 }
 0x468   : > { %v1949_v43 = vadd.f32 1.0, %v1948_v56  ;;  %v1956_v5 = vadd.f32 1.0, %v1955_v40 }
 0x46a   : > { %v1957_v20 = vmul.f32 %v1956_v5, %v1941_v27  ;;  %v1966_v37 = vxor.u32 2147483648, %v1949_v43 }
 0x46c   : > { %v1963_v19 = vxor.u32 2147483648, %v1957_v20  ;;  %v1967_v47 = vsel %vm1965_vm15, %v1966_v37, %v1957_v20  ;;  %vm5955_vm15 = vmmov %vm5950_vm5 }
 0x46e   : > { %v1964_v59 = vsel %vm1962_vm14, %v1949_v43, %v1963_v19  ;;  %v2009_v43 = vmul.f32 0.4432098, %v4950_v13  ;;  %vm5954_vm14 = vmmov %vm5950_vm5 }
 0x46f   : > { %v1968_v9 = vsel %vm1961_vm10, %v1964_v59, %v1967_v47  ;;  %vm5956_vm10 = vmmov %vm5949_vm6 }
 0x470   : > { %v1969_v1 = vsel %vm1958_vm11, nan, %v1968_v9  ;;  %vm5957_vm11 = vmmov %vm5952_vm12 }
 0x471   : > { %v1971_v55 = vmul.f32 %v1969_v1, %v1969_v1 }
 0x473   : > { %v1973_v51 = vmul.f32 %v1971_v55, %v4944_v2 }
 0x475   : > { %v4969_v26 = vadd.f32 %v1973_v51, %v5942_v4  ;;  %v2008_v51 = vmul.f32 0.4432098, %v4898_v31 }
 0x477   : > { %2060 = vrot.lane.b32.xlu0 %v4969_v26, %s3480_s10  ;;  %2082 = vrot.lane.b32.xlu1 %v4969_v26, %s3482_s12 }
 0x478   : > { %2070 = vrot.lane.b32.xlu2 %v4969_v26, %s3481_s11 }
 0x47f   : > { %2014 = vrot.lane.b32.xlu0 %v4950_v13, %s3483_s13  ;;  %2036 = vrot.lane.b32.xlu1 %v4950_v13, %s3484_s14 }
 0x480   : > { %2031 = vperm.xlu2 %3401, %v4969_v26  }
 0x485   : > { %v1979_v44 = vpop.permute.xlu2 %1978 }
 0x487   : > { %2098 = vrot.lane.b32.xlu0 %v4969_v26, %s3483_s13  ;;  %2110 = vrot.lane.b32.xlu1 %v4969_v26, %s3484_s14 }
 0x488   : > { %2048 = vrot.lane.b32.xlu2 %v4950_v13, %s3485_s15 }
 0x489   : > { %3403 = vset.pattern.permute.xlu2 %v5877_v61 }
 0x48d   : > { %v2059_v35 = vpop.permute.xlu2 %2058 }
 0x48e   : > { %v2064_v38 = vsel %vm5947_vm9, %v1979_v44, %v2059_v35  ;;  %v2093_v35 = vmul.f32 0.4432098, %v4969_v26 }
 0x48f   : > { %2108 = vrot.lane.b32.xlu0 %v4928_v25, %s3484_s14  ;;  %v2066_v56 = vmul.f32 0.0020289666, %v2064_v38 }
 0x495   : > { %v2013_v48 = vpop.permute.xlu2 %2012 }
 0x49c   : > { %v1987_v2 = vpop.permute.xlu1 %1986  ;;  %v1997_v22 = vpop.permute.xlu0 %1996 }
 0x49d   : > { %v4993_v53 = vpop.permute.xlu2 %2096  ;;  %v2002_v41 = vsel %vm270_vm2, %v4898_v31, %v1997_v22  ;;  %v1992_v24 = vsel %vm5948_vm8, %v1979_v44, %v1987_v2 }
 0x49e   : > { %v2004_v40 = vmul.f32 -0.057657376, %v2002_v41  ;;  %v1994_v60 = vmul.f32 0.009389464, %v1992_v24 }
 0x4a4   : > { %v2069_v21 = vpop.permute.xlu1 %2068  ;;  %v2081_v28 = vpop.permute.xlu0 %2080 }
 0x4a5   : > { %v1989_v62 = vpop.permute.xlu2 %1988  ;;  %v2074_v3 = vsel %vm5945_vm3, %v1979_v44, %v2069_v21  ;;  %v2086_v20 = vsel %vm270_vm2, %v4898_v31, %v2081_v28  ;;  %v2018_v44 = vsel %vm5951_vm7, %v2013_v48, %v4928_v25  ;;  %vm5960_vm3 = vmmov %vm5947_vm9  ;;  %vm5961_vm9 = vcmask 392192  }
 0x4a6   : > { %v2076_v32 = vmul.f32 -0.025543464, %v2074_v3  ;;  %v2088_v4 = vmul.f32 0.12857261, %v2086_v20  ;;  %v2092_v3 = vmul.f32 0.4432098, %v4928_v25  ;;  %vm5966_vm8 = vmmov %vm5960_vm3 }
 0x4a7   : > { %vm5969_vm7 = vmmov %vm5960_vm3 }
 0x4a8   : > { %v2078_v59 = vadd.f32 %v2076_v32, %v2066_v56 }
 0x4aa   : > { %v2090_v28 = vadd.f32 %v2088_v4, %v2078_v59  ;;  %v5964_v4 = vld [vmem:[#allocation6_spill] sm:$0xff] }
 0x4ac   : > { %v4991_v11 = vpop.permute.xlu1 %2026  ;;  %v2035_v16 = vpop.permute.xlu0 %2034  ;;  %v2094_v41 = vadd.f32 %v2092_v3, %v2090_v28  ;;  %v3296_v28 = vld [vmem:[%s5809_s4 + $0x28] sm:$0xff] }
 0x4ad   : > { %v2040_v48 = vsel %vm5955_vm15, %v2035_v16, %v4991_v11 }
 0x4b4   : > { %v4995_v18 = vpop.permute.xlu1 %2046  ;;  %v1984_v10 = vpop.permute.xlu0 %1983 }
 0x4b5   : > { %v1993_v54 = vsel %vm5943_vm1, %v1984_v10, %v1989_v62  ;;  %vm5958_vm1 = vmmov %vm5950_vm5 }
 0x4b6   : > { %v1995_v63 = vmul.f32 0.009389464, %v1993_v54  ;;  %vm5973_vm15 = vmmov %vm5958_vm1 }
 0x4bc   : > { %v1999_v12 = vpop.permute.xlu1 %1998 }
 0x4bd   : > { %v2003_v58 = vsel %vm270_vm2, %v4950_v13, %v1999_v12 }
 0x4be   : > { %v2005_v6 = vmul.f32 -0.057657376, %v2003_v58 }
 0x4c0   : > { %v2007_v45 = vadd.f32 %v2005_v6, %v1995_v63  ;;  %v2020_v6 = vmul.f32 0.12857261, %v2018_v44 }
 0x4c2   : > { %v2011_v1 = vadd.f32 %v2009_v43, %v2007_v45 }
 0x4d2   : > { %v2071_v57 = vpop.permute.xlu2 %2070 }
 0x4d3   : > { %v2075_v49 = vsel %vm5946_vm4, %v1984_v10, %v2071_v57  ;;  %vm3288_vm4 = vmneg %vm5960_vm3 }
 0x4d4   : > { %v2077_v39 = vmul.f32 -0.025543464, %v2075_v49  ;;  %v2102_v49 = vsel %vm5956_vm10, %v4993_v53, %v4928_v25 }
 0x4d5   : > { %v2104_v63 = vmul.f32 -0.057657376, %v2102_v49 }
 0x4da   : > { %v2032_v23 = vpop.permute.xlu2 %2031 }
 0x4e2   : > { %v2049_v47 = vpop.permute.xlu2 %2048 }
 0x4e3   : > { %v2053_v62 = vsel %vm5952_vm12, %v2049_v47, %v2032_v23  ;;  %vm5970_vm12 = vmmov %vm5956_vm10 }
 0x4e4   : > { %v2055_v54 = vmul.f32 0.0020289666, %v2053_v62 }
 0x4e9   : > { %v2061_v0 = vpop.permute.xlu0 %2060  ;;  %v2083_v7 = vpop.permute.xlu1 %2082 }
 0x4ea   : > { %v2065_v46 = vsel %vm5944_vm0, %v1984_v10, %v2061_v0  ;;  %v2087_v27 = vsel %vm270_vm2, %v4950_v13, %v2083_v7  ;;  %v2006_v13 = vadd.f32 %v2004_v40, %v1994_v60  ;;  %vm5959_vm0 = vmmov %vm5957_vm11 }
 0x4eb   : > { %v2067_v50 = vmul.f32 0.0020289666, %v2065_v46  ;;  %v2089_v30 = vmul.f32 0.12857261, %v2087_v27 }
 0x4ec   : > { %v2010_v58 = vadd.f32 %v2008_v51, %v2006_v13 }
 0x4ed   : > { %v2079_v37 = vadd.f32 %v2077_v39, %v2067_v50 }
 0x4ee   : > { %v2022_v16 = vadd.f32 %v2020_v6, %v2010_v58 }
 0x4ef   : > { %v2091_v9 = vadd.f32 %v2089_v30, %v2079_v37 }
 0x4f1   : > { %v2015_v42 = vpop.permute.xlu0 %2014  ;;  %v2037_v52 = vpop.permute.xlu1 %2036  ;;  %v2095_v31 = vadd.f32 %v2093_v35, %v2091_v9  ;;  %v5962_v9 = vld [vmem:[#allocation5_spill] sm:$0xff] }
 0x4f2   : > { %v2019_v34 = vsel %vm5949_vm6, %v2015_v42, %v4969_v26  ;;  %v2041_v5 = vsel %vm5950_vm5, %v2037_v52, %v2032_v23  ;;  %v3293_v35 = vld [vmem:[%s5808_s3 + $0x20] sm:$0xff]  ;;  %vm5967_vm6 = vcmask 15360  }
 0x4f3   : > { %v2021_v19 = vmul.f32 0.12857261, %v2019_v34  ;;  %v2043_v55 = vmul.f32 -0.025543464, %v2041_v5  ;;  %v2106_v34 = vadd.f32 %v2104_v63, %v2094_v41  ;;  %v3291_v5 = vld [vmem:[%s5807_s2 + $0x10] sm:$0xff]  ;;  %vm5968_vm5 = vmmov %vm5967_vm6 }
 0x4f4   : > { %2172 = vperm.xlu1 %3402, %v3291_v5  }
 0x4f5   : > { %v2023_v2 = vadd.f32 %v2021_v19, %v2011_v1  ;;  %v3327_v19 = vld [vmem:[%s5806_s1 + $0x8] sm:$0xff] }
 0x4f7   : > { %v2045_v57 = vadd.f32 %v2043_v55, %v2023_v2 }
 0x4f9   : > { %v2099_v22 = vpop.permute.xlu0 %2098  ;;  %v2111_v21 = vpop.permute.xlu1 %2110  ;;  %v2057_v27 = vadd.f32 %v2055_v54, %v2045_v57 }
 0x4fa   : > { %v2103_v10 = vsel %vm5953_vm13, %v2099_v22, %v4969_v26  ;;  %v2115_v12 = vsel %vm5954_vm14, %v2111_v21, %v2032_v23  ;;  %v2052_v26 = vsel %vm5957_vm11, %v4995_v18, %v4991_v11  ;;  %v2042_v23 = vmul.f32 -0.025543464, %v2040_v48  ;;  %v3294_v22 = vld [vmem:[%s5808_s3 + $0x28] sm:$0xff]  ;;  %v3295_v21 = vld [vmem:[%s5809_s4 + $0x20] sm:$0xff]  ;;  %vm5971_vm13 = vmmov %vm5958_vm1 }
 0x4fb   : > { %v2105_v0 = vmul.f32 -0.057657376, %v2103_v10  ;;  %v2117_v7 = vmul.f32 0.009389464, %v2115_v12  ;;  %v2054_v50 = vmul.f32 0.0020289666, %v2052_v26  ;;  %vm5972_vm14 = vmmov %vm5956_vm10 }
 0x4fc   : > { %v2044_v32 = vadd.f32 %v2042_v23, %v2022_v16  ;;  %3404 = vset.pattern.permute.xlu1 %v5940_v33  ;;  %vm5975_vm10 = vmmov %vm5959_vm0 }
 0x4fd   : > { %v2107_v46 = vadd.f32 %v2105_v0, %v2095_v31  ;;  %vm5978_vm11 = vmmov %vm5959_vm0 }
 0x4fe   : > { %v2056_v25 = vadd.f32 %v2054_v50, %v2044_v32 }
 0x4ff   : > { %v2119_v38 = vadd.f32 %v2117_v7, %v2107_v46 }
 0x501   : > { %v2121_v42 = vadd.f32 %v2119_v38, %v2057_v27  ;;  %v2109_v52 = vpop.permute.xlu0 %2108 }
 0x502   : > { %v2114_v24 = vsel %vm5958_vm1, %v2109_v52, %v4991_v11  ;;  %v3292_v11 = vld [vmem:[%s5807_s2 + $0x18] sm:$0xff] }
 0x503   : > { %v2116_v39 = vmul.f32 0.009389464, %v2114_v24  ;;  %v2123_v45 = vpack.c.bf16 %v2121_v42, %v2121_v42 }
 0x505   : > { %v2118_v53 = vadd.f32 %v2116_v39, %v2106_v34  ;;  %v2127_v56 = vunpack.c.l.b16 %v2123_v45 }
 0x507   : > { %v2120_v30 = vadd.f32 %v2118_v53, %v2056_v25 }
 0x509   : > { %v2122_v18 = vpack.c.bf16 %v2120_v30, %v2120_v30 }
 0x50b   : > { %v2126_v40 = vunpack.c.l.b16 %v2122_v18 }
 0x50d   : > { %v2128_v43 = vpack.c.b16 %v2127_v56, %v2126_v40 }
 0x50f   : > { %2129 = vrot.lane.b32.xlu0 %v2128_v43, %s3480_s10  ;;  %2134 = vrot.lane.b32.xlu2 %v2128_v43, %s3485_s15 }
 0x517   : > { %2177 = vperm.xlu2 %3403, %v3292_v11  }
 0x51f   : > { %3406 = vset.pattern.permute.xlu2 %v5940_v33 }
 0x566   : > { %v2173_v47 = vpop.permute.xlu1 %2172 }
 0x569   : > { %v2135_v60 = vpop.permute.xlu2 %2134 }
 0x56a   : > { %v2137_v20 = vsel %vm5959_vm0, %v2135_v60, 0 }
 0x56b   : > { %2156 = vmatpush.bf16.msra.mxu1 %v2137_v20 }
 0x56f   : > { %2157 = vmatpush.bf16.msra.mxu1 %v2128_v43 }
 0x571   : > { %v2178_v13 = vpop.permute.xlu2 %2177 }
 0x581   : > { %v2130_v37 = vpop.permute.xlu0 %2129 }
 0x582   : > { %3289 = vmatpush.bf16.msk.msra.mxu1 %vm3288_vm4, %v2130_v37 }
 0x585   : > { %3290 = vmatmul.msk.bf16.vlgmr.msra.gmra.mxu1 %vm5961_vm9, %v3327_v19 }
 0x602   : > { %v2160_v59 = vpop.f32.mrf.mxu1 }
 0x603   : > { %v2165_v1 = vadd.f32 %v2160_v59, %v5962_v9 }
 0x605   : > { %v5051_v55 = vadd.f32 %v2173_v47, %v2165_v1 }
 0x607   : > { %5963 = vst [vmem:[#allocation8_spill] sm:$0xff] %v5051_v55  ;;  %2208 = vrot.lane.b32.xlu1 %v5051_v55, %s3481_s11  ;;  %2198 = vrot.lane.b32.xlu2 %v5051_v55, %s3480_s10  ;;  %v2232_v45 = vmul.f32 0.8864196, %v5051_v55 }
 0x608   : > { %2190 = vperm.xlu0 %3387, %v5051_v55  }
 0x60a   : > { %v2162_v51 = vpop.f32.mrf.mxu1 }
 0x60b   : > { %v2166_v44 = vadd.f32 %v2162_v51, %v5964_v4 }
 0x60d   : > { %v5064_v2 = vadd.f32 %v2178_v13, %v2166_v44 }
 0x60f   : > { %2249 = vperm.xlu1 %3404, %v5051_v55   ;;  %2236 = vrot.lane.b32.xlu2 %v5051_v55, %s3483_s13  ;;  %5965 = vst [vmem:[#allocation10_spill] sm:$0xff] %v5064_v2  ;;  %v2233_v56 = vmul.f32 0.8864196, %v5064_v2 }
 0x610   : > { %2220 = vrot.lane.b32.xlu0 %v5051_v55, %s3482_s12 }
 0x617   : > { %3405 = vset.pattern.permute.xlu1 %v5877_v61  ;;  %2284 = vrot.lane.b32.xlu2 %v5051_v55, %s3485_s15 }
 0x618   : > { %2256 = vrot.lane.b32.xlu0 %v5051_v55, %s3484_s14  ;;  %2195 = vperm.xlu1 %3405, %v5064_v2  }
 0x61f   : > { %2210 = vrot.lane.b32.xlu2 %v5064_v2, %s3481_s11 }
 0x620   : > { %2200 = vrot.lane.b32.xlu0 %v5064_v2, %s3480_s10  ;;  %2222 = vrot.lane.b32.xlu1 %v5064_v2, %s3482_s12 }
 0x627   : > { %2253 = vperm.xlu2 %3406, %v5064_v2  }
 0x628   : > { %2238 = vrot.lane.b32.xlu0 %v5064_v2, %s3483_s13  ;;  %2258 = vrot.lane.b32.xlu1 %v5064_v2, %s3484_s14 }
 0x62f   : > { %3407 = vset.pattern.permute.xlu2 %v5877_v61 }
 0x630   : > { %2286 = vrot.lane.b32.xlu0 %v5064_v2, %s3485_s15  ;;  %2298 = vperm.xlu1 %3405, %v3293_v35  }
 0x631   : > { %2303 = vperm.xlu2 %3407, %v3294_v22  }
 0x638   : > { %2622 = vperm.xlu0 %3387, %v3295_v21   ;;  %2627 = vperm.xlu1 %3405, %v3296_v28  }
 0x640   : > { %3408 = vset.pattern.permute.xlu1 %v5940_v33 }
 0x661   : > { %v2199_v62 = vpop.permute.xlu2 %2198 }
 0x669   : > { %v2237_v10 = vpop.permute.xlu2 %2236 }
 0x66a   : > { %v2242_v43 = vsel %vm5970_vm12, %v2237_v10, %v5051_v55 }
 0x66b   : > { %v2244_v51 = vmul.f32 -0.11531475, %v2242_v43 }
 0x671   : > { %v5101_v7 = vpop.permute.xlu2 %2284 }
 0x679   : > { %v2209_v12 = vpop.permute.xlu1 %2208  ;;  %v2211_v54 = vpop.permute.xlu2 %2210 }
 0x67a   : > { %v2191_v57 = vpop.permute.xlu0 %2190 }
 0x67b   : > { %v2204_v46 = vsel %vm5966_vm8, %v2191_v57, %v2199_v62  ;;  %v2214_v3 = vsel %vm5967_vm6, %v2191_v57, %v2209_v12 }
 0x67c   : > { %v2206_v27 = vmul.f32 0.004057933, %v2204_v46  ;;  %v2216_v38 = vmul.f32 -0.05108693, %v2214_v3 }
 0x67e   : > { %v2218_v32 = vadd.f32 %v2216_v38, %v2206_v27 }
 0x681   : > { %v5099_v31 = vpop.permute.xlu1 %2249  ;;  %v2254_v34 = vpop.permute.xlu2 %2253 }
 0x682   : > { %v2221_v0 = vpop.permute.xlu0 %2220 }
 0x683   : > { %v2226_v49 = vsel %vm270_vm2, %v5051_v55, %v2221_v0 }
 0x684   : > { %v2228_v52 = vmul.f32 0.25714523, %v2226_v49  ;;  %v2270_v21 = vmul.f32 -0.11531475, %v2226_v49 }
 0x686   : > { %v2230_v53 = vadd.f32 %v2228_v52, %v2218_v32  ;;  %v2276_v52 = vmul.f32 0.25714523, %v2242_v43 }
 0x688   : > { %v2234_v47 = vadd.f32 %v2232_v45, %v2230_v53 }
 0x68a   : > { %v2257_v48 = vpop.permute.xlu0 %2256  ;;  %v2196_v58 = vpop.permute.xlu1 %2195  ;;  %v2246_v22 = vadd.f32 %v2244_v51, %v2234_v47 }
 0x68b   : > { %v2215_v6 = vsel %vm5968_vm5, %v2196_v58, %v2211_v54  ;;  %v2262_v5 = vsel %vm5971_vm13, %v2257_v48, %v5099_v31  ;;  %v2304_v44 = vpop.permute.xlu2 %2303 }
 0x68c   : > { %v2217_v16 = vmul.f32 -0.05108693, %v2215_v6  ;;  %v2269_v30 = vmul.f32 0.018778928, %v2215_v6  ;;  %v2264_v4 = vmul.f32 0.018778928, %v2262_v5 }
 0x68d   : > { %v2280_v32 = vmul.f32 -0.05108693, %v2262_v5 }
 0x68e   : > { %v5128_v48 = vadd.f32 %v2264_v4, %v2246_v22 }
 0x690   : > { %5976 = vst [vmem:[#allocation9_spill] sm:$0xff] %v5128_v48 }
 0x692   : > { %v2201_v26 = vpop.permute.xlu0 %2200  ;;  %v2223_v23 = vpop.permute.xlu1 %2222 }
 0x693   : > { %v2205_v41 = vsel %vm5969_vm7, %v2196_v58, %v2201_v26  ;;  %v2227_v63 = vsel %vm270_vm2, %v5064_v2, %v2223_v23  ;;  %v2268_v58 = vmul.f32 0.018778928, %v2214_v3 }
 0x694   : > { %v2207_v50 = vmul.f32 0.004057933, %v2205_v41  ;;  %v2229_v42 = vmul.f32 0.25714523, %v2227_v63  ;;  %v2271_v25 = vmul.f32 -0.11531475, %v2227_v63 }
 0x695   : > { %v2272_v49 = vadd.f32 %v2270_v21, %v2268_v58 }
 0x696   : > { %v2219_v24 = vadd.f32 %v2217_v16, %v2207_v50  ;;  %v2273_v20 = vadd.f32 %v2271_v25, %v2269_v30 }
 0x697   : > { %v2274_v50 = vadd.f32 %v2272_v49, %v2232_v45 }
 0x698   : > { %v2231_v39 = vadd.f32 %v2229_v42, %v2219_v24  ;;  %v2275_v13 = vadd.f32 %v2273_v20, %v2233_v56  ;;  %v2290_v24 = vsel %vm5978_vm11, %v5101_v7, %v5099_v31 }
 0x699   : > { %v2278_v45 = vadd.f32 %v2276_v52, %v2274_v50 }
 0x69a   : > { %v2239_v18 = vpop.permute.xlu0 %2238  ;;  %v2259_v40 = vpop.permute.xlu1 %2258  ;;  %v2235_v37 = vadd.f32 %v2233_v56, %v2231_v39  ;;  %v2292_v56 = vmul.f32 0.004057933, %v2290_v24 }
 0x69b   : > { %v2243_v11 = vsel %vm5972_vm14, %v2239_v18, %v5064_v2  ;;  %v2263_v60 = vsel %vm5973_vm15, %v2259_v40, %v2254_v34  ;;  %v2282_v40 = vadd.f32 %v2280_v32, %v2278_v45 }
 0x69c   : > { %v2245_v19 = vmul.f32 -0.11531475, %v2243_v11  ;;  %v2265_v59 = vmul.f32 0.018778928, %v2263_v60  ;;  %v2277_v1 = vmul.f32 0.25714523, %v2243_v11 }
 0x69d   : > { %v2281_v62 = vmul.f32 -0.05108693, %v2263_v60 }
 0x69e   : > { %v2247_v9 = vadd.f32 %v2245_v19, %v2235_v37  ;;  %v2279_v28 = vadd.f32 %v2277_v1, %v2275_v13 }
 0x6a0   : > { %v5120_v35 = vadd.f32 %v2265_v59, %v2247_v9  ;;  %v2283_v26 = vadd.f32 %v2281_v62, %v2279_v28 }
 0x6a2   : > { %5974 = vst [vmem:[#allocation7_spill] sm:$0xff] %v5120_v35  ;;  %v5123_v10 = vmul.f32 %v2304_v44, %v5120_v35  ;;  %v2287_v12 = vpop.permute.xlu0 %2286  ;;  %v5125_v57 = vpop.permute.xlu1 %2298 }
 0x6a3   : > { %v2291_v0 = vsel %vm5975_vm10, %v2287_v12, %v2254_v34  ;;  %v5133_v6 = vmul.f32 %v5125_v57, %v5128_v48  ;;  %v5165_v12 = vadd.f32 %v2292_v56, %v2282_v40 }
 0x6a4   : > { %v2466_v54 = vand.u32 2139095040, %v5123_v10  ;;  %v2293_v46 = vmul.f32 0.004057933, %v2291_v0  ;;  %v5855_v38 = vand.u32 2147483647, %v5123_v10 }
 0x6a5   : > { %v2311_v27 = vand.u32 2139095040, %v5133_v6  ;;  %v5857_v16 = vand.u32 2147483647, %v5133_v6  ;;  %5979 = vst [vmem:[#allocation6_spill] sm:$0xff] %v5165_v12 }
 0x6a6   : > { %v2467_v23 = vshrl.u32 %v2466_v54, 23  ;;  %v5137_v63 = vadd.f32 %v2293_v46, %v2283_v26  ;;  %v2470_v34 = vand.u32 8388607, %v5855_v38 }
 0x6a7   : > { %v2312_v3 = vshrl.u32 %v2311_v27, 23  ;;  %v2315_v30 = vand.u32 8388607, %v5857_v16 }
 0x6a8   : > { %v3300_v41 = vadd.s32 4294967169, %v2467_v23  ;;  %5977 = vst [vmem:[#allocation5_spill] sm:$0xff] %v5137_v63  ;;  %v5146_v39 = vmul.f32 %v2304_v44, %v5137_v63  ;;  %v2471_v43 = vor.u32 8388608, %v2470_v34 }
 0x6a9   : > { %v3297_v53 = vadd.s32 4294967169, %v2312_v3  ;;  %v2316_v60 = vor.u32 8388608, %v2315_v30  ;;  %v5187_v3 = vmul.f32 %v5125_v57, %v5165_v12 }
 0x6aa   : > { %v2473_v42 = vadd.s32 1, %v3300_v41  ;;  %v2794_v31 = vand.u32 2139095040, %v5146_v39  ;;  %v5170_v58 = vshll.u32 %v2471_v43, 8 }
 0x6ab   : > { %v2318_v20 = vadd.s32 1, %v3297_v53  ;;  %v5172_v54 = vshll.u32 %v2316_v60, 8  ;;  %v5856_v40 = vand.u32 2147483647, %v5187_v3 }
 0x6ac   : > { %vm2474_vm1 = vcmp.gt.s32.totalorder %v2473_v42, 0  ;;  %v2795_v21 = vshrl.u32 %v2794_v31, 23  ;;  %v5201_v24 = vand.u32 65535, %v5170_v58  ;;  %v5204_v57 = vshrl.u32 %v5170_v58, 16 }
 0x6ad   : > { %v2475_v25 = vsel %vm2474_vm1, %v2473_v42, 0  ;;  %vm2319_vm0 = vcmp.gt.s32.totalorder %v2318_v20, 0  ;;  %v5210_v53 = vand.u32 65535, %v5172_v54  ;;  %v5213_v30 = vshrl.u32 %v5172_v54, 16 }
 0x6ae   : > { %v2477_v18 = vand.u32 31, %v2475_v25  ;;  %v5151_v7 = vshrl.u32 %v2475_v25, 5  ;;  %v3306_v27 = vadd.s32 4294967169, %v2795_v21  ;;  %v2320_v41 = vsel %vm2319_vm0, %v2318_v20, 0 }
 0x6af   : > { %v2322_v32 = vand.u32 31, %v2320_v41 }
 0x6b0   : > { %v2478_v11 = vsub.s32 32, %v2477_v18  ;;  %v2483_v5 = vshll.u32 %v5911_v36, %v2477_v18  ;;  %v2486_v59 = vshll.u32 %v5912_v15, %v2477_v18  ;;  %v2489_v9 = vshll.u32 %v5913_v29, %v2477_v18 }
 0x6b1   : > { %v2492_v51 = vshll.u32 %v5933_v14, %v2477_v18  ;;  %v2480_v44 = vshll.u32 %v5916_v17, %v2477_v18  ;;  %vm2498_vm3 = vcmp.lt.s32.totalorder %v5151_v7, 4  ;;  %vm2495_vm4 = vcmp.lt.s32.totalorder %v5151_v7, 1 }
 0x6b2   : > { %v2481_v37 = vshrl.u32 %v5911_v36, %v2478_v11  ;;  %v2484_v19 = vshrl.u32 %v5912_v15, %v2478_v11  ;;  %v2487_v47 = vshrl.u32 %v5913_v29, %v2478_v11  ;;  %v2490_v1 = vshrl.u32 %v5933_v14, %v2478_v11 }
 0x6b3   : > { %v2493_v4 = vshrl.u32 %v5934_v8, %v2478_v11  ;;  %vm2497_vm9 = vcmp.lt.s32.totalorder %v5151_v7, 3  ;;  %vm2496_vm8 = vcmp.lt.s32.totalorder %v5151_v7, 2  ;;  %v2479_v34 = vshrl.u32 %v5916_v17, %v2478_v11 }
 0x6b4   : > { %v5163_v13 = vor.u32 %v2484_v19, %v2483_v5  ;;  %v2488_v22 = vor.u32 %v2487_v47, %v2486_v59  ;;  %v2491_v28 = vor.u32 %v2490_v1, %v2489_v9  ;;  %v5167_v0 = vor.u32 %v2481_v37, %v2480_v44 }
 0x6b5   : > { %v2494_v62 = vor.u32 %v2493_v4, %v2492_v51  ;;  %v5207_v25 = vadd.s32 1, %v3306_v27  ;;  %v2323_v56 = vsub.s32 32, %v2322_v32  ;;  %v2321_v11 = vshrl.u32 %v2320_v41, 5 }
 0x6b6   : > { %v2504_v46 = vsel %vm2498_vm3, %v2491_v28, 920167782  ;;  %v2507_v26 = vsel %vm2495_vm4, %v5163_v13, %v2488_v22  ;;  %v2503_v50 = vsel %vm2495_vm4, %v5167_v0, %v5163_v13  ;;  %v2500_v45 = vsel %vm2498_vm3, %v2488_v22, 2102212464 }
 0x6b7   : > { %v2508_v49 = vsel %vm2498_vm3, %v2494_v62, 1326507024  ;;  %v2505_v42 = vsel %vm2497_vm9, %v2488_v22, %v2504_v46  ;;  %v2325_v31 = vshll.u32 %v5916_v17, %v2322_v32  ;;  %v2328_v5 = vshll.u32 %v5911_v36, %v2322_v32 }
 0x6b8   : > { %v2509_v23 = vsel %vm2497_vm9, %v2491_v28, %v2508_v49  ;;  %v5219_v18 = vsel %vm2496_vm8, %v2503_v50, %v2505_v42  ;;  %v2326_v60 = vshrl.u32 %v5911_v36, %v2323_v56  ;;  %v2329_v20 = vshrl.u32 %v5912_v15, %v2323_v56 }
 0x6b9   : > { %v5198_v52 = vsel %vm2496_vm8, %v2507_v26, %v2509_v23  ;;  %v2331_v37 = vshll.u32 %v5912_v15, %v2322_v32  ;;  %v2332_v19 = vshrl.u32 %v5913_v29, %v2323_v56  ;;  %v2334_v47 = vshll.u32 %v5913_v29, %v2322_v32 }
 0x6ba   : > { %v5859_v43 = vand.u32 65535, %v5198_v52  ;;  %v2515_v59 = vshrl.u32 %v5198_v52, 16  ;;  %v2335_v9 = vshrl.u32 %v5933_v14, %v2323_v56  ;;  %v2337_v1 = vshll.u32 %v5933_v14, %v2322_v32 }
 0x6bb   : > { %v2327_v51 = vor.u32 %v2326_v60, %v2325_v31  ;;  %v2330_v4 = vor.u32 %v2329_v20, %v2328_v5  ;;  %v2333_v44 = vor.u32 %v2332_v19, %v2331_v37  ;;  %v2338_v22 = vshrl.u32 %v5934_v8, %v2323_v56 }
 0x6bc   : > { %v5858_v21 = vshrl.u32 %v5219_v18, 16  ;;  %v2324_v28 = vshrl.u32 %v5916_v17, %v2323_v56  ;;  %v2336_v62 = vor.u32 %v2335_v9, %v2334_v47  ;;  %vm2340_vm6 = vcmp.lt.s32.totalorder %v2321_v11, 1 }
 0x6bd   : > { %v2339_v46 = vor.u32 %v2338_v22, %v2337_v1  ;;  %vm2342_vm5 = vcmp.lt.s32.totalorder %v2321_v11, 3  ;;  %vm2343_vm7 = vcmp.lt.s32.totalorder %v2321_v11, 4  ;;  %v2348_v49 = vsel %vm2340_vm6, %v2327_v51, %v2330_v4 }
 0x6be   : > { %v2345_v26 = vsel %vm2343_vm7, %v2333_v44, 2102212464  ;;  %v2349_v23 = vsel %vm2343_vm7, %v2336_v62, 920167782  ;;  %v2352_v27 = vsel %vm2340_vm6, %v2330_v4, %v2333_v44  ;;  %v2639_v41 = vand.u32 2139095040, %v5187_v3 }
 0x6bf   : > { %v5238_v50 = vmul.u32 %v2515_v59, %v5201_v24  ;;  %vm2341_vm12 = vcmp.lt.s32.totalorder %v2321_v11, 2  ;;  %v2350_v42 = vsel %vm2342_vm5, %v2333_v44, %v2349_v23  ;;  %v2353_v32 = vsel %vm2343_vm7, %v2339_v46, 1326507024 }
 0x6c0   : > { %v2344_v31 = vsel %vm2340_vm6, %v2324_v28, %v2327_v51  ;;  %v2351_v56 = vsel %vm2341_vm12, %v2348_v49, %v2350_v42  ;;  %v2354_v5 = vsel %vm2342_vm5, %v2336_v62, %v2353_v32  ;;  %v2640_v60 = vshrl.u32 %v2639_v41, 23 }
 0x6c1   : > { %v2346_v20 = vsel %vm2342_vm5, %v2330_v4, %v2345_v26  ;;  %v2355_v37 = vsel %vm2341_vm12, %v2352_v27, %v2354_v5  ;;  %v2382_v19 = vshrl.u32 %v2351_v56, 16  ;;  %v2643_v47 = vand.u32 8388607, %v5856_v40 }
 0x6c2   : > { %v5247_v9 = vsel %vm2495_vm4, %v2479_v34, %v5167_v0  ;;  %v2359_v1 = vand.u32 65535, %v2355_v37  ;;  %v2360_v44 = vshrl.u32 %v2355_v37, 16  ;;  %v3303_v22 = vadd.s32 4294967169, %v2640_v60 }
 0x6c3   : > { %v5252_v51 = vsel %vm2497_vm9, %v5163_v13, %v2500_v45  ;;  %v5257_v4 = vmul.u32 %v5859_v43, %v5201_v24  ;;  %v5860_v28 = vshll.u32 %v5238_v50, 16  ;;  %v5262_v0 = vsel %vm2341_vm12, %v2344_v31, %v2346_v20 }
 0x6c4   : > { %v5265_v34 = vmul.u32 %v2360_v44, %v5210_v53  ;;  %v2381_v46 = vand.u32 65535, %v2351_v56  ;;  %v2646_v49 = vadd.s32 1, %v3303_v22  ;;  %v5268_v13 = vmul.u32 %v2515_v59, %v5204_v57 }
 0x6c5   : > { %v5273_v45 = vmul.u32 %v5858_v21, %v5201_v24  ;;  %v5276_v26 = vmul.u32 %v2382_v19, %v5210_v53  ;;  %v2644_v23 = vor.u32 8388608, %v2643_v47  ;;  %v2361_v11 = vmul.u32 %v2359_v1, %v5210_v53 }
 0x6c6   : > { %v2365_v27 = vshll.u32 %v5265_v34, 16  ;;  %vm2647_vm13 = vcmp.gt.s32.totalorder %v2646_v49, 0  ;;  %v5281_v41 = vmul.u32 %v2359_v1, %v5213_v30  ;;  %v5286_v59 = vadd.s32 %v5860_v28, %v5257_v4 }
 0x6c7   : > { %v2386_v42 = vmul.u32 %v2382_v19, %v5213_v30  ;;  %v2648_v31 = vsel %vm2647_vm13, %v2646_v49, 0  ;;  %v2364_v56 = vmul.u32 %v2360_v44, %v5213_v30  ;;  %v2383_v60 = vmul.u32 %v2381_v46, %v5210_v53 }
 0x6c8   : > { %vm2369_vm14 = vc.u32 %v2361_v11, %v2365_v27  ;;  %v2650_v5 = vand.u32 31, %v2648_v31  ;;  %v5293_v20 = vshll.u32 %v2644_v23, 8  ;;  %v2366_v37 = vshrl.u32 %v5265_v34, 16 }
 0x6c9   : > { %v5297_v47 = vmul.u32 %v2381_v46, %v5213_v30  ;;  %v2387_v1 = vshll.u32 %v5276_v26, 16  ;;  %v2371_v19 = vadd.s32 %v2365_v27, %v2361_v11  ;;  %v2367_v38 = vshll.u32 %v5281_v41, 16 }
 0x6ca   : > { %v2651_v22 = vsub.s32 32, %v2650_v5  ;;  %v5302_v44 = vshrl.u32 %v2648_v31, 5  ;;  %v2653_v40 = vshll.u32 %v5916_v17, %v2650_v5  ;;  %v2656_v53 = vshll.u32 %v5911_v36, %v2650_v5 }
 0x6cb   : > { %v2370_v23 = vsel %vm2369_vm14, 1, %v5877_v61  ;;  %v2659_v46 = vshll.u32 %v5912_v15, %v2650_v5  ;;  %v2662_v27 = vshll.u32 %v5913_v29, %v2650_v5  ;;  %v2665_v31 = vshll.u32 %v5933_v14, %v2650_v5 }
 0x6cc   : > { %v2654_v34 = vshrl.u32 %v5911_v36, %v2651_v22  ;;  %v2657_v30 = vshrl.u32 %v5912_v15, %v2651_v22  ;;  %v2660_v11 = vshrl.u32 %v5913_v29, %v2651_v22  ;;  %v2663_v16 = vshrl.u32 %v5933_v14, %v2651_v22 }
 0x6cd   : > { %v2666_v62 = vshrl.u32 %v5934_v8, %v2651_v22  ;;  %v2372_v49 = vadd.s32 %v2370_v23, %v2364_v56  ;;  %vm2668_vm15 = vcmp.lt.s32.totalorder %v5302_v44, 1  ;;  %vm2373_vm10 = vc.u32 %v2371_v19, %v2367_v38 }
 0x6ce   : > { %v2655_v32 = vor.u32 %v2654_v34, %v2653_v40  ;;  %v5315_v21 = vor.u32 %v2657_v30, %v2656_v53  ;;  %v2661_v43 = vor.u32 %v2660_v11, %v2659_v46  ;;  %v2664_v28 = vor.u32 %v2663_v16, %v2662_v27 }
 0x6cf   : > { %v2667_v2 = vor.u32 %v2666_v62, %v2665_v31  ;;  %vm2671_vm11 = vcmp.lt.s32.totalorder %v5302_v44, 4  ;;  %vm2391_vm1 = vc.u32 %v2383_v60, %v2387_v1  ;;  %vm2670_vm0 = vcmp.lt.s32.totalorder %v5302_v44, 3 }
 0x6d0   : > { %v2676_v55 = vsel %vm2668_vm15, %v2655_v32, %v5315_v21  ;;  %v2680_v5 = vsel %vm2668_vm15, %v5315_v21, %v2661_v43  ;;  %v2677_v16 = vsel %vm2671_vm11, %v2664_v28, 920167782  ;;  %v2374_v38 = vsel %vm2373_vm10, 1, %v5877_v61 }
 0x6d1   : > { %v2681_v40 = vsel %vm2671_vm11, %v2667_v2, 1326507024  ;;  %vm2669_vm3 = vcmp.lt.s32.totalorder %v5302_v44, 2  ;;  %v2678_v62 = vsel %vm2670_vm0, %v2661_v43, %v2677_v16  ;;  %v2376_v19 = vadd.s32 %v2374_v38, %v2372_v49 }
 0x6d2   : > { %v2682_v56 = vsel %vm2670_vm0, %v2664_v28, %v2681_v40  ;;  %v2679_v53 = vsel %vm2669_vm3, %v2676_v55, %v2678_v62  ;;  %v2685_v34 = vand.u32 65535, %v5293_v20  ;;  %v2392_v2 = vsel %vm2391_vm1, 1, %v5877_v61 }
 0x6d3   : > { %v2683_v23 = vsel %vm2669_vm3, %v2680_v5, %v2682_v56  ;;  %v2710_v11 = vshrl.u32 %v2679_v53, 16  ;;  %v2389_v27 = vshll.u32 %v5297_v47, 16  ;;  %v2652_v31 = vshrl.u32 %v5916_v17, %v2651_v22 }
 0x6d4   : > { %v2687_v30 = vand.u32 65535, %v2683_v23  ;;  %v2688_v46 = vshrl.u32 %v2683_v23, 16  ;;  %v2377_v16 = vadd.s32 %v2376_v19, %v2366_v37  ;;  %v2393_v28 = vadd.s32 %v2387_v1, %v2383_v60 }
 0x6d5   : > { %v2394_v49 = vadd.s32 %v2392_v2, %v2386_v42  ;;  %v2686_v40 = vshrl.u32 %v5293_v20, 16  ;;  %v2368_v38 = vshrl.u32 %v5281_v41, 16  ;;  %v2390_v5 = vshrl.u32 %v5297_v47, 16 }
 0x6d6   : > { %v2690_v55 = vmul.u32 %v2688_v46, %v2685_v34  ;;  %v2672_v62 = vsel %vm2668_vm15, %v2652_v31, %v2655_v32  ;;  %v2689_v56 = vmul.u32 %v2687_v30, %v2685_v34  ;;  %v2709_v23 = vand.u32 65535, %v2679_v53 }
 0x6d7   : > { %vm2395_vm4 = vc.u32 %v2393_v28, %v2389_v27  ;;  %v5980_v63 = vshll.u32 %v5238_v50, 16  ;;  %v2712_v60 = vmul.u32 %v2710_v11, %v2685_v34  ;;  %v2691_v41 = vmul.u32 %v2687_v30, %v2686_v40 }
 0x6d8   : > { %v2693_v42 = vshll.u32 %v2690_v55, 16  ;;  %v2396_v1 = vsel %vm2395_vm4, 1, %v5877_v61  ;;  %v2673_v47 = vsel %vm2671_vm11, %v2661_v43, 2102212464  ;;  %v2692_v22 = vmul.u32 %v2688_v46, %v2686_v40 }
 0x6d9   : > { %vm5352_vm9 = vc.u32 %v5257_v4, %v5980_v63  ;;  %v5359_v32 = vadd.s32 %v2377_v16, %v2368_v38  ;;  %v2398_v19 = vadd.s32 %v2396_v1, %v2394_v49  ;;  %v2714_v2 = vmul.u32 %v2710_v11, %v2686_v40 }
 0x6da   : > { %vm2697_vm6 = vc.u32 %v2689_v56, %v2693_v42  ;;  %v2699_v53 = vadd.s32 %v2693_v42, %v2689_v56  ;;  %v2695_v31 = vshll.u32 %v2691_v41, 16  ;;  %v5361_v63 = vadd.s32 %v2393_v28, %v2389_v27 }
 0x6db   : > { %v5983_v4 = vshrl.u32 %v5276_v26, 16  ;;  %v2698_v33 = vsel %vm2697_vm6, 1, %v5877_v61  ;;  %v2713_v12 = vmul.u32 %v2709_v23, %v2686_v40  ;;  %v2711_v48 = vmul.u32 %v2709_v23, %v2685_v34 }
 0x6dc   : > { %v2700_v30 = vadd.s32 %v2698_v33, %v2692_v22  ;;  %vm2701_vm5 = vc.u32 %v2699_v53, %v2695_v31  ;;  %v2715_v43 = vshll.u32 %v2712_v60, 16  ;;  %vm2802_vm7 = vcmp.gt.s32.totalorder %v5207_v25, 0 }
 0x6dd   : > { %v2399_v35 = vadd.s32 %v2398_v19, %v5983_v4  ;;  %vm2403_vm12 = vc.u32 %v5359_v32, %v5361_v63  ;;  %v2694_v11 = vshrl.u32 %v2690_v55, 16  ;;  %v2702_v27 = vsel %vm2701_vm5, 1, %v5877_v61 }
 0x6de   : > { %v2704_v16 = vadd.s32 %v2702_v27, %v2700_v30  ;;  %v2717_v28 = vshll.u32 %v2713_v12, 16  ;;  %vm2719_vm13 = vc.u32 %v2711_v48, %v2715_v43  ;;  %v2721_v26 = vadd.s32 %v2715_v43, %v2711_v48 }
 0x6df   : > { %v2400_v46 = vadd.s32 %v2399_v35, %v2390_v5  ;;  %v2674_v33 = vsel %vm2670_vm0, %v5315_v21, %v2673_v47  ;;  %v2720_v34 = vsel %vm2719_vm13, 1, %v5877_v61  ;;  %v5984_v35 = vand.u32 65535, %v5198_v52 }
 0x6e0   : > { %v2696_v38 = vshrl.u32 %v2691_v41, 16  ;;  %v2705_v5 = vadd.s32 %v2704_v16, %v2694_v11  ;;  %v2722_v55 = vadd.s32 %v2720_v34, %v2714_v2  ;;  %vm2723_vm14 = vc.u32 %v2721_v26, %v2717_v28 }
 0x6e1   : > { %v2404_v49 = vadd.s32 1, %v2400_v46  ;;  %v2518_v40 = vmul.u32 %v5984_v35, %v5204_v57  ;;  %v5985_v56 = vshrl.u32 %v5219_v18, 16  ;;  %v2724_v21 = vsel %vm2723_vm14, 1, %v5877_v61 }
 0x6e2   : > { %v5986_v1 = vmul.u32 %v5172_v54, %v5262_v0  ;;  %v5387_v47 = vadd.s32 %v2705_v5, %v2696_v38  ;;  %v2716_v41 = vshrl.u32 %v2712_v60, 16  ;;  %v2726_v22 = vadd.s32 %v2724_v21, %v2722_v55 }
 0x6e3   : > { %v2541_v23 = vmul.u32 %v5985_v56, %v5204_v57  ;;  %v2405_v48 = vsel %vm2403_vm12, %v2404_v49, %v2400_v46  ;;  %v2522_v42 = vshll.u32 %v2518_v40, 16  ;;  %v2675_v19 = vsel %vm2669_vm3, %v2672_v62, %v2674_v33 }
 0x6e4   : > { %v2406_v52 = vadd.s32 %v2405_v48, %v5986_v1  ;;  %v2525_v53 = vsel %vm5352_vm9, 1, %v5877_v61  ;;  %v5987_v2 = vand.u32 65535, %v5219_v18  ;;  %v2718_v54 = vshrl.u32 %v2713_v12, 16 }
 0x6e5   : > { %vm2528_vm15 = vc.u32 %v5286_v59, %v2522_v42  ;;  %v5398_v0 = vadd.s32 %v2721_v26, %v2717_v28  ;;  %v2727_v30 = vadd.s32 %v2726_v22, %v2716_v41  ;;  %v2527_v60 = vadd.s32 %v2525_v53, %v5268_v13 }
 0x6e6   : > { %v2540_v31 = vmul.u32 %v5987_v2, %v5204_v57  ;;  %v2407_v4 = vadd.s32 536870912, %v2406_v52  ;;  %v2529_v44 = vsel %vm2528_vm15, 1, %v5877_v61  ;;  %v5988_v62 = vmov %v5987_v2 }
 0x6e7   : > { %v2538_v37 = vmul.u32 %v5988_v62, %v5201_v24  ;;  %v2542_v43 = vshll.u32 %v5273_v45, 16  ;;  %v2728_v46 = vadd.s32 %v2727_v30, %v2718_v54  ;;  %vm2731_vm10 = vc.u32 %v5387_v47, %v5398_v0 }
 0x6e8   : > { %v2408_v59 = vshrl.u32 %v2407_v4, 30  ;;  %v2521_v12 = vshrl.u32 %v5238_v50, 16  ;;  %v2531_v57 = vadd.s32 %v2529_v44, %v2527_v60  ;;  %v2544_v11 = vshll.u32 %v2540_v31, 16 }
 0x6e9   : > { %vm2546_vm11 = vc.u32 %v2538_v37, %v2542_v43  ;;  %v2548_v27 = vadd.s32 %v2542_v43, %v2538_v37  ;;  %v2803_v13 = vsel %vm2802_vm7, %v5207_v25, 0  ;;  %v2732_v18 = vadd.s32 1, %v2728_v46 }
 0x6ea   : > { %v2409_v16 = vshll.u32 %v2408_v59, 30  ;;  %v2547_v24 = vsel %vm2546_vm11, 1, %v5877_v61  ;;  %v2729_v28 = vmul.u32 %v5293_v20, %v2675_v19  ;;  %v2532_v26 = vadd.s32 %v2531_v57, %v2521_v12 }
 0x6eb   : > { %v2549_v33 = vadd.s32 %v2547_v24, %v2541_v23  ;;  %vm2550_vm1 = vc.u32 %v2548_v27, %v2544_v11  ;;  %v2733_v34 = vsel %vm2731_vm10, %v2732_v18, %v2728_v46  ;;  %v2523_v50 = vshrl.u32 %v2518_v40, 16 }
 0x6ec   : > { %v2410_v49 = vsub.s32 %v2406_v52, %v2409_v16  ;;  %v2551_v35 = vsel %vm2550_vm1, 1, %v5877_v61  ;;  %v2432_v38 = vsub.s32 4, %v2408_v59  ;;  %v2734_v5 = vadd.s32 %v2733_v34, %v2729_v28 }
 0x6ed   : > { %v2543_v55 = vshrl.u32 %v5273_v45, 16  ;;  %v2553_v56 = vadd.s32 %v2551_v35, %v2549_v33  ;;  %v2533_v48 = vadd.s32 %v2532_v26, %v2523_v50  ;;  %v2502_v20 = vsel %vm2496_vm8, %v5247_v9, %v5252_v51 }
 0x6ee   : > { %vm2411_vm0 = vcmp.lt.s32.totalorder %v2410_v49, 0  ;;  %v2412_v25 = vsub.s32 0, %v2410_v49  ;;  %v2735_v23 = vadd.s32 536870912, %v2734_v5  ;;  %v2545_v21 = vshrl.u32 %v2540_v31, 16 }
 0x6ef   : > { %v2554_v42 = vadd.s32 %v2553_v56, %v2543_v55  ;;  %v5420_v1 = vand.u32 31, %v2803_v13  ;;  %vm2310_vm3 = vcmp.lt.s32.totalorder %v5133_v6, 0  ;;  %v2552_v52 = vadd.s32 %v2548_v27, %v2544_v11 }
 0x6f0   : > { %v2413_v40 = vsel %vm2411_vm0, %v2412_v25, %v2410_v49  ;;  %v2433_v45 = vsel %vm2310_vm3, %v2432_v38, %v2408_v59  ;;  %v2736_v22 = vshrl.u32 %v2735_v23, 30  ;;  %v2556_v53 = vmul.u32 %v5170_v58, %v2502_v20 }
 0x6f1   : > { %v2414_v41 = vclz %v2413_v40  ;;  %v2555_v19 = vadd.s32 %v2554_v42, %v2545_v21  ;;  %v5426_v2 = vshrl.u32 %v2803_v13, 5  ;;  %vm2558_vm8 = vc.u32 %v2533_v48, %v2552_v52 }
 0x6f2   : > { %v5989_v7 = vand.u32 2147483647, %v5133_v6  ;;  %v2737_v31 = vshll.u32 %v2736_v22, 30  ;;  %v5435_v54 = vsub.s32 32, %v5420_v1  ;;  %vm2638_vm9 = vcmp.lt.s32.totalorder %v5187_v3, 0 }
 0x6f3   : > { %v3298_v51 = vadd.s32 4294967294, %v2414_v41  ;;  %v2559_v4 = vadd.s32 1, %v2555_v19  ;;  %v2760_v30 = vsub.s32 4, %v2736_v22  ;;  %v2791_v62 = vand.u32 2147483647, %v5146_v39 }
 0x6f4   : > { %vm5430_vm4 = vcmp.le.f32.partialorder %v5989_v7, 0.7853982  ;;  %v5440_v60 = vsub.s32 %v2734_v5, %v2737_v31  ;;  %v2402_v37 = vadd.s32 %v5361_v63, %v5359_v32  ;;  %v5992_v59 = vand.u32 2147483647, %v5187_v3 }
 0x6f5   : > { %v2435_v58 = vsel %vm5430_vm4, 0, %v2433_v45  ;;  %vm3299_vm6 = vcmp.lt.s32.totalorder %v3298_v51, 0  ;;  %v2560_v44 = vsel %vm2558_vm8, %v2559_v4, %v2555_v19  ;;  %v2730_v27 = vadd.s32 %v5398_v0, %v5387_v47 }
 0x6f6   : > { %v2417_v43 = vsel %vm3299_vm6, 0, %v3298_v51  ;;  %vm5447_vm5 = vcmp.le.f32.partialorder %v5992_v59, 0.7853982  ;;  %v2561_v12 = vadd.s32 %v2560_v44, %v2556_v53  ;;  %vm2739_vm7 = vcmp.lt.s32.totalorder %v5440_v60, 0 }
 0x6f7   : > { %v2418_v57 = vsub.s32 32, %v2417_v43  ;;  %v2422_v11 = vsub.s32 4294967266, %v2417_v43  ;;  %v2452_v13 = vadd.s32 3, %v2435_v58  ;;  %v2740_v16 = vsub.s32 0, %v5440_v60 }
 0x6f8   : > { %v2761_v32 = vsel %vm2638_vm9, %v2760_v30, %v2736_v22  ;;  %v2562_v63 = vadd.s32 536870912, %v2561_v12  ;;  %v2419_v18 = vshll.u32 %v2410_v49, %v2417_v43  ;;  %v5459_v26 = vand.u32 8388607, %v2791_v62 }
 0x6f9   : > { %v2420_v24 = vshrl.u32 %v2402_v37, %v2418_v57  ;;  %v2423_v28 = vadd.s32 127, %v2422_v11  ;;  %v2741_v33 = vsel %vm2739_vm7, %v2740_v16, %v5440_v60  ;;  %v5462_v34 = vadd.s32 %v2552_v52, %v2533_v48 }
 0x6fa   : > { %v2563_v47 = vshrl.u32 %v2562_v63, 30  ;;  %v2809_v0 = vshrl.u32 %v5911_v36, %v5435_v54  ;;  %vm2465_vm12 = vcmp.lt.s32.totalorder %v5123_v10, 0  ;;  %v2742_v38 = vclz %v2741_v33 }
 0x6fb   : > { %v2421_v50 = vor.u32 %v2420_v24, %v2419_v18  ;;  %v2424_v35 = vshll.u32 %v2423_v28, 23  ;;  %v2763_v49 = vsel %vm5447_vm5, 0, %v2761_v32  ;;  %v5469_v5 = vand.u32 3, %v2452_v13 }
 0x6fc   : > { %v2564_v55 = vshll.u32 %v2563_v47, 30  ;;  %v5473_v56 = vshrl.u32 %v5916_v17, %v5435_v54  ;;  %v2808_v25 = vshll.u32 %v5916_v17, %v5420_v1  ;;  %v3304_v20 = vadd.s32 4294967294, %v2742_v38 }
 0x6fd   : > { %v2425_v48 = vor.u32 4788187, %v2424_v35  ;;  %v2799_v23 = vor.u32 8388608, %v5459_v26  ;;  %v2811_v21 = vshll.u32 %v5911_v36, %v5420_v1  ;;  %v2780_v42 = vadd.s32 3, %v2763_v49 }
 0x6fe   : > { %v5995_v40 = vand.u32 2147483647, %v5123_v10  ;;  %v5486_v41 = vsub.s32 %v2561_v12, %v2564_v55  ;;  %v5488_v45 = vor.u32 %v2809_v0, %v2808_v25  ;;  %v2812_v17 = vshrl.u32 %v5912_v15, %v5435_v54 }
 0x6ff   : > { %v2426_v22 = vand.u32 2147483647, %v2425_v48  ;;  %v2428_v19 = vcvt.s32.f32 %v2421_v50  ;;  %vm3305_vm14 = vcmp.lt.s32.totalorder %v3304_v20, 0  ;;  %v2814_v36 = vshll.u32 %v5912_v15, %v5420_v1 }
 0x700   : > { %vm5482_vm13 = vcmp.le.f32.partialorder %v5995_v40, 0.7853982  ;;  %v2745_v53 = vsel %vm3305_vm14, 0, %v3304_v20  ;;  %vm2566_vm15 = vcmp.lt.s32.totalorder %v5486_v41, 0  ;;  %v2567_v7 = vsub.s32 0, %v5486_v41 }
 0x701   : > { %v2587_v51 = vsub.s32 4, %v2563_v47  ;;  %v2429_v31 = vmul.f32 %v2428_v19, %v2426_v22  ;;  %v2746_v4 = vsub.s32 32, %v2745_v53  ;;  %v2750_v58 = vsub.s32 4294967266, %v2745_v53 }
 0x702   : > { %v2815_v30 = vshrl.u32 %v5913_v29, %v5435_v54  ;;  %v2747_v44 = vshll.u32 %v5440_v60, %v2745_v53  ;;  %v5499_v37 = vand.u32 3, %v2780_v42  ;;  %v2568_v43 = vsel %vm2566_vm15, %v2567_v7, %v5486_v41 }
 0x703   : > { %v2818_v15 = vshrl.u32 %v5933_v14, %v5435_v54  ;;  %v2430_v59 = vxor.u32 2147483648, %v2429_v31  ;;  %v2748_v12 = vshrl.u32 %v2730_v27, %v2746_v4  ;;  %v2751_v57 = vadd.s32 127, %v2750_v58 }
 0x704   : > { %v2569_v11 = vclz %v2568_v43  ;;  %v5506_v13 = vsel %vm2465_vm12, %v2587_v51, %v2563_v47  ;;  %v5508_v16 = vor.u32 %v2812_v17, %v2811_v21  ;;  %v2817_v60 = vshll.u32 %v5913_v29, %v5420_v1 }
 0x705   : > { %v2821_v32 = vshrl.u32 %v5934_v8, %v5435_v54  ;;  %v2431_v63 = vsel %vm2310_vm3, %v2430_v59, %v2429_v31  ;;  %v2749_v18 = vor.u32 %v2748_v12, %v2747_v44  ;;  %v2752_v24 = vshll.u32 %v2751_v57, 23 }
 0x706   : > { %v3301_v27 = vadd.s32 4294967294, %v2569_v11  ;;  %v5519_v28 = vsel %vm5430_vm4, %v5133_v6, %v2431_v63  ;;  %v5521_v33 = vor.u32 %v2815_v30, %v2814_v36  ;;  %v2819_v47 = vor.u32 %v2818_v15, %v2817_v60 }
 0x707   : > { %v2820_v29 = vshll.u32 %v5933_v14, %v5420_v1  ;;  %v2436_v8 = vmul.f32 %v5519_v28, %v5519_v28  ;;  %v2753_v54 = vor.u32 4788187, %v2752_v24  ;;  %v2590_v0 = vsel %vm5482_vm13, 0, %v5506_v13 }
 0x708   : > { %vm3302_vm10 = vcmp.lt.s32.totalorder %v3301_v27, 0  ;;  %vm2823_vm11 = vcmp.lt.s32.totalorder %v5426_v2, 1  ;;  %vm2826_vm1 = vcmp.lt.s32.totalorder %v5426_v2, 4  ;;  %v2756_v55 = vcvt.s32.f32 %v2749_v18 }
 0x709   : > { %v2572_v50 = vsel %vm3302_vm10, 0, %v3301_v27  ;;  %v2822_v35 = vor.u32 %v2821_v32, %v2820_v29  ;;  %v2437_v9 = vmul.f32 -0.001358992, %v2436_v8  ;;  %v2444_v38 = vmul.f32 -0.00019511016, %v2436_v8 }
 0x70a   : > { %v2754_v49 = vand.u32 2147483647, %v2753_v54  ;;  %v2573_v14 = vsub.s32 32, %v2572_v50  ;;  %v2577_v1 = vsub.s32 4294967266, %v2572_v50  ;;  %vm2824_vm0 = vcmp.lt.s32.totalorder %v5426_v2, 2 }
 0x70b   : > { %v2832_v25 = vsel %vm2826_vm1, %v2819_v47, 920167782  ;;  %v2438_v48 = vadd.f32 0.041655596, %v2437_v9  ;;  %v2445_v20 = vadd.f32 0.008332121, %v2444_v38  ;;  %v2574_v42 = vshll.u32 %v5486_v41, %v2572_v50 }
 0x70c   : > { %v2757_v21 = vmul.f32 %v2756_v55, %v2754_v49  ;;  %vm2825_vm3 = vcmp.lt.s32.totalorder %v5426_v2, 3  ;;  %v2575_v40 = vshrl.u32 %v5462_v34, %v2573_v14  ;;  %v2578_v17 = vadd.s32 127, %v2577_v1  ;;  %v5671_v2 = vpop.permute.xlu1 %2627 }
 0x70d   : > { %v2831_v22 = vsel %vm2823_vm11, %v5488_v45, %v5508_v16  ;;  %v2439_v19 = vmul.f32 %v2438_v48, %v2436_v8  ;;  %v2446_v36 = vmul.f32 %v2445_v20, %v2436_v8  ;;  %v2833_v7 = vsel %vm2825_vm3, %v5521_v33, %v2832_v25 }
 0x70e   : > { %v2758_v53 = vxor.u32 2147483648, %v2757_v21  ;;  %v2576_v51 = vor.u32 %v2575_v40, %v2574_v42  ;;  %v2579_v31 = vshll.u32 %v2578_v17, 23  ;;  %v2835_v34 = vsel %vm2823_vm11, %v5508_v16, %v5521_v33 }
 0x70f   : > { %v2836_v41 = vsel %vm2826_vm1, %v2822_v35, 1326507024  ;;  %v2440_v4 = vadd.f32 -0.4999988, %v2439_v19  ;;  %v2447_v58 = vadd.f32 -0.16666654, %v2446_v36  ;;  %v5564_v59 = vsel %vm2824_vm0, %v2831_v22, %v2833_v7 }
 0x710   : > { %vm2458_vm8 = vcmp.eq.s32.totalorder %v5469_v5, 2  ;;  %v2759_v30 = vsel %vm2638_vm9, %v2758_v53, %v2757_v21  ;;  %v2837_v44 = vsel %vm2825_vm3, %v2819_v47, %v2836_v41  ;;  %vm2455_vm4 = vcmp.eq.s32.totalorder %v5469_v5, 0 }
 0x711   : > { %v5560_v43 = vsel %vm5447_vm5, %v5187_v3, %v2759_v30  ;;  %v2580_v15 = vor.u32 4788187, %v2579_v31  ;;  %v2838_v12 = vsel %vm2824_vm0, %v2835_v34, %v2837_v44  ;;  %v2441_v57 = vmul.f32 %v2440_v4, %v2436_v8  ;;  %v2623_v44 = vpop.permute.xlu0 %2622 }
 0x712   : > { %v2448_v11 = vmul.f32 %v2447_v58, %v2436_v8  ;;  %vm2454_vm9 = vcmp.lt.s32.totalorder %v5469_v5, 2  ;;  %v2764_v13 = vmul.f32 %v5560_v43, %v5560_v43  ;;  %v5573_v46 = vshll.u32 %v2799_v23, 8 }
 0x713   : > { %vm2451_vm6 = vweird.f32 %v5133_v6  ;;  %v2581_v60 = vand.u32 2147483647, %v2580_v15  ;;  %v2583_v32 = vcvt.s32.f32 %v2576_v51  ;;  %v2842_v63 = vand.u32 65535, %v2838_v12 }
 0x714   : > { %v2843_v18 = vshrl.u32 %v2838_v12, 16  ;;  %v2442_v24 = vadd.f32 1.0, %v2441_v57  ;;  %v2449_v27 = vadd.f32 1.0, %v2448_v11  ;;  %v2765_v47 = vmul.f32 -0.001358992, %v2764_v13 }
 0x715   : > { %v2772_v29 = vmul.f32 -0.00019511016, %v2764_v13  ;;  %v2584_v8 = vmul.f32 %v2583_v32, %v2581_v60  ;;  %v2607_v54 = vadd.s32 3, %v2590_v0  ;;  %v5577_v50 = vand.u32 65535, %v5573_v46 }
 0x716   : > { %v5580_v35 = vshrl.u32 %v5573_v46, 16  ;;  %v2450_v26 = vmul.f32 %v2449_v27, %v5519_v28  ;;  %v2459_v23 = vxor.u32 2147483648, %v2442_v24  ;;  %v2766_v9 = vadd.f32 0.041655596, %v2765_v47 }
 0x717   : > { %v2773_v38 = vadd.f32 0.008332121, %v2772_v29  ;;  %v2585_v49 = vxor.u32 2147483648, %v2584_v8  ;;  %v5584_v55 = vmul.u32 %v2843_v18, %v5577_v50  ;;  %v2864_v0 = vand.u32 65535, %v5564_v59 }
 0x718   : > { %v5587_v14 = vmul.u32 %v2842_v63, %v5580_v35  ;;  %v2456_v1 = vxor.u32 2147483648, %v2450_v26  ;;  %v2767_v25 = vmul.f32 %v2766_v9, %v2764_v13  ;;  %v2865_v20 = vshrl.u32 %v5564_v59, 16 }
 0x719   : > { %v2774_v48 = vmul.f32 %v2773_v38, %v2764_v13  ;;  %v2460_v28 = vsel %vm2458_vm8, %v2459_v23, %v2450_v26  ;;  %v2586_v21 = vsel %vm2465_vm12, %v2585_v49, %v2584_v8  ;;  %v2844_v42 = vmul.u32 %v2842_v63, %v5577_v50 }
 0x71a   : > { %v2848_v40 = vshll.u32 %v5584_v55, 16  ;;  %v2457_v17 = vsel %vm2455_vm4, %v2442_v24, %v2456_v1  ;;  %v2768_v22 = vadd.f32 -0.4999988, %v2767_v25  ;;  %v5602_v36 = vsel %vm5482_vm13, %v5123_v10, %v2586_v21 }
 0x71b   : > { %v2775_v19 = vadd.f32 -0.16666654, %v2774_v48  ;;  %v2461_v53 = vsel %vm2454_vm9, %v2457_v17, %v2460_v28  ;;  %vm2783_vm5 = vcmp.eq.s32.totalorder %v5499_v37, 0  ;;  %v2591_v7 = vmul.f32 %v5602_v36, %v5602_v36 }
 0x71c   : > { %v2847_v51 = vmul.u32 %v2843_v18, %v5580_v35  ;;  %v2850_v31 = vshll.u32 %v5587_v14, 16  ;;  %v2462_v34 = vsel %vm2451_vm6, nan, %v2461_v53  ;;  %v2769_v41 = vmul.f32 %v2768_v22, %v2764_v13  ;;  %v5998_v18 = vld [vmem:[#allocation9_spill] sm:$0xff] }
 0x71d   : > { %v2776_v4 = vmul.f32 %v2775_v19, %v2764_v13  ;;  %vm2782_vm7 = vcmp.lt.s32.totalorder %v5499_v37, 2  ;;  %vm2852_vm12 = vc.u32 %v2844_v42, %v2848_v40  ;;  %v2618_v52 = vmul.f32 %v2462_v34, %v2462_v34 }
 0x71e   : > { %vm2779_vm13 = vweird.f32 %v5187_v3  ;;  %v2592_v5 = vmul.f32 -0.001358992, %v2591_v7  ;;  %v2599_v58 = vmul.f32 -0.00019511016, %v2591_v7  ;;  %v2853_v30 = vsel %vm2852_vm12, 1, %v5877_v61 }
 0x71f   : > { %v2770_v15 = vadd.f32 1.0, %v2769_v41  ;;  %v2777_v59 = vadd.f32 1.0, %v2776_v4  ;;  %v2854_v12 = vadd.s32 %v2848_v40, %v2844_v42  ;;  %v2855_v57 = vadd.s32 %v2853_v30, %v2847_v51 }
 0x720   : > { %v2630_v11 = vmul.f32 %v2623_v44, %v2618_v52  ;;  %vm2786_vm14 = vcmp.eq.s32.totalorder %v5499_v37, 2  ;;  %v2593_v6 = vadd.f32 0.041655596, %v2592_v5  ;;  %v2600_v13 = vadd.f32 0.008332121, %v2599_v58  ;;  %v5999_v5 = vld [vmem:[#allocation6_spill] sm:$0xff] }
 0x721   : > { %v2778_v60 = vmul.f32 %v2777_v59, %v5560_v43  ;;  %v2787_v32 = vxor.u32 2147483648, %v2770_v15  ;;  %vm2856_vm15 = vc.u32 %v2854_v12, %v2850_v31  ;;  %v2867_v63 = vmul.u32 %v2865_v20, %v5577_v50 }
 0x722   : > { %v5620_v24 = vadd.f32 %v2630_v11, %v5998_v18  ;;  %v2594_v27 = vmul.f32 %v2593_v6, %v2591_v7  ;;  %v2601_v47 = vmul.f32 %v2600_v13, %v2591_v7  ;;  %v2857_v29 = vsel %vm2856_vm15, 1, %v5877_v61 }
 0x723   : > { %v2784_v8 = vxor.u32 2147483648, %v2778_v60  ;;  %v2608_v26 = vand.u32 3, %v2607_v54  ;;  %v2859_v23 = vadd.s32 %v2857_v29, %v2855_v57  ;;  %v2868_v9 = vmul.u32 %v2864_v0, %v5580_v35  ;;  %v6001_v29 = vld [vmem:[#allocation7_spill] sm:$0xff] }
 0x724   : > { %v2595_v38 = vadd.f32 -0.4999988, %v2594_v27  ;;  %v2602_v49 = vadd.f32 -0.16666654, %v2601_v47  ;;  %v2849_v43 = vshrl.u32 %v5584_v55, 16  ;;  %v2870_v1 = vshll.u32 %v2867_v63, 16  ;;  %2972 = vrot.lane.b32.xlu0 %v5620_v24, %s3482_s12  ;;  %2962 = vrot.lane.b32.xlu1 %v5620_v24, %s3481_s11 }
 0x725   : > { %v2785_v25 = vsel %vm2783_vm5, %v2770_v15, %v2784_v8  ;;  %v2788_v54 = vsel %vm2786_vm14, %v2787_v32, %v2778_v60  ;;  %v2866_v48 = vmul.u32 %v2864_v0, %v5577_v50  ;;  %v2869_v28 = vmul.u32 %v2865_v20, %v5580_v35  ;;  %2954 = vperm.xlu2 %3407, %v5620_v24  }
 0x726   : > { %v2789_v55 = vsel %vm2782_vm7, %v2785_v25, %v2788_v54  ;;  %v2596_v21 = vmul.f32 %v2595_v38, %v2591_v7  ;;  %v2603_v42 = vmul.f32 %v2602_v49, %v2591_v7  ;;  %v2860_v40 = vadd.s32 %v2859_v23, %v2849_v43 }
 0x727   : > { %v2790_v17 = vsel %vm2779_vm13, nan, %v2789_v55  ;;  %v2872_v22 = vshll.u32 %v2868_v9, 16  ;;  %vm2874_vm10 = vc.u32 %v2866_v48, %v2870_v1  ;;  %v2876_v19 = vadd.s32 %v2870_v1, %v2866_v48 }
 0x728   : > { %v2946_v53 = vmul.f32 %v2790_v17, %v2790_v17  ;;  %v2597_v51 = vadd.f32 1.0, %v2596_v21  ;;  %v2604_v31 = vadd.f32 1.0, %v2603_v42  ;;  %v2875_v50 = vsel %vm2874_vm10, 1, %v5877_v61 }
 0x729   : > { %v2828_v35 = vsel %vm2826_vm1, %v5521_v33, 2102212464  ;;  %v2851_v37 = vshrl.u32 %v5587_v14, 16  ;;  %v2877_v0 = vadd.s32 %v2875_v50, %v2869_v28  ;;  %vm2878_vm8 = vc.u32 %v2876_v19, %v2872_v22 }
 0x72a   : > { %v2948_v20 = vmul.f32 %v2946_v53, %v2623_v44  ;;  %v2605_v3 = vmul.f32 %v2604_v31, %v5602_v36  ;;  %v2614_v7 = vxor.u32 2147483648, %v2597_v51  ;;  %v2879_v34 = vsel %vm2878_vm8, 1, %v5877_v61 }
 0x72b   : > { %v2827_v41 = vsel %vm2823_vm11, %v5473_v56, %v5488_v45  ;;  %v2871_v4 = vshrl.u32 %v2867_v63, 16  ;;  %v2881_v52 = vadd.s32 %v2879_v34, %v2877_v0  ;;  %v2829_v14 = vsel %vm2825_vm3, %v5508_v16, %v2828_v35 }
 0x72c   : > { %v5652_v58 = vadd.f32 %v2948_v20, %v5999_v5  ;;  %v2611_v33 = vxor.u32 2147483648, %v2605_v3  ;;  %v2861_v30 = vadd.s32 %v2860_v40, %v2851_v37  ;;  %vm2610_vm1 = vcmp.eq.s32.totalorder %v2608_v26, 0 }
 0x72d   : > { %vm2613_vm4 = vcmp.eq.s32.totalorder %v2608_v26, 2  ;;  %v2873_v36 = vshrl.u32 %v2868_v9, 16  ;;  %v2882_v44 = vadd.s32 %v2881_v52, %v2871_v4  ;;  %v6000_v15 = vmov 127  }
 0x72e   : > { %3409 = vset.pattern.permute.xlu2 %v6000_v15  ;;  %vm2609_vm9 = vcmp.lt.s32.totalorder %v2608_v26, 2  ;;  %v2612_v59 = vsel %vm2610_vm1, %v2597_v51, %v2611_v33  ;;  %v2615_v56 = vsel %vm2613_vm4, %v2614_v7, %v2605_v3  ;;  %v2880_v45 = vadd.s32 %v2876_v19, %v2872_v22  ;;  %3056 = vrot.lane.b32.xlu0 %v5652_v58, %s3482_s12 }
 0x72f   : > { %3044 = vrot.lane.b32.xlu1 %v5652_v58, %s3481_s11  ;;  %v2616_v12 = vsel %vm2609_vm9, %v2612_v59, %v2615_v56  ;;  %v2830_v16 = vsel %vm2824_vm0, %v2827_v41, %v2829_v14  ;;  %v2883_v57 = vadd.s32 %v2882_v44, %v2873_v36  ;;  %3034 = vrot.lane.b32.xlu2 %v5652_v58, %s3480_s10  ;;  %vm2606_vm11 = vweird.f32 %v5123_v10 }
 0x730   : > { %vm2886_vm3 = vc.u32 %v2861_v30, %v2880_v45  ;;  %v2617_v11 = vsel %vm2606_vm11, nan, %v2616_v12  ;;  %v2884_v13 = vmul.u32 %v5573_v46, %v2830_v16  ;;  %v2885_v43 = vadd.s32 %v2880_v45, %v2861_v30 }
 0x731   : > { %v2887_v6 = vadd.s32 1, %v2883_v57  ;;  %v2619_v32 = vmul.f32 %v2617_v11, %v2617_v11  ;;  %vm2793_vm5 = vcmp.lt.s32.totalorder %v5146_v39, 0  ;;  %vm2792_vm7 = vcmp.le.f32.partialorder %v2791_v62, 0.7853982 }
 0x732   : > { %vm2934_vm15 = vweird.f32 %v5146_v39  ;;  %vm6003_vm10 = vcmask 15360   ;;  %vm6004_vm8 = vcmask 23552  }
 0x733   : > { %v2888_v60 = vsel %vm2886_vm3, %v2887_v6, %v2883_v57  ;;  %v2631_v10 = vmul.f32 %v5671_v2, %v2619_v32  ;;  %v6002_v6 = vld [vmem:[#allocation5_spill] sm:$0xff]  ;;  %vm6005_vm1 = vmmov %vm6003_vm10  ;;  %vm6009_vm3 = vcmask 1039360  }
 0x734   : > { %v2889_v63 = vadd.s32 %v2888_v60, %v2884_v13  ;;  %vm6006_vm4 = vmmov %vm6005_vm1 }
 0x735   : > { %v5677_v46 = vadd.f32 %v2631_v10, %v6001_v29  ;;  %vm6007_vm9 = vmmov %vm6004_vm8 }
 0x736   : > { %v2890_v18 = vadd.s32 536870912, %v2889_v63  ;;  %3010 = vrot.lane.b32.xlu0 %v5620_v24, %s3484_s14  ;;  %vm6008_vm11 = vmmov %vm6005_vm1 }
 0x737   : > { %3002 = vperm.xlu1 %3408, %v5652_v58   ;;  %2988 = vrot.lane.b32.xlu2 %v5620_v24, %s3483_s13 }
 0x738   : > { %v2891_v27 = vshrl.u32 %v2890_v18, 30 }
 0x73a   : > { %v2892_v47 = vshll.u32 %v2891_v27, 30  ;;  %v2915_v51 = vsub.s32 4, %v2891_v27 }
 0x73c   : > { %v2893_v8 = vsub.s32 %v2889_v63, %v2892_v47  ;;  %v2916_v0 = vsel %vm2793_vm5, %v2915_v51, %v2891_v27 }
 0x73d   : > { %v2918_v7 = vsel %vm2792_vm7, 0, %v2916_v0 }
 0x73e   : > { %vm2894_vm0 = vcmp.lt.s32.totalorder %v2893_v8, 0  ;;  %v2895_v26 = vsub.s32 0, %v2893_v8  ;;  %2959 = vperm.xlu0 %3387, %v5677_v46   ;;  %v2935_v5 = vadd.s32 3, %v2918_v7  ;;  %v2985_v7 = vmul.f32 0.4432098, %v5677_v46 }
 0x73f   : > { %3022 = vrot.lane.b32.xlu1 %v5620_v24, %s3485_s15  ;;  %3072 = vrot.lane.b32.xlu2 %v5652_v58, %s3483_s13 }
 0x740   : > { %3410 = vset.pattern.permute.xlu1 %v5877_v61  ;;  %v2896_v23 = vsel %vm2894_vm0, %v2895_v26, %v2893_v8  ;;  %v2936_v36 = vand.u32 3, %v2935_v5  ;;  %vm6010_vm0 = vcmask 1031168  }
 0x741   : > { %v2897_v9 = vclz %v2896_v23 }
 0x742   : > { %vm2938_vm12 = vcmp.eq.s32.totalorder %v2936_v36, 0  ;;  %vm2941_vm13 = vcmp.eq.s32.totalorder %v2936_v36, 2  ;;  %vm2937_vm14 = vcmp.lt.s32.totalorder %v2936_v36, 2 }
 0x743   : > { %v3307_v38 = vadd.s32 4294967294, %v2897_v9 }
 0x745   : > { %vm3308_vm6 = vcmp.lt.s32.totalorder %v3307_v38, 0 }
 0x746   : > { %v2900_v49 = vsel %vm3308_vm6, 0, %v3307_v38  ;;  %vm6011_vm6 = vmmov %vm6009_vm3 }
 0x747   : > { %2974 = vrot.lane.b32.xlu1 %v5677_v46, %s3482_s12  ;;  %v2901_v1 = vsub.s32 32, %v2900_v49  ;;  %v2905_v25 = vsub.s32 4294967266, %v2900_v49  ;;  %2964 = vrot.lane.b32.xlu2 %v5677_v46, %s3481_s11  ;;  %v2902_v54 = vshll.u32 %v2893_v8, %v2900_v49 }
 0x749   : > { %v2903_v48 = vshrl.u32 %v2885_v43, %v2901_v1  ;;  %v2906_v28 = vadd.s32 127, %v2905_v25 }
 0x74b   : > { %v2904_v55 = vor.u32 %v2903_v48, %v2902_v54  ;;  %v2907_v21 = vshll.u32 %v2906_v28, 23 }
 0x74d   : > { %v2908_v42 = vor.u32 4788187, %v2907_v21  ;;  %v2911_v17 = vcvt.s32.f32 %v2904_v55 }
 0x74f   : > { %v2909_v40 = vand.u32 2147483647, %v2908_v42 }
 0x751   : > { %v2912_v22 = vmul.f32 %v2911_v17, %v2909_v40 }
 0x753   : > { %v2913_v19 = vxor.u32 2147483648, %v2912_v22 }
 0x755   : > { %v2914_v53 = vsel %vm2793_vm5, %v2913_v19, %v2912_v22  ;;  %vm6013_vm5 = vmmov %vm6009_vm3 }
 0x756   : > { %v2917_v31 = vsel %vm2792_vm7, %v5146_v39, %v2914_v53  ;;  %vm6014_vm7 = vmmov %vm6010_vm0 }
 0x757   : > { %v2919_v50 = vmul.f32 %v2917_v31, %v2917_v31 }
 0x759   : > { %v2920_v35 = vmul.f32 -0.001358992, %v2919_v50  ;;  %v2927_v37 = vmul.f32 -0.00019511016, %v2919_v50 }
 0x75b   : > { %v2921_v20 = vadd.f32 0.041655596, %v2920_v35  ;;  %v2928_v3 = vadd.f32 0.008332121, %v2927_v37 }
 0x75d   : > { %v2922_v34 = vmul.f32 %v2921_v20, %v2919_v50  ;;  %v2929_v41 = vmul.f32 %v2928_v3, %v2919_v50 }
 0x75f   : > { %v2923_v4 = vadd.f32 -0.4999988, %v2922_v34  ;;  %v2930_v52 = vadd.f32 -0.16666654, %v2929_v41 }
 0x761   : > { %v2924_v33 = vmul.f32 %v2923_v4, %v2919_v50  ;;  %v2931_v14 = vmul.f32 %v2930_v52, %v2919_v50 }
 0x763   : > { %v2925_v30 = vadd.f32 1.0, %v2924_v33  ;;  %v2932_v62 = vadd.f32 1.0, %v2931_v14 }
 0x765   : > { %v2933_v44 = vmul.f32 %v2932_v62, %v2917_v31  ;;  %v2942_v15 = vxor.u32 2147483648, %v2925_v30 }
 0x767   : > { %v2939_v59 = vxor.u32 2147483648, %v2933_v44  ;;  %v2943_v45 = vsel %vm2941_vm13, %v2942_v15, %v2933_v44  ;;  %v2984_v44 = vmul.f32 0.4432098, %v5620_v24  ;;  %vm6016_vm13 = vmmov %vm6009_vm3 }
 0x769   : > { %v2940_v56 = vsel %vm2938_vm12, %v2925_v30, %v2939_v59  ;;  %vm6015_vm12 = vmmov %vm6010_vm0 }
 0x76a   : > { %v2944_v12 = vsel %vm2937_vm14, %v2940_v56, %v2943_v45 }
 0x76b   : > { %v2945_v16 = vsel %vm2934_vm15, nan, %v2944_v12  ;;  %vm6018_vm15 = vmmov %vm6010_vm0 }
 0x76c   : > { %v2947_v57 = vmul.f32 %v2945_v16, %v2945_v16 }
 0x76e   : > { %v2949_v11 = vmul.f32 %v2947_v57, %v5671_v2 }
 0x770   : > { %v5696_v13 = vadd.f32 %v2949_v11, %v6002_v6 }
 0x772   : > { %3036 = vrot.lane.b32.xlu0 %v5696_v13, %s3480_s10  ;;  %3058 = vrot.lane.b32.xlu1 %v5696_v13, %s3482_s12  ;;  %v3069_v45 = vmul.f32 0.4432098, %v5696_v13  ;;  %s3492_s10 = smov 5  }
 0x773   : > { %3046 = vrot.lane.b32.xlu2 %v5696_v13, %s3481_s11  ;;  %s3493_s11 = smov 123  }
 0x77a   : > { %2990 = vrot.lane.b32.xlu0 %v5677_v46, %s3483_s13  ;;  %3012 = vrot.lane.b32.xlu1 %v5677_v46, %s3484_s14 }
 0x77b   : > { %3007 = vperm.xlu2 %3409, %v5696_v13  }
 0x77f   : > { %v2955_v39 = vpop.permute.xlu2 %2954 }
 0x782   : > { %3074 = vrot.lane.b32.xlu0 %v5696_v13, %s3483_s13  ;;  %3086 = vrot.lane.b32.xlu1 %v5696_v13, %s3484_s14 }
 0x783   : > { %3024 = vrot.lane.b32.xlu2 %v5677_v46, %s3485_s15  ;;  %s3434_s15 = scalar_lea.hbm %s5810_s5, 32 }
 0x784   : > { %3411 = vset.pattern.permute.xlu2 %v5877_v61 }
 0x789   : > { %v3035_v32 = vpop.permute.xlu2 %3034 }
 0x78a   : > { %3084 = vrot.lane.b32.xlu0 %v5652_v58, %s3484_s14  ;;  %v3040_v42 = vsel %vm6007_vm9, %v2955_v39, %v3035_v32 }
 0x78b   : > { %v3042_v20 = vmul.f32 0.0020289666, %v3040_v42 }
 0x791   : > { %v2989_v2 = vpop.permute.xlu2 %2988 }
 0x792   : > { %v2994_v59 = vsel %vm6011_vm6, %v2989_v2, %v5652_v58 }
 0x796   : > { %v2963_v60 = vpop.permute.xlu1 %2962  ;;  %v2973_v63 = vpop.permute.xlu0 %2972 }
 0x797   : > { %v2978_v40 = vsel %vm270_vm2, %v5620_v24, %v2973_v63  ;;  %v2968_v51 = vsel %vm6008_vm11, %v2955_v39, %v2963_v60 }
 0x798   : > { %v2980_v3 = vmul.f32 -0.057657376, %v2978_v40  ;;  %v2970_v41 = vmul.f32 0.009389464, %v2968_v51 }
 0x799   : > { %v5720_v47 = vpop.permute.xlu2 %3072 }
 0x7a0   : > { %v3057_v10 = vpop.permute.xlu0 %3056 }
 0x7a1   : > { %v3045_v18 = vpop.permute.xlu1 %3044  ;;  %v2965_v26 = vpop.permute.xlu2 %2964  ;;  %v3062_v4 = vsel %vm270_vm2, %v5620_v24, %v3057_v10 }
 0x7a2   : > { %v3050_v48 = vsel %vm6005_vm1, %v2955_v39, %v3045_v18  ;;  %v3064_v15 = vmul.f32 0.12857261, %v3062_v4 }
 0x7a3   : > { %v3052_v31 = vmul.f32 -0.025543464, %v3050_v48 }
 0x7a5   : > { %v3054_v33 = vadd.f32 %v3052_v31, %v3042_v20  ;;  %v3319_v31 = vld [vmem:[%s5807_s2 + $0x28] sm:$0xff] }
 0x7a7   : > { %v3066_v57 = vadd.f32 %v3064_v15, %v3054_v33 }
 0x7a8   : > { %v3011_v29 = vpop.permute.xlu0 %3010 }
 0x7a9   : > { %v5718_v27 = vpop.permute.xlu1 %3002 }
 0x7aa   : > { %v3016_v18 = vsel %vm6015_vm12, %v3011_v29, %v5718_v27 }
 0x7b0   : > { %v2960_v23 = vpop.permute.xlu0 %2959 }
 0x7b1   : > { %v5722_v8 = vpop.permute.xlu1 %3022  ;;  %v2969_v25 = vsel %vm6003_vm10, %v2960_v23, %v2965_v26  ;;  %vm3113_vm10 = vcmask 1006592  }
 0x7b2   : > { %v2971_v17 = vmul.f32 0.009389464, %v2969_v25 }
 0x7b9   : > { %v2975_v61 = vpop.permute.xlu1 %2974 }
 0x7ba   : > { %v2979_v43 = vsel %vm270_vm2, %v5677_v46, %v2975_v61  ;;  %v2996_v61 = vmul.f32 0.12857261, %v2994_v59 }
 0x7bb   : > { %v2981_v28 = vmul.f32 -0.057657376, %v2979_v43 }
 0x7bd   : > { %v2983_v37 = vadd.f32 %v2981_v28, %v2971_v17 }
 0x7bf   : > { %v2987_v62 = vadd.f32 %v2985_v7, %v2983_v37  ;;  %v6020_v7 = vld [vmem:[#allocation8_spill] sm:$0xff] }
 0x7cd   : > { %v3047_v9 = vpop.permute.xlu2 %3046 }
 0x7ce   : > { %v3051_v55 = vsel %vm6006_vm4, %v2960_v23, %v3047_v9  ;;  %v3078_v9 = vsel %vm6016_vm13, %v5720_v47, %v5652_v58  ;;  %vm6019_vm4 = vcmask 392192  }
 0x7cf   : > { %v3053_v35 = vmul.f32 -0.025543464, %v3051_v55  ;;  %v3080_v25 = vmul.f32 -0.057657376, %v3078_v9 }
 0x7d5   : > { %v3008_v1 = vpop.permute.xlu2 %3007 }
 0x7dd   : > { %v3025_v14 = vpop.permute.xlu2 %3024 }
 0x7e4   : > { %v3037_v38 = vpop.permute.xlu0 %3036  ;;  %v3059_v49 = vpop.permute.xlu1 %3058 }
 0x7e5   : > { %v3041_v54 = vsel %vm6004_vm8, %v2960_v23, %v3037_v38  ;;  %v3063_v21 = vsel %vm270_vm2, %v5677_v46, %v3059_v49  ;;  %v2982_v46 = vadd.f32 %v2980_v3, %v2970_v41  ;;  %vm6012_vm2 = vcmask 1022976  }
 0x7e6   : > { %v3043_v22 = vmul.f32 0.0020289666, %v3041_v54  ;;  %v3065_v0 = vmul.f32 0.12857261, %v3063_v21  ;;  %v3029_v11 = vsel %vm6012_vm2, %v3025_v14, %v3008_v1  ;;  %v3068_v23 = vmul.f32 0.4432098, %v5652_v58  ;;  %vm6017_vm14 = vmmov %vm6012_vm2 }
 0x7e7   : > { %v2986_v2 = vadd.f32 %v2984_v44, %v2982_v46  ;;  %v3031_v10 = vmul.f32 0.0020289666, %v3029_v11  ;;  %v3018_v38 = vmul.f32 -0.025543464, %v3016_v18  ;;  %vm3107_vm8 = vcmask 39936  }
 0x7e8   : > { %v3055_v52 = vadd.f32 %v3053_v35, %v3043_v22  ;;  %vm3315_vm1 = vmneg %vm3107_vm8 }
 0x7e9   : > { %v2998_v29 = vadd.f32 %v2996_v61, %v2986_v2 }
 0x7ea   : > { %v3067_v30 = vadd.f32 %v3065_v0, %v3055_v52  ;;  %v3328_v0 = vld [vmem:[%s5806_s1 + $0x10] sm:$0xff] }
 0x7eb   : > { %v3020_v21 = vadd.f32 %v3018_v38, %v2998_v29 }
 0x7ec   : > { %v2991_v19 = vpop.permute.xlu0 %2990  ;;  %v3013_v53 = vpop.permute.xlu1 %3012  ;;  %v3071_v24 = vadd.f32 %v3069_v45, %v3067_v30 }
 0x7ed   : > { %v2995_v50 = vsel %vm6009_vm3, %v2991_v19, %v5696_v13  ;;  %v3017_v34 = vsel %vm6010_vm0, %v3013_v53, %v3008_v1 }
 0x7ee   : > { %v2997_v5 = vmul.f32 0.12857261, %v2995_v50  ;;  %v3019_v36 = vmul.f32 -0.025543464, %v3017_v34 }
 0x7f0   : > { %v2999_v56 = vadd.f32 %v2997_v5, %v2987_v62  ;;  %v6021_v5 = vld [vmem:[#allocation10_spill] sm:$0xff] }
 0x7f2   : > { %v3021_v60 = vadd.f32 %v3019_v36, %v2999_v56 }
 0x7f4   : > { %v3075_v12 = vpop.permute.xlu0 %3074  ;;  %v3087_v16 = vpop.permute.xlu1 %3086  ;;  %v3033_v49 = vadd.f32 %v3031_v10, %v3021_v60 }
 0x7f5   : > { %v3079_v6 = vsel %vm6013_vm5, %v3075_v12, %v5696_v13  ;;  %v3091_v39 = vsel %vm6014_vm7, %v3087_v16, %v3008_v1  ;;  %v3028_v13 = vsel %vm6017_vm14, %v5722_v8, %v5718_v27  ;;  %v3070_v1 = vadd.f32 %v3068_v23, %v3066_v57 }
 0x7f6   : > { %v3081_v32 = vmul.f32 -0.057657376, %v3079_v6  ;;  %v3093_v63 = vmul.f32 0.009389464, %v3091_v39  ;;  %v3030_v54 = vmul.f32 0.0020289666, %v3028_v13 }
 0x7f7   : > { %v3082_v42 = vadd.f32 %v3080_v25, %v3070_v1 }
 0x7f8   : > { %v3083_v26 = vadd.f32 %v3081_v32, %v3071_v24  ;;  %v3032_v58 = vadd.f32 %v3030_v54, %v3020_v21 }
 0x7fa   : > { %v3095_v43 = vadd.f32 %v3093_v63, %v3083_v26 }
 0x7fc   : > { %v3097_v48 = vadd.f32 %v3095_v43, %v3033_v49  ;;  %v3085_v28 = vpop.permute.xlu0 %3084 }
 0x7fd   : > { %v3090_v55 = vsel %vm6018_vm15, %v3085_v28, %v5718_v27  ;;  %v3318_v27 = vld [vmem:[%s5807_s2 + $0x20] sm:$0xff] }
 0x7fe   : > { %v3092_v40 = vmul.f32 0.009389464, %v3090_v55  ;;  %v3099_v17 = vpack.c.bf16 %v3097_v48, %v3097_v48  ;;  %3150 = vperm.xlu1 %3410, %v3318_v27  }
 0x800   : > { %v3094_v47 = vadd.f32 %v3092_v40, %v3082_v42  ;;  %v3103_v19 = vunpack.c.l.b16 %v3099_v17 }
 0x802   : > { %v3096_v22 = vadd.f32 %v3094_v47, %v3032_v58 }
 0x804   : > { %v3098_v8 = vpack.c.bf16 %v3096_v22, %v3096_v22 }
 0x806   : > { %v3102_v53 = vunpack.c.l.b16 %v3098_v8 }
 0x808   : > { %v3104_v51 = vpack.c.b16 %v3103_v19, %v3102_v53 }
 0x80a   : > { %3105 = vrot.lane.b32.xlu0 %v3104_v51, %s3492_s10  ;;  %3111 = vrot.lane.b32.xlu2 %v3104_v51, %s3493_s11  ;;  %s3177_s10 = sshll.u32 %s3174_s9, 4  ;;  %s3163_s11 = scalar_lea.sflag [#allocation3], %s215_s8  ;;  %s3178_s10 = int_to_ptr.hbm [resolvable:$true] %s3177_s10 }
 0x80b   : > { %s3428_s22 = sshra.s32 %s3178_s10, 4  ;;  %s3429_s22 = int_to_ptr.hbm [resolvable:$true] %s3428_s22 }
 0x80c   : > { %s3430_s12 = scalar_lea.hbm %s3429_s22, 16  ;;  %p3435_p0 = scmp.lt.s32.totalorder %s3429_s22, %s5810_s5 }
 0x80d   : > { %p3431_p11 = scmp.ne.s32.totalorder %s3429_s22, %s3430_s12  ;;  %p3436_p1 = scmp.lt.s32.totalorder %s3434_s15, %s3430_s12 }
 0x80f   : > { %p3432_p12 = pnand %p3431_p11, %p3564_p5  ;;  %p3437_p2 = por %p3436_p1, %p3435_p0 }
 0x811   : > { %p3433_p13 = pneg %p3432_p12 }
 0x812   : > { %3155 = vperm.xlu2 %3411, %v3319_v31  }
 0x813   : > { %p3438_p3 = pnand %p3437_p2, %p3433_p13 }
 0x864   : > { %v3112_v50 = vpop.permute.xlu2 %3111 }
 0x865   : > { %v3115_v35 = vsel %vm3113_vm10, %v3112_v50, 0 }
 0x866   : > { %3134 = vmatpush.bf16.msra.mxu2 %v3115_v35 }
 0x86a   : > { %3135 = vmatpush.bf16.msra.mxu2 %v3104_v51 }
 0x86c   : > { %v3156_v52 = vpop.permute.xlu2 %3155 }
 0x870   : > { %v3151_v3 = vpop.permute.xlu1 %3150 }
 0x87c   : > { %v3106_v37 = vpop.permute.xlu0 %3105 }
 0x87d   : > { %3316 = vmatpush.bf16.msk.msra.mxu2 %vm3315_vm1, %v3106_v37 }
 0x880   : > { %3317 = vmatmul.msk.bf16.vlgmr.msra.gmra.mxu2 %vm6019_vm4, %v3328_v0 }
 0x903   : > { %v3138_v20 = vpop.f32.mrf.mxu2 }
 0x904   : > { %v3143_v34 = vadd.f32 %v3138_v20, %v6020_v7 }
 0x906   : > { %v3158_v41 = vadd.f32 %v3151_v3, %v3143_v34 }
 0x908   : > { %3160 = vst [vmem:[%s217_s23] sm:$0xff] %v3158_v41 }
 0x90b   : > { %v3140_v4 = vpop.f32.mrf.mxu2 }
 0x90c   : > { %v3144_v33 = vadd.f32 %v3140_v4, %v6021_v5 }
 0x90e   : > { %v3159_v14 = vadd.f32 %v3156_v52, %v3144_v33 }
 0x910   : > { %3161 = vst [vmem:[%s217_s23 + $0x8] sm:$0xff] %v3159_v14 }
 0x911   : > { %3441 = shalt.err (!%p3438_p3)
}
 0x912   : > { %s3494_s8 = smov 128   ;;  %s3495_s16 = smov 8  }
 0x913   : > { %3330 = dma.vmem_to_hbm [thread:$0]  (%p3564_p5), %s3176_s30, 256, %s3178_s10, %s3163_s11, %s3494_s8, %s3494_s8, %s3495_s16  }
 0x914 PF: > { %p3336_p4 = scmp.ge.s32.totalorder %s3476_s21, 2  ;;  %s3192_s17 = sand.u32 1, %s3464_s18  }
 0x915   : > { %s3193_s23 = scalar_lea.sflag [#allocation3], %s3192_s17 }
 0x916   : > { %p3333_p7 = pnand %p3336_p4, %p3568_p6 }
 0x918   : > { %p3334_p8 = pneg %p3333_p7 }
 0x91a   : > { %3459 = dma.done.wait (%p3334_p8), %s3193_s23, 256  }
 0x91b   : > { %3461 = vsyncadd (%p3334_p8), %s3193_s23, 4294967040  ;;  %p15_p9 = scmp.ge.s32.totalorder %s3551_s24, 4   ;;  %s6022_s18 = smov %s3468_s19 }
 0x91c   : > { %s6023_s19 = smov %s3472_s20  ;;  %s6024_s20 = smov %s3562_s27 }
 0x91d   : > { %s6025_s21 = smov %s3551_s24  ;;  %17 = sbr.rel (!%p15_p9) target bundleno = 3 (0x3), region = 83 }
 0x922   :  { %3199 = vsyncpa [#allocation3], 1 }
 0x923   :  { %3201 = vsyncpa [#allocation3 + $0x1], 1 }

</bundles_post_ra>
